<compile_context>
chip_gen: v7x
topology: tpu7x:2x2x1
jax: 0.10.0
libtpu: 0.0.40
codegen_flags: <defaults>
</compile_context>

<pallas_src>
import math
import functools

import jax
import jax.numpy as jnp
from jax import lax
from jax.experimental import pallas as pl
from jax.experimental.pallas import tpu as pltpu


def fragment_embedder_kernel(x_ref, f_ref, w_ref, out_ref,
                             *, n_genes, d_out, d_pad, sub_n, n_sub):
    # Constant operands (loaded once per grid step, hoisted out of the lane loop).
    f_mat = f_ref[...]                      # (D_k, 4)
    w_cat = w_ref[...]                      # (G*d_pad, D_k)

    def body(s, carry):
        c0 = pl.multiple_of(s * sub_n, sub_n)            # aligned lane offset
        x = x_ref[:, pl.ds(c0, sub_n)]                   # (4, L): [c_l; c_r; 1; gene]
        gene = x[3:4, :]                                 # (1, L) gene index as f32 (exact < 2^24)

        # MXU pass 1: sine arguments  arg[d,l] = c_l*freq_l[d] + c_r*freq_r[d] + shift[d]
        # (the gene row hits the zero column of F).  Row D_k-1 evaluates to pi/2, so
        # sin() produces the constant-1 column that carries the folded bias1.
        arg = jnp.dot(f_mat, x, preferred_element_type=jnp.float32)   # (D_k, L)
        emb = jnp.sin(arg)

        # MXU pass 2: all genes at once against the concatenated weights.
        y = jnp.dot(w_cat, emb, preferred_element_type=jnp.float32)   # (G*d_pad, L)

        # Per-gene select: (1, L) lane mask broadcast over d_pad sublanes, G masked adds
        # on 8-sublane-aligned slabs.  Out-of-range gene_ix contributes nothing and
        # yields sigmoid(0)=0.5 (documented contract; PyTorch would raise instead).
        acc = jnp.zeros((d_pad, sub_n), jnp.float32)
        for g in range(n_genes):                          # static unroll (small G)
            m = (gene == jnp.float32(g)).astype(jnp.float32)
            acc = acc + y[g * d_pad:(g + 1) * d_pad, :] * m

        # nonlinear=True -> sigmoid; lane-dense store of the (d_out, L) slab.
        out_ref[:, pl.ds(c0, sub_n)] = jax.nn.sigmoid(acc[:d_out, :])
        return carry

    lax.fori_loop(0, n_sub, body, 0, unroll=True)
    # TODO(synk): dropout_rate defaults to 0.0 so dropout is a no-op and is omitted.


def fragment_embedder(coordinates, gene_ix, weight1, bias1, frequencies, shifts,
                      *, tile_n=512, sub_n=256):
    n, two = coordinates.shape
    assert two == 2
    n_genes, d_in, d_out = weight1.shape
    two_f = frequencies.shape[0]            # == 2 * n_frequencies
    assert d_in == 2 * two_f
    d_k = d_in + 1                          # +1 constant column (folded bias / shift)
    d_pad = -(-d_out // 8) * 8              # pad each gene's output rows to a sublane tile

    # --- weights: (G, D_in, D_out) + bias -> lane-dense 2-D slab (G*d_pad, D_k) ---
    w_aug = jnp.concatenate(
        [weight1.astype(jnp.float32),
         bias1.reshape(n_genes, 1, d_out).astype(jnp.float32)], axis=1)   # (G, D_k, D_out)
    w_t = jnp.swapaxes(w_aug, 1, 2)                                       # (G, D_out, D_k)
    w_cat = jnp.zeros((n_genes, d_pad, d_k), jnp.float32)
    w_cat = w_cat.at[:, :d_out, :].set(w_t).reshape(n_genes * d_pad, d_k)
    # TODO(synk): for realistic chromatinhd gene counts (hundreds-thousands), switch to a
    # sorted-by-gene + PrefetchScalarGridSpec scalar-prefetch variant that streams one
    # gene's (D_k, D_out) weight per grid step instead of keeping all genes VMEM-resident
    # and unrolling the masked-add loop over G.

    # --- F = [freq_left | freq_right | shift | 0]: sine arguments computed on the MXU ---
    freq = frequencies.astype(jnp.float32)
    shf = shifts.astype(jnp.float32)
    zf = jnp.zeros((two_f,), jnp.float32)
    z1 = jnp.zeros((1,), jnp.float32)
    freq_l = jnp.concatenate([freq, zf, z1])
    freq_r = jnp.concatenate([zf, freq, z1])
    shift_e = jnp.concatenate([shf, shf, jnp.full((1,), math.pi / 2.0, jnp.float32)])
    f_mat = jnp.stack([freq_l, freq_r, shift_e,
                       jnp.zeros((d_k,), jnp.float32)], axis=1)           # (D_k, 4)

    # --- single packed, transposed input slab: rows [c_left; c_right; 1; gene] ---
    coords = coordinates.astype(jnp.float32)
    x = jnp.stack([coords[:, 0], coords[:, 1],
                   jnp.ones((n,), jnp.float32),
                   gene_ix.reshape(n).astype(jnp.float32)], axis=0)       # (4, N)

    # --- tiling: fixed large tile, processed as 256-lane MXU passes inside the kernel ---
    sub_n = max(128, (sub_n // 128) * 128)
    tile_n = max(sub_n, (tile_n // sub_n) * sub_n)
    n_sub = tile_n // sub_n
    n_pad = pl.cdiv(n, tile_n) * tile_n
    if n_pad != n:
        x = jnp.pad(x, ((0, 0), (0, n_pad - n)))        # padded fragments sliced off below

    kernel = functools.partial(fragment_embedder_kernel, n_genes=n_genes,
                               d_out=d_out, d_pad=d_pad, sub_n=sub_n, n_sub=n_sub)

    out_t = pl.pallas_call(
        kernel,
        out_shape=jax.ShapeDtypeStruct((d_out, n_pad), jnp.float32),
        grid_spec=pltpu.PrefetchScalarGridSpec(
            num_scalar_prefetch=0,
            grid=(n_pad // tile_n,),
            in_specs=[
                pl.BlockSpec((4, tile_n), lambda i: (0, i)),              # packed coords+gene
                pl.BlockSpec((d_k, 4), lambda i: (0, 0)),                 # freq/shift matrix
                pl.BlockSpec((n_genes * d_pad, d_k), lambda i: (0, 0)),   # concatenated W|b
            ],
            out_specs=pl.BlockSpec((d_out, tile_n), lambda i: (0, i)),    # lane-dense output
        ),
        compiler_params=pltpu.CompilerParams(
            dimension_semantics=("parallel",)),
    )(x, f_mat, w_cat)

    # Kernel output is (D_out, N_pad) fragments-on-lanes; restore module layout (N, D_out).
    return out_t.T[:n]


if __name__ == "__main__":
    key = jax.random.PRNGKey(0)

    n_genes = 8
    n_frequencies = 10
    n_embedding_dimensions = 5
    n_fragments = 1000                    # deliberately not a multiple of the tile
    d_in = n_frequencies * 2 * 2          # SineEncoding.n_embedding_dimensions

    # SineEncoding buffers (exactly as in __init__)
    freqs = jnp.repeat(
        jnp.array([1.0 / 1000.0 ** (2.0 * i / n_frequencies)
                   for i in range(1, n_frequencies + 1)], dtype=jnp.float32), 2)
    shifts = jnp.tile(jnp.array([0.0, math.pi / 2.0], dtype=jnp.float32),
                      n_frequencies)

    # Parameters (synthetic; bias made nonzero to exercise the folded-bias path —
    # the module zero-inits it, but the forward works for any bias value).
    k_w, k_b, k_c, k_g = jax.random.split(key, 4)
    stdv = 1.0 / math.sqrt(n_embedding_dimensions)
    weight1 = jax.random.uniform(k_w, (n_genes, d_in, n_embedding_dimensions),
                                 jnp.float32, -stdv, stdv)
    bias1 = jax.random.uniform(k_b, (n_genes, n_embedding_dimensions),
                               jnp.float32, -0.1, 0.1)

    # Inputs
    coordinates = jax.random.uniform(k_c, (n_fragments, 2), jnp.float32,
                                     -1000.0, 1000.0)
    gene_ix = jax.random.randint(k_g, (n_fragments,), 0, n_genes, dtype=jnp.int32)

    out = fragment_embedder(coordinates, gene_ix, weight1, bias1, freqs, shifts)
    out = jax.block_until_ready(out)

    # pure-JAX reference (mirrors the PyTorch forward)
    emb_ref = jnp.sin(coordinates[..., None] * freqs + shifts).reshape(
        n_fragments, -1)
    ref = jax.nn.sigmoid(
        jnp.einsum("ab,abc->ac", emb_ref, weight1[gene_ix]) + bias1[gene_ix])

    assert out.shape == (n_fragments, n_embedding_dimensions)
    # Tolerance note: the sine arguments now come from f32 MXU passes (and hardware sine
    # vs XLA's elementwise path); at |coord| ~1000 the arguments reach ~250 rad, so a few
    # f32 ulps of argument error show up at the ~1e-4 level pre-sigmoid.
    assert jnp.allclose(out, ref, atol=2e-4, rtol=2e-4), "mismatch vs reference"
    print("KERNEL_OK")
</pallas_src>

<mosaic_0001>
module attributes {stable_mosaic.version = 11 : i64} {
  func.func @fragment_embedder_kernel(%arg0: i32, %arg1: memref<4x512xf32, #tpu.memory_space<vmem>>, %arg2: memref<41x4xf32, #tpu.memory_space<vmem>>, %arg3: memref<64x41xf32, #tpu.memory_space<vmem>>, %arg4: memref<5x512xf32, #tpu.memory_space<vmem>>) attributes {dimension_semantics = [#tpu.dimension_semantics<parallel>], iteration_bounds = array<i64: 2>, scalar_prefetch = 0 : i64, scratch_operands = 0 : i64, tpu.core_type = #tpu.core_type<tc>, window_params = [{transform_indices = @transform_0, window_bounds = array<i64: 4, 512>}, {pipeline_mode = #tpu.pipeline_mode<synchronous>, transform_indices = @transform_1, window_bounds = array<i64: 41, 4>}, {pipeline_mode = #tpu.pipeline_mode<synchronous>, transform_indices = @transform_2, window_bounds = array<i64: 64, 41>}, {transform_indices = @transform_3, window_bounds = array<i64: 5, 512>}]} {
    %c0 = arith.constant 0 : index
    %c0_0 = arith.constant 0 : index
    %0 = vector.load %arg2[%c0, %c0_0] : memref<41x4xf32, #tpu.memory_space<vmem>>, vector<41x4xf32>
    %c0_1 = arith.constant 0 : index
    %c0_2 = arith.constant 0 : index
    %1 = vector.load %arg3[%c0_1, %c0_2] : memref<64x41xf32, #tpu.memory_space<vmem>>, vector<64x41xf32>
    %c0_i32 = arith.constant 0 : i32
    %c256_i32 = arith.constant 256 : i32
    %2 = arith.muli %c0_i32, %c256_i32 : i32
    %3 = tpu.assume_multiple %2, 256 : i32
    %c0_3 = arith.constant 0 : index
    %4 = arith.index_cast %3 : i32 to index
    %5 = vector.load %arg1[%c0_3, %4] : memref<4x512xf32, #tpu.memory_space<vmem>>, vector<4x256xf32>
    %6 = vector.extract_strided_slice %5 {offsets = [3, 0], sizes = [1, 256], strides = [1, 1]} : vector<4x256xf32> to vector<1x256xf32>
    %cst = arith.constant dense<0.000000e+00> : vector<41x256xf32>
    %7 = tpu.matmul %0, %5, %cst {dimension_numbers = #tpu.dot_dimension_numbers<[1], [0], [0], [1], [0, 0, 1, 1], [], []>} : vector<41x4xf32>, vector<4x256xf32>, vector<41x256xf32> -> vector<41x256xf32>
    %8 = math.sin %7 : vector<41x256xf32>
    %cst_4 = arith.constant dense<0.000000e+00> : vector<64x256xf32>
    %9 = tpu.matmul %1, %8, %cst_4 {dimension_numbers = #tpu.dot_dimension_numbers<[1], [0], [0], [1], [0, 0, 1, 1], [], []>} : vector<64x41xf32>, vector<41x256xf32>, vector<64x256xf32> -> vector<64x256xf32>
    %cst_5 = arith.constant 0.000000e+00 : f32
    %10 = vector.broadcast %cst_5 : f32 to vector<8x256xf32>
    %cst_6 = arith.constant 0.000000e+00 : f32
    %11 = vector.broadcast %cst_6 : f32 to vector<1x256xf32>
    %12 = arith.cmpf oeq, %6, %11 : vector<1x256xf32>
    %13 = arith.extui %12 : vector<1x256xi1> to vector<1x256xi32>
    %14 = arith.sitofp %13 : vector<1x256xi32> to vector<1x256xf32>
    %15 = vector.extract_strided_slice %9 {offsets = [0, 0], sizes = [8, 256], strides = [1, 1]} : vector<64x256xf32> to vector<8x256xf32>
    %16 = vector.broadcast %14 : vector<1x256xf32> to vector<8x256xf32>
    %17 = arith.mulf %15, %16 : vector<8x256xf32>
    %18 = arith.addf %10, %17 : vector<8x256xf32>
    %cst_7 = arith.constant 1.000000e+00 : f32
    %19 = vector.broadcast %cst_7 : f32 to vector<1x256xf32>
    %20 = arith.cmpf oeq, %6, %19 : vector<1x256xf32>
    %21 = arith.extui %20 : vector<1x256xi1> to vector<1x256xi32>
    %22 = arith.sitofp %21 : vector<1x256xi32> to vector<1x256xf32>
    %23 = vector.extract_strided_slice %9 {offsets = [8, 0], sizes = [8, 256], strides = [1, 1]} : vector<64x256xf32> to vector<8x256xf32>
    %24 = vector.broadcast %22 : vector<1x256xf32> to vector<8x256xf32>
    %25 = arith.mulf %23, %24 : vector<8x256xf32>
    %26 = arith.addf %18, %25 : vector<8x256xf32>
    %cst_8 = arith.constant 2.000000e+00 : f32
    %27 = vector.broadcast %cst_8 : f32 to vector<1x256xf32>
    %28 = arith.cmpf oeq, %6, %27 : vector<1x256xf32>
    %29 = arith.extui %28 : vector<1x256xi1> to vector<1x256xi32>
    %30 = arith.sitofp %29 : vector<1x256xi32> to vector<1x256xf32>
    %31 = vector.extract_strided_slice %9 {offsets = [16, 0], sizes = [8, 256], strides = [1, 1]} : vector<64x256xf32> to vector<8x256xf32>
    %32 = vector.broadcast %30 : vector<1x256xf32> to vector<8x256xf32>
    %33 = arith.mulf %31, %32 : vector<8x256xf32>
    %34 = arith.addf %26, %33 : vector<8x256xf32>
    %cst_9 = arith.constant 3.000000e+00 : f32
    %35 = vector.broadcast %cst_9 : f32 to vector<1x256xf32>
    %36 = arith.cmpf oeq, %6, %35 : vector<1x256xf32>
    %37 = arith.extui %36 : vector<1x256xi1> to vector<1x256xi32>
    %38 = arith.sitofp %37 : vector<1x256xi32> to vector<1x256xf32>
    %39 = vector.extract_strided_slice %9 {offsets = [24, 0], sizes = [8, 256], strides = [1, 1]} : vector<64x256xf32> to vector<8x256xf32>
    %40 = vector.broadcast %38 : vector<1x256xf32> to vector<8x256xf32>
    %41 = arith.mulf %39, %40 : vector<8x256xf32>
    %42 = arith.addf %34, %41 : vector<8x256xf32>
    %cst_10 = arith.constant 4.000000e+00 : f32
    %43 = vector.broadcast %cst_10 : f32 to vector<1x256xf32>
    %44 = arith.cmpf oeq, %6, %43 : vector<1x256xf32>
    %45 = arith.extui %44 : vector<1x256xi1> to vector<1x256xi32>
    %46 = arith.sitofp %45 : vector<1x256xi32> to vector<1x256xf32>
    %47 = vector.extract_strided_slice %9 {offsets = [32, 0], sizes = [8, 256], strides = [1, 1]} : vector<64x256xf32> to vector<8x256xf32>
    %48 = vector.broadcast %46 : vector<1x256xf32> to vector<8x256xf32>
    %49 = arith.mulf %47, %48 : vector<8x256xf32>
    %50 = arith.addf %42, %49 : vector<8x256xf32>
    %cst_11 = arith.constant 5.000000e+00 : f32
    %51 = vector.broadcast %cst_11 : f32 to vector<1x256xf32>
    %52 = arith.cmpf oeq, %6, %51 : vector<1x256xf32>
    %53 = arith.extui %52 : vector<1x256xi1> to vector<1x256xi32>
    %54 = arith.sitofp %53 : vector<1x256xi32> to vector<1x256xf32>
    %55 = vector.extract_strided_slice %9 {offsets = [40, 0], sizes = [8, 256], strides = [1, 1]} : vector<64x256xf32> to vector<8x256xf32>
    %56 = vector.broadcast %54 : vector<1x256xf32> to vector<8x256xf32>
    %57 = arith.mulf %55, %56 : vector<8x256xf32>
    %58 = arith.addf %50, %57 : vector<8x256xf32>
    %cst_12 = arith.constant 6.000000e+00 : f32
    %59 = vector.broadcast %cst_12 : f32 to vector<1x256xf32>
    %60 = arith.cmpf oeq, %6, %59 : vector<1x256xf32>
    %61 = arith.extui %60 : vector<1x256xi1> to vector<1x256xi32>
    %62 = arith.sitofp %61 : vector<1x256xi32> to vector<1x256xf32>
    %63 = vector.extract_strided_slice %9 {offsets = [48, 0], sizes = [8, 256], strides = [1, 1]} : vector<64x256xf32> to vector<8x256xf32>
    %64 = vector.broadcast %62 : vector<1x256xf32> to vector<8x256xf32>
    %65 = arith.mulf %63, %64 : vector<8x256xf32>
    %66 = arith.addf %58, %65 : vector<8x256xf32>
    %cst_13 = arith.constant 7.000000e+00 : f32
    %67 = vector.broadcast %cst_13 : f32 to vector<1x256xf32>
    %68 = arith.cmpf oeq, %6, %67 : vector<1x256xf32>
    %69 = arith.extui %68 : vector<1x256xi1> to vector<1x256xi32>
    %70 = arith.sitofp %69 : vector<1x256xi32> to vector<1x256xf32>
    %71 = vector.extract_strided_slice %9 {offsets = [56, 0], sizes = [8, 256], strides = [1, 1]} : vector<64x256xf32> to vector<8x256xf32>
    %72 = vector.broadcast %70 : vector<1x256xf32> to vector<8x256xf32>
    %73 = arith.mulf %71, %72 : vector<8x256xf32>
    %74 = arith.addf %66, %73 : vector<8x256xf32>
    %75 = vector.extract_strided_slice %74 {offsets = [0, 0], sizes = [5, 256], strides = [1, 1]} : vector<8x256xf32> to vector<5x256xf32>
    %76 = arith.negf %75 : vector<5x256xf32>
    %77 = math.exp %76 : vector<5x256xf32>
    %cst_14 = arith.constant 1.000000e+00 : f32
    %78 = vector.broadcast %cst_14 : f32 to vector<5x256xf32>
    %79 = arith.addf %78, %77 : vector<5x256xf32>
    %80 = arith.divf %78, %79 : vector<5x256xf32>
    %c0_15 = arith.constant 0 : index
    %81 = arith.index_cast %3 : i32 to index
    %82 = vector.load %arg4[%c0_15, %81] : memref<5x512xf32, #tpu.memory_space<vmem>>, vector<5x256xf32>
    tpu.vector_store %arg4[%c0_15, %81], %80 {strides = array<i32>} : memref<5x512xf32, #tpu.memory_space<vmem>>, vector<5x256xf32>,
    %c1_i32 = arith.constant 1 : i32
    %c256_i32_16 = arith.constant 256 : i32
    %83 = arith.muli %c1_i32, %c256_i32_16 : i32
    %84 = tpu.assume_multiple %83, 256 : i32
    %c0_17 = arith.constant 0 : index
    %85 = arith.index_cast %84 : i32 to index
    %86 = vector.load %arg1[%c0_17, %85] : memref<4x512xf32, #tpu.memory_space<vmem>>, vector<4x256xf32>
    %87 = vector.extract_strided_slice %86 {offsets = [3, 0], sizes = [1, 256], strides = [1, 1]} : vector<4x256xf32> to vector<1x256xf32>
    %cst_18 = arith.constant dense<0.000000e+00> : vector<41x256xf32>
    %88 = tpu.matmul %0, %86, %cst_18 {dimension_numbers = #tpu.dot_dimension_numbers<[1], [0], [0], [1], [0, 0, 1, 1], [], []>} : vector<41x4xf32>, vector<4x256xf32>, vector<41x256xf32> -> vector<41x256xf32>
    %89 = math.sin %88 : vector<41x256xf32>
    %cst_19 = arith.constant dense<0.000000e+00> : vector<64x256xf32>
    %90 = tpu.matmul %1, %89, %cst_19 {dimension_numbers = #tpu.dot_dimension_numbers<[1], [0], [0], [1], [0, 0, 1, 1], [], []>} : vector<64x41xf32>, vector<41x256xf32>, vector<64x256xf32> -> vector<64x256xf32>
    %cst_20 = arith.constant 0.000000e+00 : f32
    %91 = vector.broadcast %cst_20 : f32 to vector<8x256xf32>
    %cst_21 = arith.constant 0.000000e+00 : f32
    %92 = vector.broadcast %cst_21 : f32 to vector<1x256xf32>
    %93 = arith.cmpf oeq, %87, %92 : vector<1x256xf32>
    %94 = arith.extui %93 : vector<1x256xi1> to vector<1x256xi32>
    %95 = arith.sitofp %94 : vector<1x256xi32> to vector<1x256xf32>
    %96 = vector.extract_strided_slice %90 {offsets = [0, 0], sizes = [8, 256], strides = [1, 1]} : vector<64x256xf32> to vector<8x256xf32>
    %97 = vector.broadcast %95 : vector<1x256xf32> to vector<8x256xf32>
    %98 = arith.mulf %96, %97 : vector<8x256xf32>
    %99 = arith.addf %91, %98 : vector<8x256xf32>
    %cst_22 = arith.constant 1.000000e+00 : f32
    %100 = vector.broadcast %cst_22 : f32 to vector<1x256xf32>
    %101 = arith.cmpf oeq, %87, %100 : vector<1x256xf32>
    %102 = arith.extui %101 : vector<1x256xi1> to vector<1x256xi32>
    %103 = arith.sitofp %102 : vector<1x256xi32> to vector<1x256xf32>
    %104 = vector.extract_strided_slice %90 {offsets = [8, 0], sizes = [8, 256], strides = [1, 1]} : vector<64x256xf32> to vector<8x256xf32>
    %105 = vector.broadcast %103 : vector<1x256xf32> to vector<8x256xf32>
    %106 = arith.mulf %104, %105 : vector<8x256xf32>
    %107 = arith.addf %99, %106 : vector<8x256xf32>
    %cst_23 = arith.constant 2.000000e+00 : f32
    %108 = vector.broadcast %cst_23 : f32 to vector<1x256xf32>
    %109 = arith.cmpf oeq, %87, %108 : vector<1x256xf32>
    %110 = arith.extui %109 : vector<1x256xi1> to vector<1x256xi32>
    %111 = arith.sitofp %110 : vector<1x256xi32> to vector<1x256xf32>
    %112 = vector.extract_strided_slice %90 {offsets = [16, 0], sizes = [8, 256], strides = [1, 1]} : vector<64x256xf32> to vector<8x256xf32>
    %113 = vector.broadcast %111 : vector<1x256xf32> to vector<8x256xf32>
    %114 = arith.mulf %112, %113 : vector<8x256xf32>
    %115 = arith.addf %107, %114 : vector<8x256xf32>
    %cst_24 = arith.constant 3.000000e+00 : f32
    %116 = vector.broadcast %cst_24 : f32 to vector<1x256xf32>
    %117 = arith.cmpf oeq, %87, %116 : vector<1x256xf32>
    %118 = arith.extui %117 : vector<1x256xi1> to vector<1x256xi32>
    %119 = arith.sitofp %118 : vector<1x256xi32> to vector<1x256xf32>
    %120 = vector.extract_strided_slice %90 {offsets = [24, 0], sizes = [8, 256], strides = [1, 1]} : vector<64x256xf32> to vector<8x256xf32>
    %121 = vector.broadcast %119 : vector<1x256xf32> to vector<8x256xf32>
    %122 = arith.mulf %120, %121 : vector<8x256xf32>
    %123 = arith.addf %115, %122 : vector<8x256xf32>
    %cst_25 = arith.constant 4.000000e+00 : f32
    %124 = vector.broadcast %cst_25 : f32 to vector<1x256xf32>
    %125 = arith.cmpf oeq, %87, %124 : vector<1x256xf32>
    %126 = arith.extui %125 : vector<1x256xi1> to vector<1x256xi32>
    %127 = arith.sitofp %126 : vector<1x256xi32> to vector<1x256xf32>
    %128 = vector.extract_strided_slice %90 {offsets = [32, 0], sizes = [8, 256], strides = [1, 1]} : vector<64x256xf32> to vector<8x256xf32>
    %129 = vector.broadcast %127 : vector<1x256xf32> to vector<8x256xf32>
    %130 = arith.mulf %128, %129 : vector<8x256xf32>
    %131 = arith.addf %123, %130 : vector<8x256xf32>
    %cst_26 = arith.constant 5.000000e+00 : f32
    %132 = vector.broadcast %cst_26 : f32 to vector<1x256xf32>
    %133 = arith.cmpf oeq, %87, %132 : vector<1x256xf32>
    %134 = arith.extui %133 : vector<1x256xi1> to vector<1x256xi32>
    %135 = arith.sitofp %134 : vector<1x256xi32> to vector<1x256xf32>
    %136 = vector.extract_strided_slice %90 {offsets = [40, 0], sizes = [8, 256], strides = [1, 1]} : vector<64x256xf32> to vector<8x256xf32>
    %137 = vector.broadcast %135 : vector<1x256xf32> to vector<8x256xf32>
    %138 = arith.mulf %136, %137 : vector<8x256xf32>
    %139 = arith.addf %131, %138 : vector<8x256xf32>
    %cst_27 = arith.constant 6.000000e+00 : f32
    %140 = vector.broadcast %cst_27 : f32 to vector<1x256xf32>
    %141 = arith.cmpf oeq, %87, %140 : vector<1x256xf32>
    %142 = arith.extui %141 : vector<1x256xi1> to vector<1x256xi32>
    %143 = arith.sitofp %142 : vector<1x256xi32> to vector<1x256xf32>
    %144 = vector.extract_strided_slice %90 {offsets = [48, 0], sizes = [8, 256], strides = [1, 1]} : vector<64x256xf32> to vector<8x256xf32>
    %145 = vector.broadcast %143 : vector<1x256xf32> to vector<8x256xf32>
    %146 = arith.mulf %144, %145 : vector<8x256xf32>
    %147 = arith.addf %139, %146 : vector<8x256xf32>
    %cst_28 = arith.constant 7.000000e+00 : f32
    %148 = vector.broadcast %cst_28 : f32 to vector<1x256xf32>
    %149 = arith.cmpf oeq, %87, %148 : vector<1x256xf32>
    %150 = arith.extui %149 : vector<1x256xi1> to vector<1x256xi32>
    %151 = arith.sitofp %150 : vector<1x256xi32> to vector<1x256xf32>
    %152 = vector.extract_strided_slice %90 {offsets = [56, 0], sizes = [8, 256], strides = [1, 1]} : vector<64x256xf32> to vector<8x256xf32>
    %153 = vector.broadcast %151 : vector<1x256xf32> to vector<8x256xf32>
    %154 = arith.mulf %152, %153 : vector<8x256xf32>
    %155 = arith.addf %147, %154 : vector<8x256xf32>
    %156 = vector.extract_strided_slice %155 {offsets = [0, 0], sizes = [5, 256], strides = [1, 1]} : vector<8x256xf32> to vector<5x256xf32>
    %157 = arith.negf %156 : vector<5x256xf32>
    %158 = math.exp %157 : vector<5x256xf32>
    %cst_29 = arith.constant 1.000000e+00 : f32
    %159 = vector.broadcast %cst_29 : f32 to vector<5x256xf32>
    %160 = arith.addf %159, %158 : vector<5x256xf32>
    %161 = arith.divf %159, %160 : vector<5x256xf32>
    %c0_30 = arith.constant 0 : index
    %162 = arith.index_cast %84 : i32 to index
    %163 = vector.load %arg4[%c0_30, %162] : memref<5x512xf32, #tpu.memory_space<vmem>>, vector<5x256xf32>
    tpu.vector_store %arg4[%c0_30, %162], %161 {strides = array<i32>} : memref<5x512xf32, #tpu.memory_space<vmem>>, vector<5x256xf32>,
    %c2_i32 = arith.constant 2 : i32
    return
  }
  func.func @transform_0(%arg0: i32) -> (i32, i32) {
    %c0_i32 = arith.constant 0 : i32
    %c0_i32_0 = arith.constant 0 : i32
    return %c0_i32, %arg0 : i32, i32
  }
  func.func @transform_1(%arg0: i32) -> (i32, i32) {
    %c0_i32 = arith.constant 0 : i32
    %c0_i32_0 = arith.constant 0 : i32
    %c0_i32_1 = arith.constant 0 : i32
    return %c0_i32, %c0_i32_0 : i32, i32
  }
  func.func @transform_2(%arg0: i32) -> (i32, i32) {
    %c0_i32 = arith.constant 0 : i32
    %c0_i32_0 = arith.constant 0 : i32
    %c0_i32_1 = arith.constant 0 : i32
    return %c0_i32, %c0_i32_0 : i32, i32
  }
  func.func @transform_3(%arg0: i32) -> (i32, i32) {
    %c0_i32 = arith.constant 0 : i32
    %c0_i32_0 = arith.constant 0 : i32
    return %c0_i32, %arg0 : i32, i32
  }
}

</mosaic_0001>

<bundles_post_ra>
// kernel: tpu_custom_call.1
= control target key start
LH: loop header
LB: loop body
LE: loop exit
PB: predicated region body
PF: predicated region fallthrough
CT: control target
= control target key end

     0   :  { %8 = vsyncpa [#allocation3], 0  ;;  %s6850_s0 = inlined_call_operand.vmem [shape: f32[4,1024], index: 0, kind: input, shape index: {}]   ;;  %s6851_s1 = inlined_call_operand.vmem [shape: f32[41,4], index: 1, kind: input, shape index: {}]   ;;  %s6852_s2 = inlined_call_operand.vmem [shape: f32[64,41], index: 2, kind: input, shape index: {}]   ;;  %s6853_s3 = inlined_call_operand.hbm [shape: f32[5,1024], index: 3, kind: output, shape index: {}]  }
   0x1   :  { %10 = vsyncpa [#allocation3 + $0x1], 0  ;;  %s4270_s12 = smov 0   ;;  %s4272_s13 = smov 0  }
   0x2   :  { %s4274_s14 = smov 0   ;;  %s4276_s15 = smov 0  }
   0x3 LB: > { %s4291_s16 = sadd.s32 4294967295, %s4239_s15   ;;  %s3702_s17 = sadd.s32 4294967294, %s4239_s15   ;;  %s4239_s15 = sphi %s4276_s15, %s7065_s15   ;;  %s4235_s14 = sphi %s4274_s14, %s7064_s14   ;;  %s4231_s13 = sphi %s4272_s13, %s7063_s13   ;;  %s4227_s12 = sphi %s4270_s12, %s7062_s12  }
   0x4   : > { %s4295_s18 = sadd.s32 1, %s4239_s15   ;;  %s91_s19 = sadd.s32 1, %s4235_s14 }
   0x5   : > { %s88_s20 = ssub.s32 %s4239_s15, %s4295_s18  ;;  %p101_p0 = scmp.ne.s32.totalorder %s4235_s14, %s4231_s13 }
   0x6   : > { %p89_p1 = scmp.eq.s32.totalorder %s88_s20, 0  ;;  %p102_p2 = scmp.eq.s32.totalorder %s4291_s16, 1 }
   0x7   : > { %p107_p3 = scmp.ne.s32.totalorder %s4231_s13, %s4227_s12  ;;  %p108_p4 = scmp.eq.s32.totalorder %s3702_s17, 1 }
   0x8   : > { %s4306_s21 = scalar_select %p89_p1, %s4235_s14, %s91_s19  }
   0x9   : > { %p4308_p5 = por %p102_p2, %p101_p0  ;;  %p4312_p6 = por %p108_p4, %p107_p3 }
   0xa   : > { %p3705_p7 = scmp.ge.s32.totalorder %s4239_s15, 1  ;;  %p141_p8 = scmp.lt.s32.totalorder %s4239_s15, 3 }
   0xc   : > { %p142_p9 = pnand %p3705_p7, %p141_p8 }
   0xe   : > { %145 = sbr.rel (%p142_p9) target bundleno = 1403 (0x57b), region = 32 }
  0x15   : > { %s3707_s24 = sshll.u32 %s4291_s16, 2  ;;  %v6854_v0 = vmov 0.0   ;;  %vm208_vm0 = vcmask 1043456   ;;  %v172_v3 = vld [vmem:[%s6851_s1] sm:$0xff]  ;;  %vm189_vm1 = vcmask 31744   ;;  %v173_v4 = vld [vmem:[%s6851_s1 + $0x8] sm:$0xff] }
  0x16   : > { %p166_p10 = scmp.lt.s32.totalorder %s3707_s24, 7  ;;  %277 = vmatprep.mubr.f32.mxu0 %v6854_v0  ;;  %1676 = vmatprep.mubr.f32.mxu1 %v6854_v0  ;;  %v174_v5 = vld [vmem:[%s6851_s1 + $0x10] sm:$0xff]  ;;  %v175_v6 = vld [vmem:[%s6851_s1 + $0x18] sm:$0xff]  ;;  %v176_v7 = vld [vmem:[%s6851_s1 + $0x20] sm:$0xff]  ;;  %v6864_v41 = vmov 683565275  }
  0x17   : > { %v177_v8 = vld [vmem:[%s6851_s1 + $0x28] sm:$0x1]  ;;  %v6862_v46 = vmov 2475754826   ;;  %v6859_v48 = vmov 2131351028  }
  0x18   : > { %s7067_s24 = smov (!%p166_p10, %s3707_s24), 7  ;;  %v6866_v50 = vmov 2102212464   ;;  %v6870_v52 = vmov 920167782   ;;  %s162_s8 = sand.u32 1, %s4231_s13  }
  0x19   : > { %s3708_s25 = sshll.u32 %s7067_s24, 2  ;;  %v6868_v59 = vmov 1326507024   ;;  %s3706_s9 = sshll.u32 %s162_s8, 5 }
  0x1a   : > { %s4324_s28 = scalar_lea.vmem %s6850_s0, %s3708_s25  ;;  %s6161_s10 = scalar_lea.vmem [#allocation2], %s3706_s9 }
  0x1b   : > { %v186_v1 = vld [vmem:[%s4324_s28] sm:$0xff]  ;;  %s3643_s17 = sshll.u32 %s6161_s10, 4  ;;  %s3629_s25 = scalar_lea.sflag [#allocation3], %s162_s8  ;;  %s6806_s17 = int_to_ptr.vmem [resolvable:$true] %s3643_s17 }
  0x1c   : > { %v188_v2 = vcombine.high %v186_v1, %v186_v1  ;;  %s4177_s26 = scalar_lea.vmem %s6806_s17, 512 }
  0x1d   : > { %p4178_p11 = scmp.ne.s32.totalorder %s6806_s17, %s4177_s26 }
  0x1e   : > { %3709 = vmatprep.subr.msk.mxu0 %vm208_vm0, %v188_v2 }
  0x1f   : > { %3710 = vmatpush1.msk.msra.mxu0 %vm208_vm0, %v186_v1  ;;  %p4179_p12 = pnand %p4178_p11, %p4308_p5 }
  0x20   : > { %3711 = vmatmul.mubr.msk.f32.vlgmr.msra.gmra.mrb[0].mxu0 %vm189_vm1, %v172_v3 }
  0x21   : > { %283 = vmatprep.mubr.f32.mxu0 %v6854_v0  ;;  %p4180_p13 = pneg %p4179_p12 }
  0x24   : > { %3712 = vmatmul.mubr.msk.f32.gmra.mrb[2].mxu0 %vm189_vm1, %v173_v4 }
  0x25   : > { %289 = vmatprep.mubr.f32.mxu0 %v6854_v0 }
  0x28   : > { %3713 = vmatmul.mubr.msk.f32.gmra.mrb[4].mxu0 %vm189_vm1, %v174_v5 }
  0x29   : > { %295 = vmatprep.mubr.f32.mxu0 %v6854_v0 }
  0x2c   : > { %3714 = vmatmul.mubr.msk.f32.gmra.mrb[6].mxu0 %vm189_vm1, %v175_v6 }
  0x2d   : > { %301 = vmatprep.mubr.f32.mxu0 %v6854_v0 }
  0x30   : > { %3715 = vmatmul.mubr.msk.f32.gmra.mrb[8].mxu0 %vm189_vm1, %v176_v7 }
  0x31   : > { %307 = vmatprep.mubr.f32.mxu0 %v6854_v0 }
  0x34   : > { %3716 = vmatmul.mubr.msk.f32.gmra.mrb[10].mxu0 %vm189_vm1, %v177_v8 }
  0x35   : > { %1658 = vmatprep.mubr.f32.mxu0 %v6854_v0 }
  0xf3   : > { %v4359_v9 = vpop.f32.mrb[0].mxu0 }
  0xf4   : > { %6923 = vst [vmem:[#allocation5_spill] sm:$0xff] %v4359_v9  ;;  %v314_v10 = vand.u32 2147483647, %v4359_v9  ;;  %v317_v11 = vand.u32 2139095040, %v4359_v9  ;;  %v4363_v12 = vpop.f32.mrb[1].mxu0 }
  0xf5   : > { %v418_v13 = vand.u32 2147483647, %v4363_v12  ;;  %v421_v14 = vand.u32 2139095040, %v4363_v12 }
  0xf6   : > { %v318_v15 = vshrl.u32 %v317_v11, 23  ;;  %v321_v16 = vand.u32 8388607, %v314_v10 }
  0xf7   : > { %v422_v17 = vshrl.u32 %v421_v14, 23  ;;  %v425_v18 = vand.u32 8388607, %v418_v13  ;;  %v4371_v19 = vpop.f32.mrb[2].mxu0 }
  0xf8   : > { %6924 = vst [vmem:[#allocation6_spill] sm:$0xff] %v4371_v19  ;;  %v3717_v20 = vadd.s32 4294967169, %v318_v15  ;;  %v4373_v21 = vpop.f32.mrb[3].mxu0  ;;  %v525_v23 = vand.u32 2139095040, %v4371_v19  ;;  %v322_v25 = vor.u32 8388608, %v321_v16 }
  0xf9   : > { %v3721_v22 = vadd.s32 4294967169, %v422_v17  ;;  %v426_v26 = vor.u32 8388608, %v425_v18 }
  0xfa   : > { %v324_v24 = vadd.s32 1, %v3717_v20  ;;  %v526_v28 = vshrl.u32 %v525_v23, 23  ;;  %v4380_v36 = vshll.u32 %v322_v25, 8 }
  0xfb   : > { %v428_v27 = vadd.s32 1, %v3721_v22  ;;  %v4376_v29 = vpop.f32.mrb[4].mxu0  ;;  %v4384_v38 = vshll.u32 %v426_v26, 8 }
  0xfc   : > { %6925 = vst [vmem:[#allocation7_spill] sm:$0xff] %v4376_v29  ;;  %vm325_vm2 = vcmp.gt.s32.totalorder %v324_v24, 0  ;;  %v4378_v30 = vpop.f32.mrb[5].mxu0  ;;  %v3725_v32 = vadd.s32 4294967169, %v526_v28 }
  0xfd   : > { %v326_v31 = vsel %vm325_vm2, %v324_v24, 0  ;;  %vm429_vm3 = vcmp.gt.s32.totalorder %v428_v27, 0 }
  0xfe   : > { %v327_v33 = vshrl.u32 %v326_v31, 5  ;;  %v328_v34 = vand.u32 31, %v326_v31  ;;  %v430_v35 = vsel %vm429_vm3, %v428_v27, 0  ;;  %v4389_v44 = vadd.s32 1, %v3725_v32 }
  0xff   : > { %v4382_v37 = vshrl.u32 %v430_v35, 5  ;;  %v4386_v39 = vpop.f32.mrb[6].mxu0  ;;  %v432_v43 = vand.u32 31, %v430_v35 }
 0x100   : > { %v329_v40 = vsub.s32 32, %v328_v34  ;;  %v331_v42 = vshll.u32 %v6864_v41, %v328_v34  ;;  %v4391_v45 = vpop.f32.mrb[7].mxu0  ;;  %v334_v47 = vshll.u32 %v6862_v46, %v328_v34  ;;  %v337_v49 = vshll.u32 %v6859_v48, %v328_v34 }
 0x101   : > { %v340_v51 = vshll.u32 %v6866_v50, %v328_v34  ;;  %v343_v53 = vshll.u32 %v6870_v52, %v328_v34  ;;  %vm346_vm4 = vcmp.lt.s32.totalorder %v327_v33, 1  ;;  %vm347_vm5 = vcmp.lt.s32.totalorder %v327_v33, 2 }
 0x102   : > { %v332_v54 = vshrl.u32 %v6862_v46, %v329_v40  ;;  %v335_v55 = vshrl.u32 %v6859_v48, %v329_v40  ;;  %v338_v56 = vshrl.u32 %v6866_v50, %v329_v40  ;;  %v330_v57 = vshrl.u32 %v6864_v41, %v329_v40 }
 0x103   : > { %v341_v58 = vshrl.u32 %v6870_v52, %v329_v40  ;;  %v344_v60 = vshrl.u32 %v6868_v59, %v329_v40  ;;  %v433_v1 = vsub.s32 32, %v432_v43  ;;  %vm348_vm6 = vcmp.lt.s32.totalorder %v327_v33, 3  ;;  %v4413_v26 = vpop.f32.mrb[8].mxu0 }
 0x104   : > { %v333_v61 = vor.u32 %v332_v54, %v331_v42  ;;  %v336_v62 = vor.u32 %v335_v55, %v334_v47  ;;  %v339_v63 = vor.u32 %v338_v56, %v337_v49  ;;  %vm349_vm7 = vcmp.lt.s32.totalorder %v327_v33, 4 }
 0x105   : > { %v342_v2 = vor.u32 %v341_v58, %v340_v51  ;;  %v345_v3 = vor.u32 %v344_v60, %v343_v53  ;;  %v435_v15 = vshll.u32 %v6864_v41, %v432_v43  ;;  %v436_v18 = vshrl.u32 %v6862_v46, %v433_v1 }
 0x106   : > { %v350_v4 = vsel %vm346_vm4, %v330_v57, %v333_v61  ;;  %v351_v5 = vsel %vm349_vm7, %v339_v63, 2102212464  ;;  %v354_v6 = vsel %vm346_vm4, %v333_v61, %v336_v62  ;;  %v358_v7 = vsel %vm346_vm4, %v336_v62, %v339_v63 }
 0x107   : > { %v352_v8 = vsel %vm348_vm6, %v336_v62, %v351_v5  ;;  %v355_v11 = vsel %vm349_vm7, %v342_v2, 920167782  ;;  %v359_v14 = vsel %vm349_vm7, %v345_v3, 1326507024  ;;  %v438_v20 = vshll.u32 %v6862_v46, %v432_v43 }
 0x108   : > { %v356_v16 = vsel %vm348_vm6, %v339_v63, %v355_v11  ;;  %v360_v17 = vsel %vm348_vm6, %v342_v2, %v359_v14  ;;  %v353_v22 = vsel %vm347_vm5, %v350_v4, %v352_v8  ;;  %v439_v25 = vshrl.u32 %v6859_v48, %v433_v1 }
 0x109   : > { %v357_v23 = vsel %vm347_vm5, %v354_v6, %v356_v16  ;;  %v361_v24 = vsel %vm347_vm5, %v358_v7, %v360_v17  ;;  %v437_v34 = vor.u32 %v436_v18, %v435_v15  ;;  %v441_v40 = vshll.u32 %v6859_v48, %v432_v43 }
 0x10a   : > { %v4416_v27 = vmul.u32.u64.low %v4380_v36, %v361_v24  ;;  %v4417_v28 = vmul.u32.u64.high %v4380_v36, %v361_v24, %v4416_v27  ;;  %v4420_v31 = vmul.u32.u64.low %v4380_v36, %v357_v23  ;;  %v4421_v32 = vmul.u32.u64.high %v4380_v36, %v357_v23, %v4420_v31 }
 0x10b   : > { %v440_v35 = vor.u32 %v439_v25, %v438_v20  ;;  %v442_v33 = vshrl.u32 %v6866_v50, %v433_v1  ;;  %v434_v42 = vshrl.u32 %v6864_v41, %v433_v1  ;;  %v444_v47 = vshll.u32 %v6866_v50, %v432_v43 }
 0x10c   : > { %v445_v49 = vshrl.u32 %v6870_v52, %v433_v1  ;;  %v448_v51 = vshrl.u32 %v6868_v59, %v433_v1  ;;  %v369_v53 = vmul.u32 %v4380_v36, %v353_v22  ;;  %v447_v55 = vshll.u32 %v6870_v52, %v432_v43 }
 0x10d   : > { %v443_v54 = vor.u32 %v442_v33, %v441_v40  ;;  %vm450_vm8 = vcmp.lt.s32.totalorder %v4382_v37, 1  ;;  %vm371_vm9 = vc.u32 %v4417_v28, %v4420_v31  ;;  %v372_v56 = vadd.s32 1, %v4421_v32 }
 0x10e   : > { %v446_v57 = vor.u32 %v445_v49, %v444_v47  ;;  %vm451_vm10 = vcmp.lt.s32.totalorder %v4382_v37, 2  ;;  %v449_v58 = vor.u32 %v448_v51, %v447_v55  ;;  %vm452_vm11 = vcmp.lt.s32.totalorder %v4382_v37, 3  ;;  %v4477_v55 = vpop.f32.mrb[9].mxu0 }
 0x10f   : > { %vm453_vm12 = vcmp.lt.s32.totalorder %v4382_v37, 4  ;;  %v458_v60 = vsel %vm450_vm8, %v437_v34, %v440_v35  ;;  %v373_v36 = vsel %vm371_vm9, %v372_v56, %v4421_v32  ;;  %v462_v62 = vsel %vm450_vm8, %v440_v35, %v443_v54 }
 0x110   : > { %v455_v61 = vsel %vm453_vm12, %v443_v54, 2102212464  ;;  %v459_v43 = vsel %vm453_vm12, %v446_v57, 920167782  ;;  %v374_v63 = vadd.s32 %v373_v36, %v369_v53  ;;  %v454_v1 = vsel %vm450_vm8, %v434_v42, %v437_v34 }
 0x111   : > { %v460_v2 = vsel %vm452_vm11, %v443_v54, %v459_v43  ;;  %v463_v3 = vsel %vm453_vm12, %v449_v58, 1326507024  ;;  %v456_v4 = vsel %vm452_vm11, %v440_v35, %v455_v61  ;;  %vm533_vm13 = vcmp.gt.s32.totalorder %v4389_v44, 0 }
 0x112   : > { %v461_v5 = vsel %vm451_vm10, %v458_v60, %v460_v2  ;;  %v464_v6 = vsel %vm452_vm11, %v446_v57, %v463_v3  ;;  %v375_v7 = vadd.s32 536870912, %v374_v63  ;;  %v534_v17 = vsel %vm533_vm13, %v4389_v44, 0 }
 0x113   : > { %v465_v8 = vsel %vm451_vm10, %v462_v62, %v464_v6  ;;  %v4446_v11 = vmul.u32.u64.low %v4384_v38, %v461_v5  ;;  %v4447_v14 = vmul.u32.u64.high %v4384_v38, %v461_v5, %v4446_v11  ;;  %v457_v20 = vsel %vm451_vm10, %v454_v1, %v456_v4 }
 0x114   : > { %v4451_v15 = vmul.u32.u64.low %v4384_v38, %v465_v8  ;;  %v4452_v16 = vmul.u32.u64.high %v4384_v38, %v465_v8, %v4451_v15  ;;  %v4455_v18 = vshrl.u32 %v375_v7, 30  ;;  %v536_v22 = vand.u32 31, %v534_v17 }
 0x115   : > { %v476_v24 = vadd.s32 1, %v4447_v14  ;;  %v522_v25 = vand.u32 2147483647, %v4371_v19  ;;  %v473_v32 = vmul.u32 %v4384_v38, %v457_v20  ;;  %v629_v38 = vand.u32 2139095040, %v4373_v21 }
 0x116   : > { %v377_v23 = vshll.u32 %v4455_v18, 30  ;;  %v537_v27 = vsub.s32 32, %v536_v22  ;;  %vm475_vm14 = vc.u32 %v4452_v16, %v4446_v11  ;;  %v535_v51 = vshrl.u32 %v534_v17, 5 }
 0x117   : > { %v477_v44 = vsel %vm475_vm14, %v476_v24, %v4447_v14  ;;  %v529_v42 = vand.u32 8388607, %v522_v25  ;;  %v539_v53 = vshll.u32 %v6864_v41, %v536_v22  ;;  %v542_v54 = vshll.u32 %v6862_v46, %v536_v22 }
 0x118   : > { %v4465_v34 = vsub.s32 %v374_v63, %v377_v23  ;;  %v478_v35 = vadd.s32 %v477_v44, %v473_v32  ;;  %v540_v37 = vshrl.u32 %v6862_v46, %v537_v27  ;;  %v543_v40 = vshrl.u32 %v6859_v48, %v537_v27 }
 0x119   : > { %v546_v47 = vshrl.u32 %v6866_v50, %v537_v27  ;;  %v545_v57 = vshll.u32 %v6859_v48, %v536_v22  ;;  %v548_v58 = vshll.u32 %v6866_v50, %v536_v22  ;;  %v549_v60 = vshrl.u32 %v6870_v52, %v537_v27 }
 0x11a   : > { %v380_v33 = vsub.s32 0, %v4465_v34  ;;  %v479_v49 = vadd.s32 536870912, %v478_v35  ;;  %v541_v61 = vor.u32 %v540_v37, %v539_v53  ;;  %v544_v43 = vor.u32 %v543_v40, %v542_v54 }
 0x11b   : > { %v552_v62 = vshrl.u32 %v6868_v59, %v537_v27  ;;  %v547_v1 = vor.u32 %v546_v47, %v545_v57  ;;  %v550_v2 = vor.u32 %v549_v60, %v548_v58  ;;  %v530_v4 = vor.u32 8388608, %v529_v42 }
 0x11c   : > { %v3718_v56 = vmin.u32 %v380_v33, %v4465_v34  ;;  %v4483_v36 = vshrl.u32 %v479_v49, 30  ;;  %v551_v5 = vshll.u32 %v6870_v52, %v536_v22  ;;  %vm554_vm15 = vcmp.lt.s32.totalorder %v535_v51, 1 }
 0x11d   : > { %vm556_vm2 = vcmp.lt.s32.totalorder %v535_v51, 3  ;;  %vm557_vm3 = vcmp.lt.s32.totalorder %v535_v51, 4  ;;  %v630_v6 = vshrl.u32 %v629_v38, 23  ;;  %v562_v14 = vsel %vm554_vm15, %v541_v61, %v544_v43 }
 0x11e   : > { %v382_v63 = vclz %v3718_v56  ;;  %v481_v3 = vshll.u32 %v4483_v36, 30  ;;  %v553_v8 = vor.u32 %v552_v62, %v551_v5  ;;  %v563_v15 = vsel %vm557_vm3, %v550_v2, 920167782 }
 0x11f   : > { %v564_v20 = vsel %vm556_vm2, %v547_v1, %v563_v15  ;;  %vm555_vm4 = vcmp.lt.s32.totalorder %v535_v51, 2  ;;  %v559_v24 = vsel %vm557_vm3, %v547_v1, 2102212464  ;;  %v538_v32 = vshrl.u32 %v6864_v41, %v537_v27 }
 0x120   : > { %v4488_v7 = vsub.s32 %v478_v35, %v481_v3  ;;  %v3719_v17 = vadd.s32 4294967294, %v382_v63  ;;  %v565_v22 = vsel %vm555_vm4, %v562_v14, %v564_v20  ;;  %v566_v44 = vsel %vm554_vm15, %v544_v43, %v547_v1 }
 0x121   : > { %v567_v37 = vsel %vm557_vm3, %v553_v8, 1326507024  ;;  %v570_v35 = vshll.u32 %v530_v4, 8  ;;  %v3729_v40 = vadd.s32 4294967169, %v630_v6  ;;  %v558_v33 = vsel %vm554_vm15, %v538_v32, %v541_v61 }
 0x122   : > { %v484_v23 = vsub.s32 0, %v4488_v7  ;;  %vm3720_vm5 = vcmp.lt.s32.totalorder %v3719_v17, 0  ;;  %v560_v42 = vsel %vm556_vm2, %v544_v43, %v559_v24  ;;  %v568_v47 = vsel %vm556_vm2, %v550_v2, %v567_v37 }
 0x123   : > { %v569_v49 = vsel %vm555_vm4, %v566_v44, %v568_v47  ;;  %v4501_v53 = vmul.u32.u64.low %v570_v35, %v565_v22  ;;  %v4502_v27 = vmul.u32.u64.high %v570_v35, %v565_v22, %v4501_v53  ;;  %v385_v57 = vsel %vm3720_vm5, 0, %v3719_v17 }
 0x124   : > { %v3722_v38 = vmin.u32 %v484_v23, %v4488_v7  ;;  %v4505_v54 = vmul.u32.u64.low %v570_v35, %v569_v49  ;;  %v4506_v56 = vmul.u32.u64.high %v570_v35, %v569_v49, %v4505_v54  ;;  %v561_v58 = vsel %vm555_vm4, %v558_v33, %v560_v42 }
 0x125   : > { %v626_v60 = vand.u32 2147483647, %v4373_v21  ;;  %v636_v61 = vadd.s32 1, %v3729_v40  ;;  %v580_v62 = vadd.s32 1, %v4502_v27  ;;  %v386_v63 = vsub.s32 32, %v385_v57 }
 0x126   : > { %v486_v43 = vclz %v3722_v38  ;;  %v390_v1 = vsub.s32 4294967266, %v385_v57  ;;  %v577_v2 = vmul.u32 %v570_v35, %v561_v58  ;;  %vm579_vm7 = vc.u32 %v4506_v56, %v4501_v53 }
 0x127   : > { %vm637_vm6 = vcmp.gt.s32.totalorder %v636_v61, 0  ;;  %v581_v3 = vsel %vm579_vm7, %v580_v62, %v4502_v27  ;;  %v633_v4 = vand.u32 8388607, %v626_v60  ;;  %v370_v51 = vadd.s32 %v4420_v31, %v4417_v28 }
 0x128   : > { %v582_v5 = vadd.s32 %v581_v3, %v577_v2  ;;  %v638_v6 = vsel %vm637_vm6, %v636_v61, 0  ;;  %v3723_v8 = vadd.s32 4294967294, %v486_v43  ;;  %v733_v15 = vand.u32 2139095040, %v4376_v29 }
 0x129   : > { %v640_v14 = vand.u32 31, %v638_v6  ;;  %v388_v17 = vshrl.u32 %v370_v51, %v386_v63  ;;  %v391_v20 = vadd.s32 127, %v390_v1  ;;  %v634_v24 = vor.u32 8388608, %v633_v4 }
 0x12a   : > { %v583_v23 = vadd.s32 536870912, %v582_v5  ;;  %v387_v22 = vshll.u32 %v4465_v34, %v385_v57  ;;  %v474_v37 = vadd.s32 %v4446_v11, %v4452_v16  ;;  %vm3724_vm8 = vcmp.lt.s32.totalorder %v3723_v8, 0  ;;  %v4538_v57 = vpop.f32.mrb[10].mxu0 }
 0x12b   : > { %v641_v32 = vsub.s32 32, %v640_v14  ;;  %v6858_v28 = vand.u32 2147483647, %v4376_v29  ;;  %v734_v31 = vshrl.u32 %v733_v15, 23  ;;  %v392_v40 = vshll.u32 %v391_v20, 23 }
 0x12c   : > { %v4520_v44 = vshrl.u32 %v583_v23, 30  ;;  %v4525_v35 = vor.u32 %v388_v17, %v387_v22  ;;  %v643_v47 = vshll.u32 %v6864_v41, %v640_v14  ;;  %v4532_v49 = vshll.u32 %v634_v24, 8 }
 0x12d   : > { %v644_v42 = vshrl.u32 %v6862_v46, %v641_v32  ;;  %v647_v34 = vshrl.u32 %v6859_v48, %v641_v32  ;;  %v650_v38 = vshrl.u32 %v6866_v50, %v641_v32  ;;  %v489_v11 = vsel %vm3724_vm8, 0, %v3723_v8 }
 0x12e   : > { %v585_v33 = vshll.u32 %v4520_v44, 30  ;;  %v646_v27 = vshll.u32 %v6862_v46, %v640_v14  ;;  %v649_v54 = vshll.u32 %v6859_v48, %v640_v14  ;;  %v639_v58 = vshrl.u32 %v638_v6, 5 }
 0x12f   : > { %v645_v61 = vor.u32 %v644_v42, %v643_v47  ;;  %v652_v43 = vshll.u32 %v6866_v50, %v640_v14  ;;  %v3733_v62 = vadd.s32 4294967169, %v734_v31  ;;  %v653_v3 = vshrl.u32 %v6870_v52, %v641_v32 }
 0x130   : > { %v4534_v16 = vsub.s32 %v582_v5, %v585_v33  ;;  %v648_v1 = vor.u32 %v647_v34, %v646_v27  ;;  %v651_v2 = vor.u32 %v650_v38, %v649_v54  ;;  %v393_v4 = vor.u32 4788187, %v392_v40 }
 0x131   : > { %v494_v51 = vsub.s32 4294967266, %v489_v11  ;;  %v655_v5 = vshll.u32 %v6870_v52, %v640_v14  ;;  %v656_v8 = vshrl.u32 %v6868_v59, %v641_v32  ;;  %v490_v15 = vsub.s32 32, %v489_v11 }
 0x132   : > { %v588_v63 = vsub.s32 0, %v4534_v16  ;;  %v654_v6 = vor.u32 %v653_v3, %v652_v43  ;;  %v4548_v20 = vand.u32 8388607, %v6858_v28  ;;  %vm658_vm9 = vcmp.lt.s32.totalorder %v639_v58, 1 }
 0x133   : > { %v657_v23 = vor.u32 %v656_v8, %v655_v5  ;;  %vm661_vm10 = vcmp.lt.s32.totalorder %v639_v58, 4  ;;  %v740_v24 = vadd.s32 1, %v3733_v62  ;;  %v642_v31 = vshrl.u32 %v6864_v41, %v641_v32 }
 0x134   : > { %v3726_v17 = vmin.u32 %v588_v63, %v4534_v16  ;;  %v663_v40 = vsel %vm661_vm10, %v651_v2, 2102212464  ;;  %v666_v14 = vsel %vm658_vm9, %v645_v61, %v648_v1  ;;  %v495_v33 = vadd.s32 127, %v494_v51 }
 0x135   : > { %vm659_vm11 = vcmp.lt.s32.totalorder %v639_v58, 2  ;;  %vm660_vm12 = vcmp.lt.s32.totalorder %v639_v58, 3  ;;  %v667_v42 = vsel %vm661_vm10, %v654_v6, 920167782  ;;  %v662_v34 = vsel %vm658_vm9, %v642_v31, %v645_v61 }
 0x136   : > { %v590_v22 = vclz %v3726_v17  ;;  %v668_v38 = vsel %vm660_vm12, %v651_v2, %v667_v42  ;;  %v670_v27 = vsel %vm658_vm9, %v648_v1, %v651_v2  ;;  %v664_v54 = vsel %vm660_vm12, %v648_v1, %v663_v40 }
 0x137   : > { %v669_v43 = vsel %vm659_vm11, %v666_v14, %v668_v38  ;;  %v671_v62 = vsel %vm661_vm10, %v657_v23, 1326507024  ;;  %vm741_vm13 = vcmp.gt.s32.totalorder %v740_v24, 0  ;;  %v394_v51 = vand.u32 2147483647, %v393_v4 }
 0x138   : > { %v3727_v47 = vadd.s32 4294967294, %v590_v22  ;;  %v672_v32 = vsel %vm660_vm12, %v654_v6, %v671_v62  ;;  %v4556_v63 = vmul.u32.u64.low %v4532_v49, %v669_v43  ;;  %v4557_v3 = vmul.u32.u64.high %v4532_v49, %v669_v43, %v4556_v63 }
 0x139   : > { %v492_v5 = vshrl.u32 %v474_v37, %v490_v15  ;;  %v673_v8 = vsel %vm659_vm11, %v670_v27, %v672_v32  ;;  %v742_v61 = vsel %vm741_vm13, %v740_v24, 0  ;;  %v396_v2 = vcvt.s32.f32 %v4525_v35 }
 0x13a   : > { %vm3728_vm14 = vcmp.lt.s32.totalorder %v3727_v47, 0  ;;  %v491_v1 = vshll.u32 %v4488_v7, %v489_v11  ;;  %v496_v17 = vshll.u32 %v495_v33, 23  ;;  %v665_v23 = vsel %vm659_vm11, %v662_v34, %v664_v54 }
 0x13b   : > { %v4564_v22 = vsel %vm3728_vm14, 0, %v3727_v47  ;;  %v4567_v6 = vmul.u32.u64.low %v4532_v49, %v673_v8  ;;  %v4568_v31 = vmul.u32.u64.high %v4532_v49, %v673_v8, %v4567_v6  ;;  %v744_v40 = vand.u32 31, %v742_v61 }
 0x13c   : > { %v400_v4 = vsub.s32 4, %v4455_v18  ;;  %v504_v37 = vsub.s32 4, %v4483_v36  ;;  %v684_v15 = vadd.s32 1, %v4557_v3  ;;  %v4573_v24 = vmul.f32 %v396_v2, %v394_v51 }
 0x13d   : > { %v493_v35 = vor.u32 %v492_v5, %v491_v1  ;;  %v738_v7 = vor.u32 8388608, %v4548_v20  ;;  %v745_v11 = vsub.s32 32, %v744_v40  ;;  %v497_v58 = vor.u32 4788187, %v496_v17  ;;  %v4593_v1 = vpop.f32.mrb[11].mxu0 }
 0x13e   : > { %v598_v14 = vsub.s32 4294967266, %v4564_v22  ;;  %v681_v33 = vmul.u32 %v4532_v49, %v665_v23  ;;  %v4578_v42 = vshrl.u32 %v742_v61, 5  ;;  %vm683_vm15 = vc.u32 %v4568_v31, %v4556_v63 }
 0x13f   : > { %v747_v47 = vshll.u32 %v6864_v41, %v744_v40  ;;  %v748_v34 = vshrl.u32 %v6862_v46, %v745_v11  ;;  %v750_v38 = vshll.u32 %v6862_v46, %v744_v40  ;;  %v685_v27 = vsel %vm683_vm15, %v684_v15, %v4557_v3 }
 0x140   : > { %v751_v20 = vshrl.u32 %v6859_v48, %v745_v11  ;;  %v753_v54 = vshll.u32 %v6859_v48, %v744_v40  ;;  %v756_v43 = vshll.u32 %v6866_v50, %v744_v40  ;;  %v686_v49 = vadd.s32 %v685_v27, %v681_v33 }
 0x141   : > { %v749_v62 = vor.u32 %v748_v34, %v747_v47  ;;  %v754_v32 = vshrl.u32 %v6866_v50, %v745_v11  ;;  %v757_v51 = vshrl.u32 %v6870_v52, %v745_v11  ;;  %v599_v5 = vadd.s32 127, %v598_v14 }
 0x142   : > { %v752_v8 = vor.u32 %v751_v20, %v750_v38  ;;  %v759_v61 = vshll.u32 %v6870_v52, %v744_v40  ;;  %v760_v2 = vshrl.u32 %v6868_v59, %v745_v11  ;;  %v498_v3 = vand.u32 2147483647, %v497_v58 }
 0x143   : > { %v687_v17 = vadd.s32 536870912, %v686_v49  ;;  %v755_v23 = vor.u32 %v754_v32, %v753_v54  ;;  %v758_v6 = vor.u32 %v757_v51, %v756_v43  ;;  %vm762_vm2 = vcmp.lt.s32.totalorder %v4578_v42, 1 }
 0x144   : > { %v761_v15 = vor.u32 %v760_v2, %v759_v61  ;;  %vm765_vm3 = vcmp.lt.s32.totalorder %v4578_v42, 4  ;;  %v778_v33 = vshll.u32 %v738_v7, 8  ;;  %vm316_vm4 = vcmp.lt.s32.totalorder %v4359_v9, 0 }
 0x145   : > { %vm420_vm5 = vcmp.lt.s32.totalorder %v4363_v12, 0  ;;  %v4599_v14 = vshrl.u32 %v687_v17, 30  ;;  %vm764_vm6 = vcmp.lt.s32.totalorder %v4578_v42, 3  ;;  %v770_v40 = vsel %vm762_vm2, %v749_v62, %v752_v8 }
 0x146   : > { %v771_v58 = vsel %vm765_vm3, %v758_v6, 920167782  ;;  %v594_v47 = vsub.s32 32, %v4564_v22  ;;  %v600_v34 = vshll.u32 %v599_v5, 23  ;;  %vm763_vm7 = vcmp.lt.s32.totalorder %v4578_v42, 2 }
 0x147   : > { %v772_v7 = vsel %vm764_vm6, %v755_v23, %v771_v58  ;;  %v689_v38 = vshll.u32 %v4599_v14, 30  ;;  %v767_v27 = vsel %vm765_vm3, %v755_v23, 2102212464  ;;  %v774_v54 = vsel %vm762_vm2, %v752_v8, %v755_v23 }
 0x148   : > { %v773_v20 = vsel %vm763_vm7, %v770_v40, %v772_v7  ;;  %v746_v43 = vshrl.u32 %v6864_v41, %v745_v11  ;;  %v775_v32 = vsel %vm765_vm3, %v761_v15, 1326507024  ;;  %v500_v61 = vcvt.s32.f32 %v493_v35 }
 0x149   : > { %v4620_v51 = vmul.u32.u64.low %v778_v33, %v773_v20  ;;  %v4621_v5 = vmul.u32.u64.high %v778_v33, %v773_v20, %v4620_v51  ;;  %v578_v2 = vadd.s32 %v4501_v53, %v4506_v56  ;;  %v4626_v17 = vsub.s32 %v686_v49, %v689_v38 }
 0x14a   : > { %v776_v40 = vsel %vm764_vm6, %v758_v6, %v775_v32  ;;  %vm4632_vm8 = vcmp.le.f32.partialorder %v314_v10, 0.7853982  ;;  %v398_v23 = vxor.u32 2147483648, %v4573_v24  ;;  %v766_v15 = vsel %vm762_vm2, %v746_v43, %v749_v62 }
 0x14b   : > { %v768_v35 = vsel %vm764_vm6, %v752_v8, %v767_v27  ;;  %v777_v53 = vsel %vm763_vm7, %v774_v54, %v776_v40  ;;  %vm4645_vm9 = vcmp.le.f32.partialorder %v418_v13, 0.7853982  ;;  %v501_v10 = vmul.f32 %v500_v61, %v498_v3 }
 0x14c   : > { %v596_v49 = vshrl.u32 %v578_v2, %v594_v47  ;;  %v692_v6 = vsub.s32 0, %v4626_v17  ;;  %v595_v58 = vshll.u32 %v4534_v16, %v4564_v22  ;;  %v601_v62 = vor.u32 4788187, %v600_v34 }
 0x14d   : > { %v4652_v7 = vmul.u32.u64.low %v778_v33, %v777_v53  ;;  %v4653_v38 = vmul.u32.u64.high %v778_v33, %v777_v53, %v4652_v7  ;;  %v769_v27 = vsel %vm763_vm7, %v766_v15, %v768_v35  ;;  %v788_v13 = vadd.s32 1, %v4621_v5 }
 0x14e   : > { %v3730_v8 = vmin.u32 %v692_v6, %v4626_v17  ;;  %v837_v20 = vand.u32 2139095040, %v4378_v30  ;;  %v399_v3 = vsel %vm316_vm4, %v398_v23, %v4573_v24  ;;  %v401_v16 = vsel %vm316_vm4, %v400_v4, %v4455_v18 }
 0x14f   : > { %v505_v22 = vsel %vm420_vm5, %v504_v37, %v4483_v36  ;;  %v941_v42 = vand.u32 2139095040, %v4386_v39  ;;  %v597_v47 = vor.u32 %v596_v49, %v595_v58  ;;  %v608_v34 = vsub.s32 4, %v4520_v44 }
 0x150   : > { %v694_v54 = vclz %v3730_v8  ;;  %v838_v43 = vshrl.u32 %v837_v20, 23  ;;  %v502_v24 = vxor.u32 2147483648, %v501_v10  ;;  %v785_v32 = vmul.u32 %v778_v33, %v769_v27 }
 0x151   : > { %vm787_vm10 = vc.u32 %v4653_v38, %v4620_v51  ;;  %v6857_v18 = vand.u32 2147483647, %v4378_v30  ;;  %v602_v4 = vand.u32 2147483647, %v601_v62  ;;  %vm4681_vm11 = vcmp.le.f32.partialorder %v522_v25, 0.7853982 }
 0x152   : > { %v3731_v61 = vadd.s32 4294967294, %v694_v54  ;;  %v789_v2 = vsel %vm787_vm10, %v788_v13, %v4621_v5  ;;  %v3737_v40 = vadd.s32 4294967169, %v838_v43  ;;  %vm524_vm12 = vcmp.lt.s32.totalorder %v4371_v19, 0 }
 0x153   : > { %v790_v37 = vadd.s32 %v789_v2, %v785_v32  ;;  %v942_v33 = vshrl.u32 %v941_v42, 23  ;;  %v403_v23 = vsel %vm4632_vm8, 0, %v401_v16  ;;  %v507_v15 = vsel %vm4645_vm9, 0, %v505_v22 }
 0x154   : > { %v604_v35 = vcvt.s32.f32 %v597_v47  ;;  %v844_v53 = vadd.s32 1, %v3737_v40  ;;  %v402_v5 = vsel %vm4632_vm8, %v4359_v9, %v399_v3  ;;  %v503_v25 = vsel %vm420_vm5, %v502_v24, %v501_v10 }
 0x155   : > { %v4698_v49 = vsel %vm524_vm12, %v608_v34, %v4520_v44  ;;  %v791_v6 = vadd.s32 536870912, %v790_v37  ;;  %vm3732_vm13 = vcmp.lt.s32.totalorder %v3731_v61, 0  ;;  %v841_v62 = vand.u32 8388607, %v6857_v18 }
 0x156   : > { %v4700_v58 = vmul.f32 %v604_v35, %v602_v4  ;;  %vm845_vm14 = vcmp.gt.s32.totalorder %v844_v53, 0  ;;  %v6856_v8 = vand.u32 2147483647, %v4386_v39  ;;  %v3741_v27 = vadd.s32 4294967169, %v942_v33 }
 0x157   : > { %v4704_v7 = vshrl.u32 %v791_v6, 30  ;;  %v846_v11 = vsel %vm845_vm14, %v844_v53, 0  ;;  %4049 = vcosq.f32 %v402_v5  ;;  %v4707_v10 = vadd.s32 3, %v403_v23 }
 0x158   : > { %v4709_v13 = vadd.s32 3, %v507_v15  ;;  %v848_v44 = vand.u32 31, %v846_v11  ;;  %4051 = vsinq.f32 %v402_v5  ;;  %v697_v3 = vsel %vm3732_vm13, 0, %v3731_v61 }
 0x159   : > { %v793_v16 = vshll.u32 %v4704_v7, 30  ;;  %v4718_v22 = vsel %vm4645_vm9, %v4363_v12, %v503_v25  ;;  %v606_v42 = vxor.u32 2147483648, %v4700_v58  ;;  %v682_v47 = vadd.s32 %v4556_v63, %v4568_v31 }
 0x15a   : > { %v849_v34 = vsub.s32 32, %v848_v44  ;;  %v842_v43 = vor.u32 8388608, %v841_v62  ;;  %v4727_v24 = vand.u32 8388607, %v6856_v8  ;;  %v948_v32 = vadd.s32 1, %v3741_v27 }
 0x15b   : > { %v4723_v54 = vsub.s32 %v790_v37, %v793_v16  ;;  %v698_v4 = vsub.s32 32, %v697_v3  ;;  %v702_v61 = vsub.s32 4294967266, %v697_v3  ;;  %v847_v2 = vshrl.u32 %v846_v11, 5 }
 0x15c   : > { %v851_v56 = vshll.u32 %v6864_v41, %v848_v44  ;;  %v852_v33 = vshrl.u32 %v6862_v46, %v849_v34  ;;  %v854_v63 = vshll.u32 %v6862_v46, %v848_v44  ;;  %v855_v31 = vshrl.u32 %v6859_v48, %v849_v34 }
 0x15d   : > { %v796_v40 = vsub.s32 0, %v4723_v54  ;;  %v857_v37 = vshll.u32 %v6859_v48, %v848_v44  ;;  %v858_v23 = vshrl.u32 %v6866_v50, %v849_v34  ;;  %v860_v15 = vshll.u32 %v6866_v50, %v848_v44 }
 0x15e   : > { %v861_v35 = vshrl.u32 %v6870_v52, %v849_v34  ;;  %v853_v5 = vor.u32 %v852_v33, %v851_v56  ;;  %v856_v25 = vor.u32 %v855_v31, %v854_v63  ;;  %v4739_v6 = vshll.u32 %v842_v43, 8 }
 0x15f   : > { %v3734_v53 = vmin.u32 %v796_v40, %v4723_v54  ;;  %v703_v62 = vadd.s32 127, %v702_v61  ;;  %v859_v11 = vor.u32 %v858_v23, %v857_v37  ;;  %v1045_v16 = vand.u32 2139095040, %v4391_v45 }
 0x160   : > { %v862_v27 = vor.u32 %v861_v35, %v860_v15  ;;  %v863_v8 = vshll.u32 %v6870_v52, %v848_v44  ;;  %v864_v18 = vshrl.u32 %v6868_v59, %v849_v34  ;;  %v946_v28 = vor.u32 8388608, %v4727_v24 }
 0x161   : > { %v798_v0 = vclz %v3734_v53  ;;  %v4745_v20 = vpop.eup %4049  ;;  %v699_v40 = vshll.u32 %v4626_v17, %v697_v3  ;;  %v700_v56 = vshrl.u32 %v682_v47, %v698_v4  ;;  %vm866_vm15 = vcmp.lt.s32.totalorder %v847_v2, 1 }
 0x162   : > { %6932 = vst [vmem:[#allocation8_spill] sm:$0xff] %v4745_v20  ;;  %vm949_vm2 = vcmp.gt.s32.totalorder %v948_v32, 0  ;;  %v4748_v43 = vpop.eup %4051  ;;  %v865_v33 = vor.u32 %v864_v18, %v863_v8  ;;  %vm869_vm3 = vcmp.lt.s32.totalorder %v847_v2, 4  ;;  %v874_v63 = vsel %vm866_vm15, %v853_v5, %v856_v25 }
 0x163   : > { %6933 = vst [vmem:[#allocation9_spill] sm:$0xff] %v4748_v43  ;;  %v3735_v61 = vadd.s32 4294967294, %v798_v0  ;;  %v704_v31 = vshll.u32 %v703_v62, 23  ;;  %vm868_vm4 = vcmp.lt.s32.totalorder %v847_v2, 3  ;;  %v871_v44 = vsel %vm869_vm3, %v859_v11, 2102212464 }
 0x164   : > { %v875_v37 = vsel %vm869_vm3, %v862_v27, 920167782  ;;  %v850_v24 = vshrl.u32 %v6864_v41, %v849_v34  ;;  %vm867_vm6 = vcmp.lt.s32.totalorder %v847_v2, 2  ;;  %v878_v0 = vsel %vm866_vm15, %v856_v25, %v859_v11 }
 0x165   : > { %vm3736_vm5 = vcmp.lt.s32.totalorder %v3735_v61, 0  ;;  %v876_v17 = vsel %vm868_vm4, %v859_v11, %v875_v37  ;;  %v879_v18 = vsel %vm869_vm3, %v865_v33, 1326507024  ;;  %v4757_v8 = vor.u32 %v700_v56, %v699_v40 }
 0x166   : > { %v4753_v3 = vsel %vm3736_vm5, 0, %v3735_v61  ;;  %v877_v47 = vsel %vm867_vm6, %v874_v63, %v876_v17  ;;  %v870_v4 = vsel %vm866_vm15, %v850_v24, %v853_v5  ;;  %v872_v23 = vsel %vm868_vm4, %v856_v25, %v871_v44 }
 0x167   : > { %v950_v15 = vsel %vm949_vm2, %v948_v32, 0  ;;  %v4762_v35 = vor.u32 4788187, %v704_v31  ;;  %v880_v34 = vsel %vm868_vm4, %v862_v27, %v879_v18  ;;  %4053 = vcosq.f32 %v4718_v22 }
 0x168   : > { %v4766_v53 = vmul.u32.u64.low %v4739_v6, %v877_v47  ;;  %v4767_v62 = vmul.u32.u64.high %v4739_v6, %v877_v47, %v4766_v53  ;;  %v712_v11 = vsub.s32 4, %v4599_v14  ;;  %v806_v40 = vsub.s32 4294967266, %v4753_v3 }
 0x169   : > { %v881_v5 = vsel %vm867_vm6, %v878_v0, %v880_v34  ;;  %v873_v25 = vsel %vm867_vm6, %v870_v4, %v872_v23  ;;  %v952_v27 = vand.u32 31, %v950_v15  ;;  %v4784_v61 = vsel %vm524_vm12, %v606_v42, %v4700_v58 }
 0x16a   : > { %v4776_v32 = vmul.u32.u64.low %v4739_v6, %v881_v5  ;;  %v4777_v56 = vmul.u32.u64.high %v4739_v6, %v881_v5, %v4776_v32  ;;  %v786_v33 = vadd.s32 %v4620_v51, %v4653_v38  ;;  %v4788_v63 = vshll.u32 %v946_v28, 8 }
 0x16b   : > { %v1046_v31 = vshrl.u32 %v1045_v16, 23  ;;  %v706_v2 = vand.u32 2147483647, %v4762_v35  ;;  %v708_v44 = vcvt.s32.f32 %v4757_v8  ;;  %v892_v37 = vadd.s32 1, %v4767_v62 }
 0x16c   : > { %v953_v24 = vsub.s32 32, %v952_v27  ;;  %v802_v17 = vsub.s32 32, %v4753_v3  ;;  %v807_v47 = vadd.s32 127, %v806_v40  ;;  %v889_v0 = vmul.u32 %v4739_v6, %v873_v25 }
 0x16d   : > { %v951_v58 = vshrl.u32 %v950_v15, 5  ;;  %vm891_vm7 = vc.u32 %v4777_v56, %v4766_v53  ;;  %v955_v28 = vshll.u32 %v6864_v41, %v952_v27  ;;  %v958_v38 = vshll.u32 %v6862_v46, %v952_v27 }
 0x16e   : > { %v956_v51 = vshrl.u32 %v6862_v46, %v953_v24  ;;  %v893_v42 = vsel %vm891_vm7, %v892_v37, %v4767_v62  ;;  %v959_v16 = vshrl.u32 %v6859_v48, %v953_v24  ;;  %v961_v18 = vshll.u32 %v6859_v48, %v952_v27 }
 0x16f   : > { %v962_v8 = vshrl.u32 %v6866_v50, %v953_v24  ;;  %vm628_vm8 = vcmp.lt.s32.totalorder %v4373_v21, 0  ;;  %v894_v6 = vadd.s32 %v893_v42, %v889_v0  ;;  %v964_v23 = vshll.u32 %v6866_v50, %v952_v27 }
 0x170   : > { %v957_v4 = vor.u32 %v956_v51, %v955_v28  ;;  %v965_v15 = vshrl.u32 %v6870_v52, %v953_v24  ;;  %v960_v35 = vor.u32 %v959_v16, %v958_v38  ;;  %v967_v40 = vshll.u32 %v6870_v52, %v952_v27 }
 0x171   : > { %v963_v34 = vor.u32 %v962_v8, %v961_v18  ;;  %v968_v62 = vshrl.u32 %v6868_v59, %v953_v24  ;;  %v803_v5 = vshll.u32 %v4723_v54, %v4753_v3  ;;  %v804_v25 = vshrl.u32 %v786_v33, %v802_v17  ;;  %v4811_v48 = vpop.eup %4053 }
 0x172   : > { %v895_v32 = vadd.s32 536870912, %v894_v6  ;;  %v966_v37 = vor.u32 %v965_v15, %v964_v23  ;;  %v808_v0 = vshll.u32 %v807_v47, 23  ;;  %vm970_vm9 = vcmp.lt.s32.totalorder %v951_v58, 1 }
 0x173   : > { %v969_v28 = vor.u32 %v968_v62, %v967_v40  ;;  %vm973_vm10 = vcmp.lt.s32.totalorder %v951_v58, 4  ;;  %vm4815_vm12 = vcmp.le.f32.partialorder %v626_v60, 0.7853982  ;;  %vm972_vm13 = vcmp.lt.s32.totalorder %v951_v58, 3 }
 0x174   : > { %v4819_v27 = vshrl.u32 %v895_v32, 30  ;;  %v978_v54 = vsel %vm970_vm9, %v957_v4, %v960_v35  ;;  %v979_v3 = vsel %vm973_vm10, %v966_v37, 920167782  ;;  %vm971_vm14 = vcmp.lt.s32.totalorder %v951_v58, 2 }
 0x175   : > { %v975_v33 = vsel %vm973_vm10, %v963_v34, 2102212464  ;;  %v980_v17 = vsel %vm972_vm13, %v963_v34, %v979_v3  ;;  %v3745_v47 = vadd.s32 4294967169, %v1046_v31  ;;  %v954_v42 = vshrl.u32 %v6864_v41, %v953_v24 }
 0x176   : > { %v897_v38 = vshll.u32 %v4819_v27, 30  ;;  %v981_v60 = vsel %vm971_vm14, %v978_v54, %v980_v17  ;;  %v982_v16 = vsel %vm970_vm9, %v960_v35, %v963_v34  ;;  %v809_v18 = vor.u32 4788187, %v808_v0 }
 0x177   : > { %v983_v8 = vsel %vm973_vm10, %v969_v28, 1326507024  ;;  %v4828_v23 = vmul.u32.u64.low %v4788_v63, %v981_v60  ;;  %v4829_v15 = vmul.u32.u64.high %v4788_v63, %v981_v60, %v4828_v23  ;;  %v974_v62 = vsel %vm970_vm9, %v954_v42, %v957_v4 }
 0x178   : > { %v4832_v40 = vsub.s32 %v894_v6, %v897_v38  ;;  %v976_v31 = vsel %vm972_vm13, %v960_v35, %v975_v33  ;;  %v984_v32 = vsel %vm972_vm13, %v966_v37, %v983_v8  ;;  %v709_v24 = vmul.f32 %v708_v44, %v706_v2 }
 0x179   : > { %v713_v34 = vsel %vm628_vm8, %v712_v11, %v4599_v14  ;;  %v805_v0 = vor.u32 %v804_v25, %v803_v5  ;;  %v985_v28 = vsel %vm971_vm14, %v982_v16, %v984_v32  ;;  %v6861_v4 = vand.u32 2147483647, %v4391_v45 }
 0x17a   : > { %v900_v54 = vsub.s32 0, %v4832_v40  ;;  %v4845_v6 = vmul.u32.u64.low %v4788_v63, %v985_v28  ;;  %v4846_v3 = vmul.u32.u64.high %v4788_v63, %v985_v28, %v4845_v6  ;;  %v810_v35 = vand.u32 2147483647, %v809_v18 }
 0x17b   : > { %v977_v2 = vsel %vm971_vm14, %v974_v62, %v976_v31  ;;  %v996_v44 = vadd.s32 1, %v4829_v15  ;;  %v1052_v37 = vadd.s32 1, %v3745_v47  ;;  %4055 = vsinq.f32 %v4718_v22 }
 0x17c   : > { %v610_v14 = vsel %vm4681_vm11, %v4371_v19, %v4784_v61  ;;  %v6936_v11 = vsel %vm4681_vm11, 0, %v4698_v49  ;;  %v3738_v25 = vmin.u32 %v900_v54, %v4832_v40  ;;  %v710_v33 = vxor.u32 2147483648, %v709_v24 }
 0x17d   : > { %v615_v5 = vadd.s32 3, %v6936_v11  ;;  %v715_v58 = vsel %vm4815_vm12, 0, %v713_v34  ;;  %v812_v17 = vcvt.s32.f32 %v805_v0  ;;  %vm1053_vm15 = vcmp.gt.s32.totalorder %v1052_v37, 0 }
 0x17e   : > { %v902_v47 = vclz %v3738_v25  ;;  %v993_v22 = vmul.u32 %v4788_v63, %v977_v2  ;;  %vm995_vm2 = vc.u32 %v4846_v3, %v4828_v23  ;;  %v1054_v61 = vsel %vm1053_vm15, %v1052_v37, 0 }
 0x17f   : > { %v813_v38 = vmul.f32 %v812_v17, %v810_v35  ;;  %v997_v36 = vsel %vm995_vm2, %v996_v44, %v4829_v15  ;;  %v1049_v49 = vand.u32 8388607, %v6861_v4  ;;  %v1056_v42 = vand.u32 31, %v1054_v61 }
 0x180   : > { %v4870_v60 = vand.u32 3, %v4707_v10  ;;  %4057 = vcosq.f32 %v610_v14  ;;  %vm732_vm11 = vcmp.lt.s32.totalorder %v4376_v29, 0  ;;  %v3739_v16 = vadd.s32 4294967294, %v902_v47 }
 0x181   : > { %v998_v18 = vadd.s32 %v997_v36, %v993_v22  ;;  %v4874_v63 = vand.u32 3, %v4709_v13  ;;  %4059 = vsinq.f32 %v610_v14  ;;  %v4876_v8 = vand.u32 3, %v615_v5 }
 0x182   : > { %6937 = vst [vmem:[#allocation10_spill] sm:$0xff] %v4870_v60  ;;  %v1057_v62 = vsub.s32 32, %v1056_v42  ;;  %v4878_v15 = vadd.s32 3, %v715_v58  ;;  %vm3740_vm3 = vcmp.lt.s32.totalorder %v3739_v16, 0  ;;  %v4883_v10 = vsel %vm628_vm8, %v710_v33, %v709_v24 }
 0x183   : > { %6938 = vst [vmem:[#allocation11_spill] sm:$0xff] %v4876_v8  ;;  %v999_v32 = vadd.s32 536870912, %v998_v18  ;;  %v814_v34 = vxor.u32 2147483648, %v813_v38  ;;  %v890_v0 = vadd.s32 %v4766_v53, %v4777_v56  ;;  %v1050_v13 = vor.u32 8388608, %v1049_v49 }
 0x184   : > { %v4887_v28 = vsel %vm3740_vm3, 0, %v3739_v16  ;;  %v1060_v6 = vshrl.u32 %v6862_v46, %v1057_v62  ;;  %v6939_v35 = vmov 2131351028   ;;  %v1055_v44 = vshrl.u32 %v1054_v61, 5 }
 0x185   : > { %v4889_v54 = vshrl.u32 %v999_v32, 30  ;;  %v1063_v2 = vshrl.u32 %v6939_v35, %v1057_v62  ;;  %v1066_v37 = vshrl.u32 %v6866_v50, %v1057_v62  ;;  %v1069_v14 = vshrl.u32 %v6870_v52, %v1057_v62  ;;  %v4896_v11 = vpop.eup %4055 }
 0x186   : > { %v1149_v24 = vand.u32 2139095040, %v4413_v26  ;;  %v1059_v56 = vshll.u32 %v6864_v41, %v1056_v42  ;;  %v1062_v5 = vshll.u32 %v6862_v46, %v1056_v42  ;;  %v1065_v25 = vshll.u32 %v6939_v35, %v1056_v42 }
 0x187   : > { %v1001_v53 = vshll.u32 %v4889_v54, 30  ;;  %v910_v33 = vsub.s32 4294967266, %v4887_v28  ;;  %v1068_v58 = vshll.u32 %v6866_v50, %v1056_v42  ;;  %v1071_v17 = vshll.u32 %v6870_v52, %v1056_v42 }
 0x188   : > { %v1072_v47 = vshrl.u32 %v6868_v59, %v1057_v62  ;;  %v1061_v61 = vor.u32 %v1060_v6, %v1059_v56  ;;  %v1064_v36 = vor.u32 %v1063_v2, %v1062_v5  ;;  %v1067_v49 = vor.u32 %v1066_v37, %v1065_v25 }
 0x189   : > { %v4906_v22 = vsub.s32 %v998_v18, %v1001_v53  ;;  %v815_v16 = vsel %vm732_vm11, %v814_v34, %v813_v38  ;;  %v1070_v32 = vor.u32 %v1069_v14, %v1068_v58  ;;  %v1150_v46 = vshrl.u32 %v1149_v24, 23 }
 0x18a   : > { %v1073_v4 = vor.u32 %v1072_v47, %v1071_v17  ;;  %v4910_v31 = vpop.eup %4057  ;;  %v906_v41 = vsub.s32 32, %v4887_v28  ;;  %v1090_v42 = vshll.u32 %v1050_v13, 8  ;;  %v6942_v6 = vand.u32 2147483647, %v4376_v29 }
 0x18b   : > { %6940 = vst [vmem:[#allocation12_spill] sm:$0xff] %v4910_v31  ;;  %v1004_v50 = vsub.s32 0, %v4906_v22  ;;  %v4915_v18 = vpop.eup %4059  ;;  %v911_v38 = vadd.s32 127, %v910_v33  ;;  %v6945_v34 = vmov 683565275   ;;  %vm1074_vm5 = vcmp.lt.s32.totalorder %v1055_v44, 1 }
 0x18c   : > { %6941 = vst [vmem:[#allocation13_spill] sm:$0xff] %v4915_v18  ;;  %vm4919_vm4 = vcmp.le.f32.partialorder %v6942_v6, 0.7853982  ;;  %v1058_v37 = vshrl.u32 %v6945_v34, %v1057_v62  ;;  %vm1077_vm6 = vcmp.lt.s32.totalorder %v1055_v44, 4  ;;  %vm1076_vm7 = vcmp.lt.s32.totalorder %v1055_v44, 3 }
 0x18d   : > { %v3742_v14 = vmin.u32 %v1004_v50, %v4906_v22  ;;  %v1079_v24 = vsel %vm1077_vm6, %v1067_v49, 2102212464  ;;  %v1082_v13 = vsel %vm1074_vm5, %v1061_v61, %v1064_v36  ;;  %v1083_v53 = vsel %vm1077_vm6, %v1070_v32, 920167782 }
 0x18e   : > { %v1086_v56 = vsel %vm1074_vm5, %v1064_v36, %v1067_v49  ;;  %v1087_v5 = vsel %vm1077_vm6, %v1073_v4, 1326507024  ;;  %v3749_v25 = vadd.s32 4294967169, %v1150_v46  ;;  %v908_v58 = vshrl.u32 %v890_v0, %v906_v41 }
 0x18f   : > { %v1006_v17 = vclz %v3742_v14  ;;  %vm1075_vm8 = vcmp.lt.s32.totalorder %v1055_v44, 2  ;;  %v1084_v33 = vsel %vm1076_vm7, %v1067_v49, %v1083_v53  ;;  %v912_v47 = vshll.u32 %v911_v38, 23 }
 0x190   : > { %v1085_v62 = vsel %vm1075_vm8, %v1082_v13, %v1084_v33  ;;  %v1088_v6 = vsel %vm1076_vm7, %v1070_v32, %v1087_v5  ;;  %v1156_v50 = vadd.s32 1, %v3749_v25  ;;  %v1078_v59 = vsel %vm1074_vm5, %v1058_v37, %v1061_v61 }
 0x191   : > { %v3743_v52 = vadd.s32 4294967294, %v1006_v17  ;;  %v1080_v31 = vsel %vm1076_vm7, %v1064_v36, %v1079_v24  ;;  %v1089_v8 = vsel %vm1075_vm8, %v1086_v56, %v1088_v6  ;;  %v714_v49 = vsel %vm4815_vm12, %v4373_v21, %v4883_v10 }
 0x192   : > { %v4933_v4 = vmul.u32.u64.low %v1090_v42, %v1089_v8  ;;  %v4934_v46 = vmul.u32.u64.high %v1090_v42, %v1089_v8, %v4933_v4  ;;  %v4936_v41 = vmul.u32.u64.low %v1090_v42, %v1085_v62  ;;  %v4937_v0 = vmul.u32.u64.high %v1090_v42, %v1085_v62, %v4936_v41 }
 0x193   : > { %v6946_v32 = vsub.s32 4, %v4704_v7  ;;  %vm3744_vm9 = vcmp.lt.s32.totalorder %v3743_v52, 0  ;;  %vm1157_vm10 = vcmp.gt.s32.totalorder %v1156_v50, 0  ;;  %v907_v8 = vshll.u32 %v4832_v40, %v4887_v28 }
 0x194   : > { %v4953_v36 = vsel %vm3744_vm9, 0, %v3743_v52  ;;  %v1081_v38 = vsel %vm1075_vm8, %v1078_v59, %v1080_v31  ;;  %v1158_v37 = vsel %vm1157_vm10, %v1156_v50, 0  ;;  %v4959_v51 = vsel %vm4919_vm4, %v4376_v29, %v815_v16 }
 0x195   : > { %v4949_v61 = vsel %vm732_vm11, %v6946_v32, %v4704_v7  ;;  %v913_v10 = vor.u32 4788187, %v912_v47  ;;  %v920_v14 = vsub.s32 4, %v4819_v27  ;;  %v6947_v7 = vand.u32 2147483647, %v4413_v26 }
 0x196   : > { %v6948_v13 = vand.u32 2147483647, %v4378_v30  ;;  %v909_v52 = vor.u32 %v908_v58, %v907_v8  ;;  %v1014_v59 = vsub.s32 4294967266, %v4953_v36  ;;  %vm1099_vm13 = vc.u32 %v4934_v46, %v4936_v41 }
 0x197   : > { %v1153_v24 = vand.u32 8388607, %v6947_v7  ;;  %v1100_v31 = vadd.s32 1, %v4937_v0  ;;  %4061 = vcosq.f32 %v714_v49  ;;  %vm836_vm14 = vcmp.lt.s32.totalorder %v4378_v30, 0 }
 0x198   : > { %vm4966_vm12 = vcmp.le.f32.partialorder %v6948_v13, 0.7853982  ;;  %v1097_v28 = vmul.u32 %v1090_v42, %v1081_v38  ;;  %v1160_v44 = vand.u32 31, %v1158_v37  ;;  %4063 = vsinq.f32 %v714_v49 }
 0x199   : > { %v4976_v16 = vand.u32 3, %v4878_v15  ;;  %v1101_v56 = vsel %vm1099_vm13, %v1100_v31, %v4937_v0  ;;  %4065 = vcosq.f32 %v4959_v51  ;;  %v914_v5 = vand.u32 2147483647, %v913_v10 }
 0x19a   : > { %v1102_v25 = vadd.s32 %v1101_v56, %v1097_v28  ;;  %v1161_v58 = vsub.s32 32, %v1160_v44  ;;  %v916_v17 = vcvt.s32.f32 %v909_v52  ;;  %v4986_v42 = vsel %vm836_vm14, %v920_v14, %v4819_v27 }
 0x19b   : > { %v1015_v33 = vadd.s32 127, %v1014_v59  ;;  %v1154_v15 = vor.u32 8388608, %v1153_v24  ;;  %v1163_v62 = vshll.u32 %v6945_v34, %v1160_v44  ;;  %v6951_v6 = vmov 2475754826  }
 0x19c   : > { %v1103_v47 = vadd.s32 536870912, %v1102_v25  ;;  %v1166_v50 = vshll.u32 %v6951_v6, %v1160_v44  ;;  %v6952_v4 = vmov 2102212464   ;;  %v1164_v49 = vshrl.u32 %v6951_v6, %v1161_v58 }
 0x19d   : > { %v1172_v0 = vshll.u32 %v6952_v4, %v1160_v44  ;;  %v1167_v32 = vshrl.u32 %v6939_v35, %v1161_v58  ;;  %v1170_v8 = vshrl.u32 %v6952_v4, %v1161_v58  ;;  %v6953_v38 = vmov 920167782  }
 0x19e   : > { %v1173_v10 = vshrl.u32 %v6953_v38, %v1161_v58  ;;  %v917_v7 = vmul.f32 %v916_v17, %v914_v5  ;;  %v4995_v27 = vshrl.u32 %v1103_v47, 30  ;;  %v1159_v14 = vshrl.u32 %v1158_v37, 5 }
 0x19f   : > { %v1169_v24 = vshll.u32 %v6939_v35, %v1160_v44  ;;  %vm940_vm15 = vcmp.lt.s32.totalorder %v4386_v39, 0  ;;  %v1165_v13 = vor.u32 %v1164_v49, %v1163_v62  ;;  %v1168_v52 = vor.u32 %v1167_v32, %v1166_v50 }
 0x1a0   : > { %v1174_v59 = vor.u32 %v1173_v10, %v1172_v0  ;;  %v6954_v31 = vmov 1326507024   ;;  %v923_v56 = vsel %vm4966_vm12, 0, %v4986_v42  ;;  %v994_v53 = vadd.s32 %v4828_v23, %v4846_v3 }
 0x1a1   : > { %v1176_v28 = vshrl.u32 %v6954_v31, %v1161_v58  ;;  %v1024_v5 = vsub.s32 4, %v4889_v54  ;;  %v1105_v37 = vshll.u32 %v4995_v27, 30  ;;  %v1010_v17 = vsub.s32 32, %v4953_v36  ;;  %v5009_v50 = vpop.eup %4061 }
 0x1a2   : > { %v1016_v47 = vshll.u32 %v1015_v33, 23  ;;  %v1171_v29 = vor.u32 %v1170_v8, %v1169_v24  ;;  %v1175_v62 = vshll.u32 %v6953_v38, %v1160_v44  ;;  %v918_v0 = vxor.u32 2147483648, %v917_v7  ;;  %v5019_v3 = vpop.eup %4063 }
 0x1a3   : > { %v6955_v49 = vand.u32 2147483647, %v4386_v39  ;;  %v5017_v23 = vsub.s32 %v1102_v25, %v1105_v37  ;;  %vm1178_vm11 = vcmp.lt.s32.totalorder %v1159_v14, 1  ;;  %vm1181_vm3 = vcmp.lt.s32.totalorder %v1159_v14, 4  ;;  %v5023_v10 = vpop.eup %4065 }
 0x1a4   : > { %v1177_v32 = vor.u32 %v1176_v28, %v1175_v62  ;;  %v1186_v33 = vsel %vm1178_vm11, %v1165_v13, %v1168_v52  ;;  %v1187_v44 = vsel %vm1181_vm3, %v1174_v59, 920167782  ;;  %v1194_v8 = vshll.u32 %v1154_v15, 8  ;;  %6958 = vst [vmem:[#allocation14_spill] sm:$0xff] %v5023_v10 }
 0x1a5   : > { %vm5013_vm2 = vcmp.le.f32.partialorder %v6955_v49, 0.7853982  ;;  %v1011_v24 = vshll.u32 %v4906_v22, %v4953_v36  ;;  %v1108_v49 = vsub.s32 0, %v5017_v23  ;;  %vm1180_vm5 = vcmp.lt.s32.totalorder %v1159_v14, 3 }
 0x1a6   : > { %v1253_v25 = vand.u32 2139095040, %v4477_v55  ;;  %v1012_v37 = vshrl.u32 %v994_v53, %v1010_v17  ;;  %v1017_v18 = vor.u32 4788187, %v1016_v47  ;;  %vm1179_vm6 = vcmp.lt.s32.totalorder %v1159_v14, 2 }
 0x1a7   : > { %v1188_v28 = vsel %vm1180_vm5, %v1171_v29, %v1187_v44  ;;  %v3746_v62 = vmin.u32 %v1108_v49, %v5017_v23  ;;  %v1183_v20 = vsel %vm1181_vm3, %v1171_v29, 2102212464  ;;  %v1190_v10 = vsel %vm1178_vm11, %v1168_v52, %v1171_v29 }
 0x1a8   : > { %v1189_v15 = vsel %vm1179_vm6, %v1186_v33, %v1188_v28  ;;  %v1162_v22 = vshrl.u32 %v6945_v34, %v1161_v58  ;;  %v1191_v36 = vsel %vm1181_vm3, %v1177_v32, 1326507024  ;;  %v1025_v53 = vsel %vm940_vm15, %v1024_v5, %v4889_v54 }
 0x1a9   : > { %v5036_v60 = vmul.u32.u64.low %v1194_v8, %v1189_v15  ;;  %v5037_v19 = vmul.u32.u64.high %v1194_v8, %v1189_v15, %v5036_v60  ;;  %v1110_v17 = vclz %v3746_v62  ;;  %v1192_v47 = vsel %vm1180_vm5, %v1174_v59, %v1191_v36 }
 0x1aa   : > { %v1254_v44 = vshrl.u32 %v1253_v25, 23  ;;  %v1013_v49 = vor.u32 %v1012_v37, %v1011_v24  ;;  %v1182_v33 = vsel %vm1178_vm11, %v1162_v22, %v1165_v13  ;;  %v1184_v29 = vsel %vm1180_vm5, %v1168_v52, %v1183_v20 }
 0x1ab   : > { %v1193_v58 = vsel %vm1179_vm6, %v1190_v10, %v1192_v47  ;;  %v3747_v32 = vadd.s32 4294967294, %v1110_v17  ;;  %v919_v43 = vsel %vm836_vm14, %v918_v0, %v917_v7  ;;  %v1018_v54 = vand.u32 2147483647, %v1017_v18 }
 0x1ac   : > { %v5047_v28 = vmul.u32.u64.low %v1194_v8, %v1193_v58  ;;  %v5048_v15 = vmul.u32.u64.high %v1194_v8, %v1193_v58, %v5047_v28  ;;  %v3753_v9 = vadd.s32 4294967169, %v1254_v44  ;;  %v1027_v59 = vsel %vm5013_vm2, 0, %v1025_v53 }
 0x1ad   : > { %v6885_v5 = vand.u32 2147483647, %v4477_v55  ;;  %vm3748_vm7 = vcmp.lt.s32.totalorder %v3747_v32, 0  ;;  %v1185_v13 = vsel %vm1179_vm6, %v1182_v33, %v1184_v29  ;;  %v1204_v20 = vadd.s32 1, %v5037_v19 }
 0x1ae   : > { %v1260_v52 = vadd.s32 1, %v3753_v9  ;;  %4067 = vsinq.f32 %v4959_v51  ;;  %v6959_v10 = vsel %vm4919_vm4, 0, %v4949_v61  ;;  %v1020_v7 = vcvt.s32.f32 %v1013_v49 }
 0x1af   : > { %v823_v24 = vadd.s32 3, %v6959_v10  ;;  %vm1044_vm8 = vcmp.lt.s32.totalorder %v4391_v45, 0  ;;  %v922_v18 = vsel %vm4966_vm12, %v4378_v30, %v919_v43  ;;  %v927_v0 = vadd.s32 3, %v923_v56 }
 0x1b0   : > { %v1031_v14 = vadd.s32 3, %v1027_v59  ;;  %v5066_v25 = vsel %vm3748_vm7, 0, %v3747_v32  ;;  %v1021_v37 = vmul.f32 %v1020_v7, %v1018_v54  ;;  %v6960_v9 = vand.u32 2147483647, %v4391_v45 }
 0x1b1   : > { %v1201_v2 = vmul.u32 %v1194_v8, %v1185_v13  ;;  %vm1203_vm4 = vc.u32 %v5048_v15, %v5036_v60  ;;  %vm1261_vm10 = vcmp.gt.s32.totalorder %v1260_v52, 0  ;;  %v1128_v61 = vsub.s32 4, %v4995_v27 }
 0x1b2   : > { %vm5070_vm9 = vcmp.le.f32.partialorder %v6960_v9, 0.7853982  ;;  %v1205_v43 = vsel %vm1203_vm4, %v1204_v20, %v5037_v19  ;;  %v1257_v40 = vand.u32 8388607, %v6885_v5  ;;  %v1262_v56 = vsel %vm1261_vm10, %v1260_v52, 0 }
 0x1b3   : > { %4069 = vcosq.f32 %v922_v18  ;;  %v1118_v62 = vsub.s32 4294967266, %v5066_v25  ;;  %v1206_v22 = vadd.s32 %v1205_v43, %v1201_v2  ;;  %v1264_v36 = vand.u32 31, %v1262_v56 }
 0x1b4   : > { %v5081_v53 = vand.u32 3, %v823_v24  ;;  %4071 = vsinq.f32 %v922_v18  ;;  %v5083_v8 = vand.u32 3, %v927_v0  ;;  %v5085_v17 = vand.u32 3, %v1031_v14 }
 0x1b5   : > { %v1022_v47 = vxor.u32 2147483648, %v1021_v37  ;;  %v1098_v19 = vadd.s32 %v4936_v41, %v4934_v46  ;;  %v1207_v44 = vadd.s32 536870912, %v1206_v22  ;;  %v1265_v49 = vsub.s32 32, %v1264_v36 }
 0x1b6   : > { %6963 = vst [vmem:[#allocation15_spill] sm:$0xff] %v5081_v53  ;;  %6964 = vst [vmem:[#allocation16_spill] sm:$0xff] %v5085_v17  ;;  %v1114_v33 = vsub.s32 32, %v5066_v25  ;;  %v5093_v29 = vsel %vm1044_vm8, %v1128_v61, %v4995_v27  ;;  %v1258_v58 = vor.u32 8388608, %v1257_v40  ;;  %v1357_v32 = vand.u32 2139095040, %v4538_v57 }
 0x1b7   : > { %v1119_v28 = vadd.s32 127, %v1118_v62  ;;  %v5096_v54 = vshrl.u32 %v1207_v44, 30  ;;  %v1268_v59 = vshrl.u32 %v6951_v6, %v1265_v49  ;;  %v1271_v13 = vshrl.u32 %v6939_v35, %v1265_v49 }
 0x1b8   : > { %v1273_v46 = vshll.u32 %v6939_v35, %v1264_v36  ;;  %v1274_v41 = vshrl.u32 %v6952_v4, %v1265_v49  ;;  %v1276_v20 = vshll.u32 %v6952_v4, %v1264_v36  ;;  %v1277_v52 = vshrl.u32 %v6953_v38, %v1265_v49  ;;  %v5104_v27 = vpop.eup %4067 }
 0x1b9   : > { %6965 = vst [vmem:[#allocation17_spill] sm:$0xff] %v5104_v27  ;;  %v1209_v10 = vshll.u32 %v5096_v54, 30  ;;  %v1263_v24 = vshrl.u32 %v1262_v56, 5  ;;  %v1267_v7 = vshll.u32 %v6945_v34, %v1264_v36  ;;  %v1270_v18 = vshll.u32 %v6951_v6, %v1264_v36 }
 0x1ba   : > { %v1131_v0 = vsel %vm5070_vm9, 0, %v5093_v29  ;;  %v1275_v14 = vor.u32 %v1274_v41, %v1273_v46  ;;  %v1278_v9 = vor.u32 %v1277_v52, %v1276_v20  ;;  %v1280_v2 = vshrl.u32 %v6954_v31, %v1265_v49 }
 0x1bb   : > { %v5115_v61 = vsel %vm940_vm15, %v1022_v47, %v1021_v37  ;;  %v5117_v43 = vsub.s32 %v1206_v22, %v1209_v10  ;;  %v1269_v40 = vor.u32 %v1268_v59, %v1267_v7  ;;  %v1272_v56 = vor.u32 %v1271_v13, %v1270_v18 }
 0x1bc   : > { %v1120_v62 = vshll.u32 %v1119_v28, 23  ;;  %v1279_v44 = vshll.u32 %v6953_v38, %v1264_v36  ;;  %v5120_v5 = vshll.u32 %v1258_v58, 8  ;;  %v1358_v17 = vshrl.u32 %v1357_v32, 23 }
 0x1bd   : > { %v5122_v53 = vpop.eup %4069  ;;  %v1115_v46 = vshll.u32 %v5017_v23, %v5066_v25  ;;  %v1116_v41 = vshrl.u32 %v1098_v19, %v1114_v33  ;;  %v1212_v20 = vsub.s32 0, %v5117_v43  ;;  %vm1285_vm12 = vcmp.lt.s32.totalorder %v1263_v24, 4 }
 0x1be   : > { %v5127_v37 = vpop.eup %4071  ;;  %v1281_v22 = vor.u32 %v1280_v2, %v1279_v44  ;;  %vm1282_vm13 = vcmp.lt.s32.totalorder %v1263_v24, 1  ;;  %v1287_v47 = vsel %vm1285_vm12, %v1275_v14, 2102212464  ;;  %v1291_v36 = vsel %vm1285_vm12, %v1278_v9, 920167782 }
 0x1bf   : > { %v3750_v58 = vmin.u32 %v1212_v20, %v5117_v43  ;;  %v1266_v32 = vshrl.u32 %v6945_v34, %v1265_v49  ;;  %vm1284_vm14 = vcmp.lt.s32.totalorder %v1263_v24, 3  ;;  %v1290_v28 = vsel %vm1282_vm13, %v1269_v40, %v1272_v56 }
 0x1c0   : > { %v1121_v59 = vor.u32 4788187, %v1120_v62  ;;  %vm1283_vm15 = vcmp.lt.s32.totalorder %v1263_v24, 2  ;;  %v1292_v23 = vsel %vm1284_vm14, %v1275_v14, %v1291_v36  ;;  %v3757_v25 = vadd.s32 4294967169, %v1358_v17 }
 0x1c1   : > { %vm1148_vm11 = vcmp.lt.s32.totalorder %v4413_v26, 0  ;;  %v1214_v19 = vclz %v3750_v58  ;;  %v1286_v33 = vsel %vm1282_vm13, %v1266_v32, %v1269_v40  ;;  %v1288_v13 = vsel %vm1284_vm14, %v1272_v56, %v1287_v47 }
 0x1c2   : > { %v1294_v52 = vsel %vm1282_vm13, %v1272_v56, %v1275_v14  ;;  %v1117_v10 = vor.u32 %v1116_v41, %v1115_v46  ;;  %v1293_v7 = vsel %vm1283_vm15, %v1290_v28, %v1292_v23  ;;  %v1295_v18 = vsel %vm1285_vm12, %v1281_v22, 1326507024 }
 0x1c3   : > { %v6888_v49 = vand.u32 2147483647, %v4538_v57  ;;  %v3751_v2 = vadd.s32 4294967294, %v1214_v19  ;;  %v1296_v62 = vsel %vm1284_vm14, %v1278_v9, %v1295_v18  ;;  %v1122_v20 = vand.u32 2147483647, %v1121_v59 }
 0x1c4   : > { %v5141_v44 = vmul.u32.u64.low %v5120_v5, %v1293_v7  ;;  %v5142_v17 = vmul.u32.u64.high %v5120_v5, %v1293_v7, %v5141_v44  ;;  %v6966_v40 = vand.u32 2147483647, %v4413_v26  ;;  %v1289_v56 = vsel %vm1283_vm15, %v1286_v33, %v1288_v13 }
 0x1c5   : > { %v1297_v46 = vsel %vm1283_vm15, %v1294_v52, %v1296_v62  ;;  %v1364_v41 = vadd.s32 1, %v3757_v25  ;;  %vm3752_vm5 = vcmp.lt.s32.totalorder %v3751_v2, 0  ;;  %v1461_v47 = vand.u32 2139095040, %v4593_v1 }
 0x1c6   : > { %vm5147_vm3 = vcmp.le.f32.partialorder %v6966_v40, 0.7853982  ;;  %v5154_v9 = vmul.u32.u64.low %v5120_v5, %v1297_v46  ;;  %v5155_v22 = vmul.u32.u64.high %v5120_v5, %v1297_v46, %v5154_v9  ;;  %v1124_v36 = vcvt.s32.f32 %v1117_v10 }
 0x1c7   : > { %v1217_v58 = vsel %vm3752_vm5, 0, %v3751_v2  ;;  %v1232_v32 = vsub.s32 4, %v5096_v54  ;;  %vm1365_vm6 = vcmp.gt.s32.totalorder %v1364_v41, 0  ;;  %v1202_v28 = vadd.s32 %v5036_v60, %v5048_v15 }
 0x1c8   : > { %v1218_v59 = vsub.s32 32, %v1217_v58  ;;  %v1222_v23 = vsub.s32 4294967266, %v1217_v58  ;;  %v1308_v24 = vadd.s32 1, %v5142_v17  ;;  %v1125_v25 = vmul.f32 %v1124_v36, %v1122_v20 }
 0x1c9   : > { %v1305_v19 = vmul.u32 %v5120_v5, %v1289_v56  ;;  %v1361_v33 = vand.u32 8388607, %v6888_v49  ;;  %v1366_v13 = vsel %vm1365_vm6, %v1364_v41, 0  ;;  %vm1307_vm7 = vc.u32 %v5155_v22, %v5141_v44 }
 0x1ca   : > { %v1220_v52 = vshrl.u32 %v1202_v28, %v1218_v59  ;;  %v1223_v10 = vadd.s32 127, %v1222_v23  ;;  %v1462_v7 = vshrl.u32 %v1461_v47, 23  ;;  %v1219_v18 = vshll.u32 %v5117_v43, %v1217_v58 }
 0x1cb   : > { %v1233_v60 = vsel %vm1148_vm11, %v1232_v32, %v5096_v54  ;;  %v1309_v15 = vsel %vm1307_vm7, %v1308_v24, %v5142_v17  ;;  %v1368_v2 = vand.u32 31, %v1366_v13  ;;  %v5176_v5 = vsel %vm5013_vm2, %v4386_v39, %v5115_v61 }
 0x1cc   : > { %v5182_v62 = vadd.s32 3, %v1131_v0  ;;  %v1224_v43 = vshll.u32 %v1223_v10, 23  ;;  %v1310_v20 = vadd.s32 %v1309_v15, %v1305_v19  ;;  %v1126_v40 = vxor.u32 2147483648, %v1125_v25 }
 0x1cd   : > { %v1221_v56 = vor.u32 %v1220_v52, %v1219_v18  ;;  %v1362_v54 = vor.u32 8388608, %v1361_v33  ;;  %v1369_v46 = vsub.s32 32, %v1368_v2  ;;  %v1235_v41 = vsel %vm5147_vm3, 0, %v1233_v60 }
 0x1ce   : > { %v1225_v17 = vor.u32 4788187, %v1224_v43  ;;  %v1311_v9 = vadd.s32 536870912, %v1310_v20  ;;  %v3761_v42 = vadd.s32 4294967169, %v1462_v7  ;;  %v1371_v61 = vshll.u32 %v6945_v34, %v1368_v2 }
 0x1cf   : > { %v1372_v47 = vshrl.u32 %v6951_v6, %v1369_v46  ;;  %v1374_v29 = vshll.u32 %v6951_v6, %v1368_v2  ;;  %v1375_v0 = vshrl.u32 %v6939_v35, %v1369_v46  ;;  %v1378_v32 = vshrl.u32 %v6952_v4, %v1369_v46 }
 0x1d0   : > { %v1226_v36 = vand.u32 2147483647, %v1225_v17  ;;  %v5190_v58 = vshrl.u32 %v1311_v9, 30  ;;  %v1381_v28 = vshrl.u32 %v6953_v38, %v1369_v46  ;;  %v1228_v59 = vcvt.s32.f32 %v1221_v56 }
 0x1d1   : > { %v1367_v23 = vshrl.u32 %v1366_v13, 5  ;;  %v1380_v24 = vshll.u32 %v6952_v4, %v1368_v2  ;;  %v1384_v19 = vshrl.u32 %v6954_v31, %v1369_v46  ;;  %v1373_v52 = vor.u32 %v1372_v47, %v1371_v61 }
 0x1d2   : > { %v1313_v33 = vshll.u32 %v5190_v58, 30  ;;  %v1376_v10 = vor.u32 %v1375_v0, %v1374_v29  ;;  %v1377_v7 = vshll.u32 %v6939_v35, %v1368_v2  ;;  %v1229_v18 = vmul.f32 %v1228_v59, %v1226_v36 }
 0x1d3   : > { %v1382_v60 = vor.u32 %v1381_v28, %v1380_v24  ;;  %v1383_v15 = vshll.u32 %v6953_v38, %v1368_v2  ;;  %v6890_v43 = vand.u32 2147483647, %v4593_v1  ;;  %v1239_v17 = vadd.s32 3, %v1235_v41 }
 0x1d4   : > { %v5200_v9 = vsub.s32 %v1310_v20, %v1313_v33  ;;  %v1379_v13 = vor.u32 %v1378_v32, %v1377_v7  ;;  %v1402_v56 = vshll.u32 %v1362_v54, 8  ;;  %v1127_v49 = vsel %vm1044_vm8, %v1126_v40, %v1125_v25 }
 0x1d5   : > { %v1385_v27 = vor.u32 %v1384_v19, %v1383_v15  ;;  %vm1386_vm2 = vcmp.lt.s32.totalorder %v1367_v23, 1  ;;  %v1468_v61 = vadd.s32 1, %v3761_v42  ;;  %v1370_v29 = vshrl.u32 %v6945_v34, %v1369_v46 }
 0x1d6   : > { %v1316_v47 = vsub.s32 0, %v5200_v9  ;;  %vm1389_vm4 = vcmp.lt.s32.totalorder %v1367_v23, 4  ;;  %v1394_v0 = vsel %vm1386_vm2, %v1373_v52, %v1376_v10  ;;  %v1230_v2 = vxor.u32 2147483648, %v1229_v18 }
 0x1d7   : > { %vm1387_vm10 = vcmp.lt.s32.totalorder %v1367_v23, 2  ;;  %vm1388_vm12 = vcmp.lt.s32.totalorder %v1367_v23, 3  ;;  %v1395_v41 = vsel %vm1389_vm4, %v1382_v60, 920167782  ;;  %v1391_v36 = vsel %vm1389_vm4, %v1379_v13, 2102212464 }
 0x1d8   : > { %v3754_v20 = vmin.u32 %v1316_v47, %v5200_v9  ;;  %v1396_v54 = vsel %vm1388_vm12, %v1379_v13, %v1395_v41  ;;  %v1398_v32 = vsel %vm1386_vm2, %v1376_v10, %v1379_v13  ;;  %v1390_v28 = vsel %vm1386_vm2, %v1370_v29, %v1373_v52 }
 0x1d9   : > { %v1397_v25 = vsel %vm1387_vm10, %v1394_v0, %v1396_v54  ;;  %v1399_v40 = vsel %vm1389_vm4, %v1385_v27, 1326507024  ;;  %v5210_v42 = vand.u32 8388607, %v6890_v43  ;;  %v1231_v33 = vsel %vm1148_vm11, %v1230_v2, %v1229_v18 }
 0x1da   : > { %v1318_v46 = vclz %v3754_v20  ;;  %v1400_v59 = vsel %vm1388_vm12, %v1382_v60, %v1399_v40  ;;  %v5212_v24 = vmul.u32.u64.low %v1402_v56, %v1397_v25  ;;  %v5213_v19 = vmul.u32.u64.high %v1402_v56, %v1397_v25, %v5212_v24 }
 0x1db   : > { %v1392_v7 = vsel %vm1388_vm12, %v1376_v10, %v1391_v36  ;;  %v1401_v15 = vsel %vm1387_vm10, %v1398_v32, %v1400_v59  ;;  %vm1469_vm8 = vcmp.gt.s32.totalorder %v1468_v61, 0  ;;  %4073 = vcosq.f32 %v5176_v5 }
 0x1dc   : > { %v3755_v52 = vadd.s32 4294967294, %v1318_v46  ;;  %v5219_v13 = vmul.u32.u64.low %v1402_v56, %v1401_v15  ;;  %v5220_v27 = vmul.u32.u64.high %v1402_v56, %v1401_v15, %v5219_v13  ;;  %v1470_v47 = vsel %vm1469_vm8, %v1468_v61, 0 }
 0x1dd   : > { %v1130_v60 = vsel %vm5070_vm9, %v4391_v45, %v1127_v49  ;;  %v5227_v29 = vand.u32 3, %v5182_v62  ;;  %v1472_v0 = vand.u32 31, %v1470_v47  ;;  %v1234_v10 = vsel %vm5147_vm3, %v4413_v26, %v1231_v33 }
 0x1de   : > { %vm3756_vm13 = vcmp.lt.s32.totalorder %v3755_v52, 0  ;;  %v1393_v18 = vsel %vm1387_vm10, %v1390_v28, %v1392_v7  ;;  %v1412_v2 = vadd.s32 1, %v5213_v19  ;;  %4075 = vsinq.f32 %v5176_v5 }
 0x1df   : > { %v5235_v61 = vand.u32 3, %v1239_v17  ;;  %v1321_v41 = vsel %vm3756_vm13, 0, %v3755_v52  ;;  %v1473_v51 = vsub.s32 32, %v1472_v0  ;;  %4077 = vcosq.f32 %v1130_v60 }
 0x1e0   : > { %v1322_v49 = vsub.s32 32, %v1321_v41  ;;  %v1326_v62 = vsub.s32 4294967266, %v1321_v41  ;;  %v1466_v20 = vor.u32 8388608, %v5210_v42  ;;  %4079 = vcosq.f32 %v1234_v10 }
 0x1e1   : > { %v1306_v14 = vadd.s32 %v5141_v44, %v5155_v22  ;;  %v1409_v36 = vmul.u32 %v1402_v56, %v1393_v18  ;;  %vm1411_vm9 = vc.u32 %v5220_v27, %v5212_v24  ;;  %4081 = vsinq.f32 %v1234_v10 }
 0x1e2   : > { %v1327_v23 = vadd.s32 127, %v1326_v62  ;;  %v1413_v5 = vsel %vm1411_vm9, %v1412_v2, %v5213_v19  ;;  %v1476_v17 = vshrl.u32 %v6951_v6, %v1473_v51  ;;  %v1479_v32 = vshrl.u32 %v6939_v35, %v1473_v51 }
 0x1e3   : > { %v1414_v54 = vadd.s32 %v1413_v5, %v1409_v36  ;;  %vm514_vm14 = vcmp.eq.s32.totalorder %v4874_v63, 0  ;;  %v515_v28 = vxor.u32 2147483648, %v4896_v11  ;;  %v1324_v25 = vshrl.u32 %v1306_v14, %v1322_v49 }
 0x1e4   : > { %v1328_v40 = vshll.u32 %v1327_v23, 23  ;;  %v1475_v44 = vshll.u32 %v6945_v34, %v1472_v0  ;;  %v1482_v22 = vshrl.u32 %v6952_v4, %v1473_v51  ;;  %v1478_v42 = vshll.u32 %v6951_v6, %v1472_v0 }
 0x1e5   : > { %v1415_v56 = vadd.s32 536870912, %v1414_v54  ;;  %v1481_v46 = vshll.u32 %v6939_v35, %v1472_v0  ;;  %v1485_v59 = vshrl.u32 %v6953_v38, %v1473_v51  ;;  %v1323_v19 = vshll.u32 %v5200_v9, %v1321_v41  ;;  %v5254_v52 = vpop.eup %4073 }
 0x1e6   : > { %v1471_v33 = vshrl.u32 %v1470_v47, 5  ;;  %v1477_v7 = vor.u32 %v1476_v17, %v1475_v44  ;;  %v1484_v15 = vshll.u32 %v6952_v4, %v1472_v0  ;;  %v1329_v13 = vor.u32 4788187, %v1328_v40 }
 0x1e7   : > { %v1416_v10 = vshrl.u32 %v1415_v56, 30  ;;  %v1480_v18 = vor.u32 %v1479_v32, %v1478_v42  ;;  %v1483_v2 = vor.u32 %v1482_v22, %v1481_v46  ;;  %v1325_v49 = vor.u32 %v1324_v25, %v1323_v19 }
 0x1e8   : > { %vm1356_vm15 = vcmp.lt.s32.totalorder %v4538_v57, 0  ;;  %v1486_v62 = vor.u32 %v1485_v59, %v1484_v15  ;;  %v1487_v14 = vshll.u32 %v6953_v38, %v1472_v0  ;;  %v1488_v36 = vshrl.u32 %v6954_v31, %v1473_v51  ;;  %v5259_v23 = vpop.eup %4075 }
 0x1e9   : > { %4083 = vsinq.f32 %v1130_v60  ;;  %v1417_v9 = vshll.u32 %v1416_v10, 30  ;;  %v5261_v47 = vshll.u32 %v1466_v20, 8  ;;  %v516_v41 = vsel %vm514_vm14, %v4811_v48, %v515_v28  ;;  %v5266_v5 = vpop.eup %4077  ;;  %v6983_v60 = vld [vmem:[#allocation7_spill] sm:$0xff] }
 0x1ea   : > { %v1474_v17 = vshrl.u32 %v6945_v34, %v1473_v51  ;;  %v1489_v32 = vor.u32 %v1488_v36, %v1487_v14  ;;  %vm1490_vm11 = vcmp.lt.s32.totalorder %v1471_v33, 1  ;;  %vm1493_vm3 = vcmp.lt.s32.totalorder %v1471_v33, 4  ;;  %v5269_v0 = vpop.eup %4079 }
 0x1eb   : > { %v1330_v25 = vand.u32 2147483647, %v1329_v13  ;;  %v6969_v40 = vand.u32 2147483647, %v4538_v57  ;;  %v5277_v20 = vsub.s32 %v1414_v54, %v1417_v9  ;;  %v1495_v28 = vsel %vm1493_vm3, %v1483_v2, 2102212464  ;;  %v5281_v22 = vpop.eup %4081 }
 0x1ec   : > { %v1498_v44 = vsel %vm1490_vm11, %v1477_v7, %v1480_v18  ;;  %v1332_v51 = vcvt.s32.f32 %v1325_v49  ;;  %v1440_v56 = vsub.s32 4, %v1416_v10  ;;  %vm1492_vm6 = vcmp.lt.s32.totalorder %v1471_v33, 3 }
 0x1ed   : > { %vm5273_vm5 = vcmp.le.f32.partialorder %v6969_v40, 0.7853982  ;;  %v1499_v42 = vsel %vm1493_vm3, %v1486_v62, 920167782  ;;  %vm513_vm7 = vcmp.lt.s32.totalorder %v4874_v63, 2  ;;  %v1420_v46 = vsub.s32 0, %v5277_v20 }
 0x1ee   : > { %vm1491_vm2 = vcmp.lt.s32.totalorder %v1471_v33, 2  ;;  %v1494_v59 = vsel %vm1490_vm11, %v1474_v17, %v1477_v7  ;;  %v1500_v54 = vsel %vm1492_vm6, %v1483_v2, %v1499_v42  ;;  %v1496_v19 = vsel %vm1492_vm6, %v1480_v18, %v1495_v28 }
 0x1ef   : > { %v1501_v15 = vsel %vm1491_vm2, %v1498_v44, %v1500_v54  ;;  %v1502_v13 = vsel %vm1490_vm11, %v1480_v18, %v1483_v2  ;;  %v1503_v14 = vsel %vm1493_vm3, %v1489_v32, 1326507024  ;;  %v5290_v49 = vmul.f32 %v1332_v51, %v1330_v25 }
 0x1f0   : > { %v3758_v36 = vmin.u32 %v1420_v46, %v5277_v20  ;;  %v1504_v9 = vsel %vm1492_vm6, %v1486_v62, %v1503_v14  ;;  %vm510_vm4 = vweird.f32 %v4363_v12  ;;  %v518_v40 = vxor.u32 2147483648, %v4811_v48  ;;  %v6972_v14 = vld [vmem:[#allocation9_spill] sm:$0xff]  ;;  %v6976_v12 = vld [vmem:[#allocation8_spill] sm:$0xff] }
 0x1f1   : > { %v1505_v43 = vsel %vm1491_vm2, %v1502_v13, %v1504_v9  ;;  %v5297_v7 = vmul.u32.u64.low %v5261_v47, %v1501_v15  ;;  %v5298_v17 = vmul.u32.u64.high %v5261_v47, %v1501_v15, %v5297_v7  ;;  %vm517_vm10 = vcmp.eq.s32.totalorder %v4874_v63, 2  ;;  %v6973_v9 = vld [vmem:[#allocation5_spill] sm:$0xff] }
 0x1f2   : > { %v1422_v18 = vclz %v3758_v36  ;;  %v1441_v2 = vsel %vm1356_vm15, %v1440_v56, %v1416_v10  ;;  %v1497_v32 = vsel %vm1491_vm2, %v1494_v59, %v1496_v19  ;;  %vm718_vm12 = vweird.f32 %v4373_v21 }
 0x1f3   : > { %v1246_v62 = vxor.u32 2147483648, %v5269_v0  ;;  %v1410_v48 = vadd.s32 %v5212_v24, %v5220_v27  ;;  %v5310_v25 = vmul.u32.u64.low %v5261_v47, %v1505_v43  ;;  %v5311_v28 = vmul.u32.u64.high %v5261_v47, %v1505_v43, %v5310_v25  ;;  %v5313_v44 = vpop.eup %4083 }
 0x1f4   : > { %v1243_v51 = vxor.u32 2147483648, %v5281_v22  ;;  %v1334_v42 = vxor.u32 2147483648, %v5290_v49  ;;  %v3759_v10 = vadd.s32 4294967294, %v1422_v18  ;;  %v519_v33 = vsel %vm517_vm10, %v518_v40, %v4896_v11  ;;  %v6975_v25 = vld [vmem:[#allocation10_spill] sm:$0xff] }
 0x1f5   : > { %vm1242_vm8 = vcmp.eq.s32.totalorder %v5235_v61, 0  ;;  %vm1245_vm13 = vcmp.eq.s32.totalorder %v5235_v61, 2  ;;  %v1443_v24 = vsel %vm5273_vm5, 0, %v1441_v2  ;;  %v1513_v27 = vmul.u32 %v5261_v47, %v1497_v32  ;;  %v6974_v32 = vld [vmem:[#allocation6_spill] sm:$0xff] }
 0x1f6   : > { %v1516_v43 = vadd.s32 1, %v5298_v17  ;;  %v723_v56 = vxor.u32 2147483648, %v5019_v3  ;;  %vm3760_vm9 = vcmp.lt.s32.totalorder %v3759_v10, 0  ;;  %v520_v46 = vsel %vm513_vm7, %v516_v41, %v519_v33 }
 0x1f7   : > { %vm722_vm14 = vcmp.eq.s32.totalorder %v4976_v16, 0  ;;  %v726_v11 = vxor.u32 2147483648, %v5009_v50  ;;  %v1425_v59 = vsel %vm3760_vm9, 0, %v3759_v10  ;;  %vm1515_vm11 = vc.u32 %v5311_v28, %v5297_v7 }
 0x1f8   : > { %vm721_vm3 = vcmp.lt.s32.totalorder %v4976_v16, 2  ;;  %v724_v47 = vsel %vm722_vm14, %v5009_v50, %v723_v56  ;;  %vm1252_vm6 = vcmp.lt.s32.totalorder %v4477_v55, 0  ;;  %v1426_v54 = vsub.s32 32, %v1425_v59  ;;  %v6977_v56 = vld [vmem:[#allocation13_spill] sm:$0xff] }
 0x1f9   : > { %v1430_v19 = vsub.s32 4294967266, %v1425_v59  ;;  %v1517_v15 = vsel %vm1515_vm11, %v1516_v43, %v5298_v17  ;;  %vm725_vm7 = vcmp.eq.s32.totalorder %v4976_v16, 2  ;;  %v521_v41 = vsel %vm510_vm4, nan, %v520_v46 }
 0x1fa   : > { %v1518_v63 = vadd.s32 %v1517_v15, %v1513_v27  ;;  %v727_v13 = vsel %vm725_vm7, %v726_v11, %v5019_v3  ;;  %v411_v36 = vxor.u32 2147483648, %v6972_v14  ;;  %vm406_vm2 = vweird.f32 %v6973_v9  ;;  %v6978_v15 = vld [vmem:[#allocation11_spill] sm:$0xff] }
 0x1fb   : > { %v1427_v50 = vshll.u32 %v5277_v20, %v1425_v59  ;;  %v1428_v40 = vshrl.u32 %v1410_v48, %v1426_v54  ;;  %v1431_v18 = vadd.s32 127, %v1430_v19  ;;  %v728_v2 = vsel %vm721_vm3, %v724_v47, %v727_v13 }
 0x1fc   : > { %vm614_vm10 = vweird.f32 %v6974_v32  ;;  %v1519_v17 = vadd.s32 536870912, %v1518_v63  ;;  %v729_v16 = vsel %vm718_vm12, nan, %v728_v2  ;;  %vm410_vm9 = vcmp.eq.s32.totalorder %v6975_v25, 0 }
 0x1fd   : > { %v414_v10 = vxor.u32 2147483648, %v6976_v12  ;;  %v1429_v3 = vor.u32 %v1428_v40, %v1427_v50  ;;  %v1432_v33 = vshll.u32 %v1431_v18, 23  ;;  %v3870_v27 = vpack.c.bf16 %v729_v16, %v521_v41 }
 0x1fe   : > { %vm413_vm4 = vcmp.eq.s32.totalorder %v6975_v25, 2  ;;  %v5348_v43 = vshrl.u32 %v1519_v17, 30  ;;  %v412_v20 = vsel %vm410_vm9, %v6976_v12, %v411_v36  ;;  %v619_v46 = vxor.u32 2147483648, %v6977_v56 }
 0x1ff   : > { %v415_v48 = vsel %vm413_vm4, %v414_v10, %v6972_v14  ;;  %v5356_v21 = vsel %vm1242_vm8, %v5269_v0, %v1243_v51  ;;  %v5361_v11 = vsel %vm1245_vm13, %v1246_v62, %v5281_v22  ;;  %v1433_v59 = vor.u32 4788187, %v1432_v33  ;;  %3871 = vmatprep.subr.bf16.mxu0 %v3870_v27  ;;  %3898 = vmatprep.subr.bf16.mxu1 %v3870_v27  ;;  %v6979_v51 = vld [vmem:[#allocation12_spill] sm:$0xff] }
 0x200   : > { %v5363_v47 = vadd.s32 3, %v1443_v24  ;;  %v1436_v54 = vcvt.s32.f32 %v1429_v3  ;;  %v1521_v19 = vshll.u32 %v5348_v43, 30  ;;  %vm409_vm12 = vcmp.lt.s32.totalorder %v6975_v25, 2 }
 0x201   : > { %vm618_vm14 = vcmp.eq.s32.totalorder %v6978_v15, 0  ;;  %v1434_v41 = vand.u32 2147483647, %v1433_v59  ;;  %v416_v0 = vsel %vm409_vm12, %v412_v20, %v415_v48  ;;  %v622_v14 = vxor.u32 2147483648, %v6979_v51  ;;  %v6985_v59 = vld [vmem:[#allocation14_spill] sm:$0xff] }
 0x202   : > { %v620_v13 = vsel %vm618_vm14, %v6979_v51, %v619_v46  ;;  %v5373_v22 = vsel %vm1252_vm6, %v1334_v42, %v5290_v49  ;;  %v5375_v62 = vsub.s32 %v1518_v63, %v1521_v19  ;;  %vm621_vm8 = vcmp.eq.s32.totalorder %v6978_v15, 2  ;;  %v6986_v19 = vld [vmem:[#allocation15_spill] sm:$0xff] }
 0x203   : > { %v931_v24 = vxor.u32 2147483648, %v5127_v37  ;;  %v1437_v36 = vmul.f32 %v1436_v54, %v1434_v41  ;;  %v1514_v50 = vadd.s32 %v5297_v7, %v5311_v28  ;;  %vm617_vm13 = vcmp.lt.s32.totalorder %v6978_v15, 2 }
 0x204   : > { %v623_v40 = vsel %vm621_vm8, %v622_v14, %v6977_v56  ;;  %v1524_v18 = vsub.s32 0, %v5375_v62  ;;  %v417_v49 = vsel %vm406_vm2, nan, %v416_v0  ;;  %vm930_vm11 = vcmp.eq.s32.totalorder %v5083_v8, 0  ;;  %v6984_v56 = vld [vmem:[#allocation17_spill] sm:$0xff]  ;;  %v6987_v14 = vld [vmem:[#allocation16_spill] sm:$0xff] }
 0x205   : > { %v624_v42 = vsel %vm617_vm13, %v620_v13, %v623_v40  ;;  %v1438_v63 = vxor.u32 2147483648, %v1437_v36  ;;  %v932_v17 = vsel %vm930_vm11, %v5122_v53, %v931_v24  ;;  %v934_v7 = vxor.u32 2147483648, %v5122_v53 }
 0x206   : > { %v625_v2 = vsel %vm614_vm10, nan, %v624_v42  ;;  %v3762_v28 = vmin.u32 %v1524_v18, %v5375_v62  ;;  %vm926_vm3 = vweird.f32 %v4378_v30  ;;  %vm933_vm7 = vcmp.eq.s32.totalorder %v5083_v8, 2 }
 0x207   : > { %v3872_v16 = vpack.c.bf16 %v625_v2, %v417_v49  ;;  %v1439_v9 = vsel %vm1356_vm15, %v1438_v63, %v1437_v36  ;;  %vm929_vm2 = vcmp.lt.s32.totalorder %v5083_v8, 2  ;;  %v935_v25 = vsel %vm933_vm7, %v934_v7, %v5127_v37 }
 0x208   : > { %v1139_v32 = vxor.u32 2147483648, %v5313_v44  ;;  %v1442_v53 = vsel %vm5273_vm5, %v4538_v57, %v1439_v9  ;;  %v1526_v12 = vclz %v3762_v28  ;;  %v936_v10 = vsel %vm929_vm2, %v932_v17, %v935_v25 }
 0x209   : > { %3873 = vmatpush1.bf16.msra.mxu0 %v3872_v16  ;;  %3901 = vmatpush1.bf16.msra.mxu1 %v3872_v16  ;;  %vm1138_vm10 = vcmp.eq.s32.totalorder %v5227_v29, 0  ;;  %v6980_v3 = vand.u32 2147483647, %v4477_v55  ;;  %4085 = vcosq.f32 %v1442_v53  ;;  %vm1134_vm15 = vweird.f32 %v4391_v45 }
 0x20a   : > { %v1140_v8 = vsel %vm1138_vm10, %v5266_v5, %v1139_v32  ;;  %v1142_v37 = vxor.u32 2147483648, %v5266_v5  ;;  %vm822_vm5 = vweird.f32 %v6983_v60  ;;  %vm1030_vm4 = vweird.f32 %v4386_v39 }
 0x20b   : > { %vm5405_vm9 = vcmp.le.f32.partialorder %v6980_v3, 0.7853982  ;;  %4087 = vsinq.f32 %v1442_v53  ;;  %v3763_v27 = vadd.s32 4294967294, %v1526_v12  ;;  %vm1137_vm12 = vcmp.lt.s32.totalorder %v5227_v29, 2 }
 0x20c   : > { %vm1141_vm14 = vcmp.eq.s32.totalorder %v5227_v29, 2  ;;  %v937_v20 = vsel %vm926_vm3, nan, %v936_v10  ;;  %v827_v46 = vxor.u32 2147483648, %v6984_v56  ;;  %v830_v54 = vxor.u32 2147483648, %v6985_v59 }
 0x20d   : > { %v1143_v48 = vsel %vm1141_vm14, %v1142_v37, %v5313_v44  ;;  %vm3764_vm8 = vcmp.lt.s32.totalorder %v3763_v27, 0  ;;  %vm826_vm13 = vcmp.eq.s32.totalorder %v6986_v19, 0  ;;  %vm829_vm11 = vcmp.eq.s32.totalorder %v6986_v19, 2 }
 0x20e   : > { %v1144_v5 = vsel %vm1137_vm12, %v1140_v8, %v1143_v48  ;;  %v1529_v15 = vsel %vm3764_vm8, 0, %v3763_v27  ;;  %v828_v29 = vsel %vm826_vm13, %v6985_v59, %v827_v46  ;;  %v831_v30 = vsel %vm829_vm11, %v830_v54, %v6984_v56 }
 0x20f   : > { %v1145_v41 = vsel %vm1134_vm15, nan, %v1144_v5  ;;  %v1530_v0 = vsub.s32 32, %v1529_v15  ;;  %v1534_v44 = vsub.s32 4294967266, %v1529_v15  ;;  %vm825_vm3 = vcmp.lt.s32.totalorder %v6986_v19, 2 }
 0x210   : > { %v3874_v51 = vpack.c.bf16 %v1145_v41, %v937_v20  ;;  %v1531_v13 = vshll.u32 %v5375_v62, %v1529_v15  ;;  %vm1034_vm7 = vcmp.eq.s32.totalorder %v6987_v14, 0  ;;  %v1035_v24 = vxor.u32 2147483648, %v5259_v23 }
 0x211   : > { %v1038_v36 = vxor.u32 2147483648, %v5254_v52  ;;  %v1532_v40 = vshrl.u32 %v1514_v50, %v1530_v0  ;;  %v1535_v45 = vadd.s32 127, %v1534_v44  ;;  %v832_v18 = vsel %vm825_vm3, %v828_v29, %v831_v30 }
 0x212   : > { %3875 = vmatprep.subr.bf16.mxu0 %v3874_v51  ;;  %3899 = vmatprep.subr.bf16.mxu1 %v3874_v51  ;;  %vm1037_vm2 = vcmp.eq.s32.totalorder %v6987_v14, 2  ;;  %v1448_v49 = vand.u32 3, %v5363_v47  ;;  %vm1033_vm10 = vcmp.lt.s32.totalorder %v6987_v14, 2  ;;  %v1036_v42 = vsel %vm1034_vm7, %v5254_v52, %v1035_v24  ;;  %v3785_v24 = vld [vmem:[%s4324_s28 + $0x8] sm:$0xff] }
 0x213   : > { %v1039_v62 = vsel %vm1037_vm2, %v1038_v36, %v5259_v23  ;;  %v1338_v63 = vsel %vm5405_vm9, %v4477_v55, %v5373_v22  ;;  %v1533_v50 = vor.u32 %v1532_v40, %v1531_v13  ;;  %v1536_v2 = vshll.u32 %v1535_v45, 23  ;;  %v4086_v7 = vpop.eup %4085 }
 0x214   : > { %v1040_v17 = vsel %vm1033_vm10, %v1036_v42, %v1039_v62  ;;  %vm1241_vm15 = vcmp.lt.s32.totalorder %v5235_v61, 2  ;;  %v833_v47 = vsel %vm822_vm5, nan, %v832_v18  ;;  %v1336_v23 = vsub.s32 4, %v5190_v58 }
 0x215   : > { %v1041_v28 = vsel %vm1030_vm4, nan, %v1040_v17  ;;  %v4088_v52 = vpop.eup %4087  ;;  %v1454_v16 = vxor.u32 2147483648, %v4086_v7  ;;  %v1537_v9 = vor.u32 4788187, %v1536_v2  ;;  %v1248_v22 = vsel %vm1241_vm15, %v5356_v21, %v5361_v11  ;;  %v182_v2 = vld [vmem:[%s6852_s2 + $0x20] sm:$0xff]  ;;  %v180_v17 = vld [vmem:[%s6852_s2 + $0x10] sm:$0xff] }
 0x216   : > { %v3876_v25 = vpack.c.bf16 %v1041_v28, %v833_v47  ;;  %4089 = vcosq.f32 %v1338_v63  ;;  %v1451_v32 = vxor.u32 2147483648, %v4088_v52  ;;  %vm1453_vm12 = vcmp.eq.s32.totalorder %v1448_v49, 2  ;;  %v184_v47 = vld [vmem:[%s6852_s2 + $0x30] sm:$0xff]  ;;  %v4161_v28 = vld [vmem:[%s6851_s1] sm:$0xff] }
 0x217   : > { %vm1450_vm14 = vcmp.eq.s32.totalorder %v1448_v49, 0  ;;  %v1455_v61 = vsel %vm1453_vm12, %v1454_v16, %v4088_v52  ;;  %v1538_v53 = vand.u32 2147483647, %v1537_v9  ;;  %v1540_v12 = vcvt.s32.f32 %v1533_v50  ;;  %v179_v50 = vld [vmem:[%s6852_s2 + $0x8] sm:$0xff]  ;;  %v185_v52 = vld [vmem:[%s6852_s2 + $0x38] sm:$0xff]  ;;  %v4163_v16 = vld [vmem:[%s6851_s1 + $0x10] sm:$0xff] }
 0x218   : > { %3877 = vmatpush1.bf16.msra.mxu0 %v3876_v25  ;;  %3902 = vmatpush1.bf16.msra.mxu1 %v3876_v25  ;;  %vm1238_vm5 = vweird.f32 %v4413_v26  ;;  %4091 = vsinq.f32 %v1338_v63  ;;  %vm1449_vm4 = vcmp.lt.s32.totalorder %v1448_v49, 2  ;;  %v1452_v39 = vsel %vm1450_vm14, %v4086_v7, %v1451_v32  ;;  %v183_v7 = vld [vmem:[%s6852_s2 + $0x28] sm:$0xff]  ;;  %v4164_v9 = vld [vmem:[%s6851_s1 + $0x18] sm:$0xff]  ;;  %v4165_v25 = vld [vmem:[%s6851_s1 + $0x20] sm:$0xff] }
 0x219   : > { %vm1446_vm8 = vweird.f32 %v4538_v57  ;;  %v1456_v10 = vsel %vm1449_vm4, %v1452_v39, %v1455_v61  ;;  %v1541_v3 = vmul.f32 %v1540_v12, %v1538_v53  ;;  %v1544_v21 = vsub.s32 4, %v5348_v43  ;;  %v5549_v53 = vld [vmem:[%s4324_s28] sm:$0xff] }
 0x21a   : > { %v1249_v11 = vsel %vm1238_vm5, nan, %v1248_v22  ;;  %v1337_v8 = vsel %vm1252_vm6, %v1336_v23, %v5190_v58  ;;  %v1457_v37 = vsel %vm1446_vm8, nan, %v1456_v10  ;;  %vm1460_vm13 = vcmp.lt.s32.totalorder %v4593_v1, 0  ;;  %v4162_v23 = vld [vmem:[%s6851_s1 + $0x8] sm:$0xff] }
 0x21b   : > { %v3881_v60 = vpack.c.bf16 %v1457_v37, %v1249_v11  ;;  %v1542_v27 = vxor.u32 2147483648, %v1541_v3  ;;  %v1339_v26 = vsel %vm5405_vm9, 0, %v1337_v8  ;;  %v6988_v20 = vand.u32 2147483647, %v4593_v1  ;;  %v4166_v22 = vld [vmem:[%s6851_s1 + $0x28] sm:$0x1] }
 0x21c   : > { %v1545_v48 = vsel %vm1460_vm13, %v1544_v21, %v5348_v43  ;;  %v1343_v59 = vadd.s32 3, %v1339_v26  ;;  %vm1587_vm10 = vcmask 1040384   ;;  %vm1342_vm12 = vweird.f32 %v4477_v55  ;;  %v178_v55 = vld [vmem:[%s6852_s2] sm:$0xff] }
 0x21d   : > { %vm1459_vm11 = vcmp.le.f32.partialorder %v6988_v20, 0.7853982  ;;  %v1543_v57 = vsel %vm1460_vm13, %v1542_v27, %v1541_v3  ;;  %vm1550_vm14 = vweird.f32 %v4593_v1  ;;  %vm4248_vm5 = vmmov 1  }
 0x21e   : > { %v1546_v56 = vsel %vm1459_vm11, %v4593_v1, %v1543_v57  ;;  %v1547_v58 = vsel %vm1459_vm11, 0, %v1545_v48  ;;  %v1344_v19 = vand.u32 3, %v1343_v59  ;;  %vm5465_vm4 = vmpackc.low %vm1587_vm10, %vm4248_vm5  ;;  %v6989_v49 = vmov 0  ;;  %v181_v1 = vld [vmem:[%s6852_s2 + $0x18] sm:$0xff] }
 0x21f   : > { %4093 = vcosq.f32 %v1546_v56  ;;  %v1551_v5 = vadd.s32 3, %v1547_v58  ;;  %v6990_v49 = vsel %vm5465_vm4, 4294967295, %v6989_v49  ;;  %v1932_v62 = vcombine.high %v3785_v24, %v3785_v24 }
 0x220   : > { %v4090_v46 = vpop.eup %4089  ;;  %4095 = vsinq.f32 %v1546_v56  ;;  %vm1346_vm6 = vcmp.eq.s32.totalorder %v1344_v19, 0  ;;  %vm1349_vm9 = vcmp.eq.s32.totalorder %v1344_v19, 2  ;;  %vm1345_vm3 = vcmp.lt.s32.totalorder %v1344_v19, 2  ;;  %6991 = vst [vmem:[#allocation9_spill] sm:$0xff] %v6990_v49 }
 0x221   : > { %v1350_v41 = vxor.u32 2147483648, %v4090_v46  ;;  %v1552_v33 = vand.u32 3, %v1551_v5  ;;  %vm1562_vm8 = vcmask 334848   ;;  %v6992_v63 = vmov 0.0  }
 0x222   : > { %v4092_v54 = vpop.eup %4091  ;;  %v1711_v32 = vlaneseq  ;;  %vm1733_vm13 = vcmp.eq.f32.partialorder %v5549_v53, 1.0  ;;  %vm1759_vm11 = vcmp.eq.f32.partialorder %v5549_v53, 2.0 }
 0x223   : > { %v1347_v15 = vxor.u32 2147483648, %v4092_v54  ;;  %v1351_v0 = vsel %vm1349_vm9, %v1350_v41, %v4092_v54  ;;  %vm1554_vm7 = vcmp.eq.s32.totalorder %v1552_v33, 0  ;;  %vm1557_vm2 = vcmp.eq.s32.totalorder %v1552_v33, 2 }
 0x224   : > { %vm1553_vm15 = vcmp.lt.s32.totalorder %v1552_v33, 2  ;;  %v1712_v61 = vshrl.u32 %v1711_v32, 7  ;;  %v3776_v3 = vsel %vm1733_vm13, 1.0, %v6992_v63  ;;  %v3777_v37 = vsel %vm1759_vm11, 1.0, %v6992_v63 }
 0x225   : > { %v1348_v30 = vsel %vm1346_vm6, %v4090_v46, %v1347_v15  ;;  %vm1811_vm6 = vcmp.eq.f32.partialorder %v5549_v53, 4.0  ;;  %vm1837_vm9 = vcmp.eq.f32.partialorder %v5549_v53, 5.0 }
 0x226   : > { %v1352_v13 = vsel %vm1345_vm3, %v1348_v30, %v1351_v0  ;;  %v5553_v12 = vsub.s32 3, %v1712_v61  ;;  %v5555_v39 = vsub.s32 7, %v1712_v61  ;;  %v3779_v46 = vsel %vm1811_vm6, 1.0, %v6992_v63 }
 0x227   : > { %v1353_v45 = vsel %vm1342_vm12, nan, %v1352_v13  ;;  %v3780_v33 = vsel %vm1837_vm9, 1.0, %v6992_v63  ;;  %vm1863_vm3 = vcmp.eq.f32.partialorder %v5549_v53, 6.0  ;;  %vm1889_vm9 = vcmp.eq.f32.partialorder %v5549_v53, 7.0 }
 0x228   : > { %6993 = vst [vmem:[#allocation5_spill] sm:$0xff] %v5553_v12  ;;  %6994 = vst [vmem:[#allocation6_spill] sm:$0xff] %v5555_v39  ;;  %v1740_v8 = vrot.slane %v3776_v3, %v5553_v12  ;;  %v1744_v27 = vrot.slane %v3776_v3, %v5555_v39  ;;  %v1766_v20 = vrot.slane %v3777_v37, %v5553_v12 }
 0x229   : > { %v4094_v29 = vpop.eup %4093  ;;  %v1770_v57 = vrot.slane %v3777_v37, %v5555_v39  ;;  %v1822_v13 = vrot.slane %v3779_v46, %v5555_v39 }
 0x22a   : > { %v4096_v43 = vpop.eup %4095  ;;  %v1558_v44 = vxor.u32 2147483648, %v4094_v29  ;;  %v1750_v5 = vrot.slane %v1740_v8, %v5553_v12  ;;  %v1754_v15 = vrot.slane %v1744_v27, %v5553_v12  ;;  %v1776_v0 = vrot.slane %v1766_v20, %v5553_v12 }
 0x22b   : > { %v1555_v51 = vxor.u32 2147483648, %v4096_v43 }
 0x22c   : > { %v1559_v14 = vsel %vm1557_vm2, %v1558_v44, %v4096_v43  ;;  %v1780_v43 = vrot.slane %v1770_v57, %v5553_v12 }
 0x22d   : > { %v1556_v36 = vsel %vm1554_vm7, %v4094_v29, %v1555_v51  ;;  %v1818_v29 = vrot.slane %v3779_v46, %v5553_v12 }
 0x22e   : > { %v1560_v40 = vsel %vm1553_vm15, %v1556_v36, %v1559_v14 }
 0x22f   : > { %v1561_v18 = vsel %vm1550_vm14, nan, %v1560_v40 }
 0x230   : > { %v3878_v42 = vpack.c.bf16 %v1561_v18, %v1353_v45  ;;  %v1844_v45 = vrot.slane %v3780_v33, %v5553_v12  ;;  %v3781_v18 = vsel %vm1863_vm3, 1.0, %v6992_v63 }
 0x232   : > { %3880 = vmatprep.subr.msk.bf16.mxu0 %vm5465_vm4, %v3878_v42  ;;  %3900 = vmatprep.subr.msk.bf16.mxu1 %vm5465_vm4, %v3878_v42 }
 0x233   : > { %3883 = vmatpush1.bf16.msk.msra.mxu0 %vm5465_vm4, %v3881_v60  ;;  %3903 = vmatpush1.bf16.msk.msra.mxu1 %vm5465_vm4, %v3881_v60 }
 0x234   : > { %3786 = vmatprep.subr.msk.mxu0 %vm208_vm0, %v1932_v62 }
 0x236   : > { %3767 = vmatmul.mubr.msk.f32.vlgmr.msra.gmra.mrb[12].mxu0 %vm1562_vm8, %v178_v55  ;;  %3770 = vmatmul.mubr.msk.f32.vlgmr.msra.gmra.mrb[0].mxu1 %vm1562_vm8, %v181_v1  ;;  %v1848_v1 = vrot.slane %v3780_v33, %v5555_v39 }
 0x237   : > { %1664 = vmatprep.mubr.f32.mxu0 %v6992_v63  ;;  %1682 = vmatprep.mubr.f32.mxu1 %v6992_v63 }
 0x238   : > { %3787 = vmatpush1.msk.msra.mxu0 %vm208_vm0, %v3785_v24  ;;  %vm1707_vm0 = vcmp.eq.f32.partialorder %v5549_v53, 0.0 }
 0x239   : > { %v3775_v10 = vsel %vm1707_vm0, 1.0, %v6992_v63 }
 0x23a   : > { %3768 = vmatmul.mubr.msk.f32.gmra.mrb[14].mxu0 %vm1562_vm8, %v179_v50  ;;  %3771 = vmatmul.mubr.msk.f32.gmra.mrb[2].mxu1 %vm1562_vm8, %v182_v2  ;;  %v1714_v21 = vrot.slane %v3775_v10, %v5553_v12  ;;  %v1718_v11 = vrot.slane %v3775_v10, %v5555_v39  ;;  %v1828_v2 = vrot.slane %v1818_v29, %v5553_v12 }
 0x23b   : > { %1670 = vmatprep.mubr.f32.mxu0 %v6992_v63  ;;  %1688 = vmatprep.mubr.f32.mxu1 %v6992_v63  ;;  %v1858_v10 = vrot.slane %v1848_v1, %v5553_v12 }
 0x23c   : > { %v1724_v59 = vrot.slane %v1714_v21, %v5553_v12  ;;  %v1728_v54 = vrot.slane %v1718_v11, %v5553_v12 }
 0x23e   : > { %3769 = vmatmul.mubr.msk.f32.gmra.mrb[16].mxu0 %vm1562_vm8, %v180_v17  ;;  %3772 = vmatmul.mubr.msk.f32.gmra.mrb[4].mxu1 %vm1562_vm8, %v183_v7 }
 0x23f   : > { %2001 = vmatprep.mubr.f32.mxu0 %v6992_v63  ;;  %1694 = vmatprep.mubr.f32.mxu1 %v6992_v63 }
 0x242   : > { %3788 = vmatmul.mubr.msk.f32.vlgmr.msra.gmra.mrb[18].mxu0 %vm189_vm1, %v4161_v28  ;;  %3773 = vmatmul.mubr.msk.f32.gmra.mrb[6].mxu1 %vm1562_vm8, %v184_v47  ;;  %v1832_v47 = vrot.slane %v1822_v13, %v5553_v12 }
 0x243   : > { %2007 = vmatprep.mubr.f32.mxu0 %v6992_v63  ;;  %1700 = vmatprep.mubr.f32.mxu1 %v6992_v63 }
 0x246   : > { %3789 = vmatmul.mubr.msk.f32.gmra.mrb[20].mxu0 %vm189_vm1, %v4162_v23  ;;  %3774 = vmatmul.mubr.msk.f32.gmra.mrb[8].mxu1 %vm1562_vm8, %v185_v52  ;;  %v1870_v52 = vrot.slane %v3781_v18, %v5553_v12 }
 0x247   : > { %2013 = vmatprep.mubr.f32.mxu0 %v6992_v63  ;;  %3356 = vmatprep.mubr.f32.mxu1 %v6992_v63 }
 0x248   : > { %v1880_v27 = vrot.slane %v1870_v52, %v5553_v12 }
 0x24a   : > { %3790 = vmatmul.mubr.msk.f32.gmra.mrb[22].mxu0 %vm189_vm1, %v4163_v16 }
 0x24b   : > { %2019 = vmatprep.mubr.f32.mxu0 %v6992_v63 }
 0x24e   : > { %3791 = vmatmul.mubr.msk.f32.gmra.mrb[24].mxu0 %vm189_vm1, %v4164_v9 }
 0x24f   : > { %2025 = vmatprep.mubr.f32.mxu0 %v6992_v63 }
 0x252   : > { %3792 = vmatmul.mubr.msk.f32.gmra.mrb[26].mxu0 %vm189_vm1, %v4165_v25  ;;  %v1854_v25 = vrot.slane %v1844_v45, %v5553_v12 }
 0x253   : > { %2031 = vmatprep.mubr.f32.mxu0 %v6992_v63 }
 0x256   : > { %3793 = vmatmul.mubr.msk.f32.gmra.mrb[28].mxu0 %vm189_vm1, %v4166_v22  ;;  %vm1785_vm1 = vcmp.eq.f32.partialorder %v5549_v53, 3.0 }
 0x257   : > { %v3778_v60 = vsel %vm1785_vm1, 1.0, %v6992_v63 }
 0x258   : > { %v1792_v56 = vrot.slane %v3778_v60, %v5553_v12  ;;  %v1796_v41 = vrot.slane %v3778_v60, %v5555_v39 }
 0x25a   : > { %v1802_v44 = vrot.slane %v1792_v56, %v5553_v12  ;;  %v1806_v55 = vrot.slane %v1796_v41, %v5553_v12 }
 0x309   : > { %v1660_v26 = vpop.f32.mrb[12].mxu0  ;;  %v1678_v48 = vpop.f32.mrb[0].mxu1 }
 0x30a   : > { %v1662_v58 = vpop.f32.mrb[13].mxu0  ;;  %v1680_v19 = vpop.f32.mrb[1].mxu1  ;;  %v1729_v14 = vmul.f32 %v1724_v59, %v1660_v26  ;;  %v1807_v9 = vmul.f32 %v1802_v44, %v1678_v48  ;;  %v1874_v26 = vrot.slane %v3781_v18, %v5555_v39 }
 0x30b   : > { %v1730_v42 = vmul.f32 %v1728_v54, %v1662_v58  ;;  %v1808_v61 = vmul.f32 %v1806_v55, %v1680_v19 }
 0x30c   : > { %v1884_v13 = vrot.slane %v1874_v26, %v5553_v12 }
 0x30d   : > { %v1666_v30 = vpop.f32.mrb[14].mxu0  ;;  %v1684_v51 = vpop.f32.mrb[2].mxu1 }
 0x30e   : > { %v1755_v24 = vmul.f32 %v1750_v5, %v1666_v30  ;;  %v1668_v36 = vpop.f32.mrb[15].mxu0  ;;  %v1686_v40 = vpop.f32.mrb[3].mxu1  ;;  %v1833_v21 = vmul.f32 %v1828_v2, %v1684_v51 }
 0x30f   : > { %v1756_v62 = vmul.f32 %v1754_v15, %v1668_v36  ;;  %v1834_v37 = vmul.f32 %v1832_v47, %v1686_v40 }
 0x310   : > { %v1757_v50 = vadd.f32 %v1755_v24, %v1729_v14 }
 0x311   : > { %v1758_v17 = vadd.f32 %v1756_v62, %v1730_v42  ;;  %v1672_v7 = vpop.f32.mrb[16].mxu0  ;;  %v1690_v28 = vpop.f32.mrb[4].mxu1 }
 0x312   : > { %v1781_v23 = vmul.f32 %v1776_v0, %v1672_v7  ;;  %v1674_v16 = vpop.f32.mrb[17].mxu0  ;;  %v1692_v22 = vpop.f32.mrb[5].mxu1  ;;  %v1859_v46 = vmul.f32 %v1854_v25, %v1690_v28 }
 0x313   : > { %v1782_v32 = vmul.f32 %v1780_v43, %v1674_v16  ;;  %v1860_v5 = vmul.f32 %v1858_v10, %v1692_v22 }
 0x314   : > { %v1783_v3 = vadd.f32 %v1781_v23, %v1757_v50 }
 0x315   : > { %v1784_v11 = vadd.f32 %v1782_v32, %v1758_v17  ;;  %v5594_v8 = vpop.f32.mrb[18].mxu0  ;;  %v1696_v60 = vpop.f32.mrb[6].mxu1 }
 0x316   : > { %6995 = vst [vmem:[#allocation10_spill] sm:$0xff] %v5594_v8  ;;  %v1809_v20 = vadd.f32 %v1807_v9, %v1783_v3  ;;  %v2038_v57 = vand.u32 2147483647, %v5594_v8  ;;  %v2041_v48 = vand.u32 2139095040, %v5594_v8  ;;  %v5600_v56 = vpop.f32.mrb[19].mxu0  ;;  %v1698_v59 = vpop.f32.mrb[7].mxu1  ;;  %v1885_v51 = vmul.f32 %v1880_v27, %v1696_v60 }
 0x317   : > { %v1810_v58 = vadd.f32 %v1808_v61, %v1784_v11  ;;  %v2142_v54 = vand.u32 2147483647, %v5600_v56  ;;  %v2145_v29 = vand.u32 2139095040, %v5600_v56  ;;  %v1886_v17 = vmul.f32 %v1884_v13, %v1698_v59 }
 0x318   : > { %v1835_v19 = vadd.f32 %v1833_v21, %v1809_v20  ;;  %v2042_v15 = vshrl.u32 %v2041_v48, 23  ;;  %v2045_v41 = vand.u32 8388607, %v2038_v57 }
 0x319   : > { %v1836_v33 = vadd.f32 %v1834_v37, %v1810_v58  ;;  %v2149_v30 = vand.u32 8388607, %v2142_v54  ;;  %v5608_v0 = vpop.f32.mrb[20].mxu0  ;;  %v5613_v24 = vpop.f32.mrb[8].mxu1  ;;  %v2146_v36 = vshrl.u32 %v2145_v29, 23 }
 0x31a   : > { %6996 = vst [vmem:[#allocation8_spill] sm:$0xff] %v5608_v0  ;;  %v3794_v43 = vadd.s32 4294967169, %v2042_v15  ;;  %v1861_v44 = vadd.f32 %v1859_v46, %v1835_v19  ;;  %v5611_v14 = vpop.f32.mrb[21].mxu0  ;;  %v5615_v45 = vpop.f32.mrb[9].mxu1  ;;  %v2046_v62 = vor.u32 8388608, %v2045_v41  ;;  %v2249_v50 = vand.u32 2139095040, %v5608_v0 }
 0x31b   : > { %v1862_v40 = vadd.f32 %v1860_v5, %v1836_v33  ;;  %v3798_v55 = vadd.s32 4294967169, %v2146_v36  ;;  %v2150_v1 = vor.u32 8388608, %v2149_v30 }
 0x31c   : > { %v2048_v18 = vadd.s32 1, %v3794_v43  ;;  %v5617_v42 = vadd.f32 %v1885_v51, %v1861_v44  ;;  %v5626_v9 = vshll.u32 %v2046_v62, 8  ;;  %v2250_v22 = vshrl.u32 %v2249_v50, 23 }
 0x31d   : > { %v5620_v2 = vpop.f32.mrb[22].mxu0  ;;  %v2152_v28 = vadd.s32 1, %v3798_v55  ;;  %v5624_v16 = vadd.f32 %v1886_v17, %v1862_v40  ;;  %v5628_v25 = vshll.u32 %v2150_v1, 8 }
 0x31e   : > { %6997 = vst [vmem:[#allocation13_spill] sm:$0xff] %v5620_v2  ;;  %vm2049_vm7 = vcmp.gt.s32.totalorder %v2048_v18, 0  ;;  %v5622_v7 = vpop.f32.mrb[23].mxu0  ;;  %v3802_v50 = vadd.s32 4294967169, %v2250_v22 }
 0x31f   : > { %6998 = vst [vmem:[#allocation11_spill] sm:$0xff] %v5622_v7  ;;  %v2050_v47 = vsel %vm2049_vm7, %v2048_v18, 0  ;;  %vm2153_vm2 = vcmp.gt.s32.totalorder %v2152_v28, 0 }
 0x320   : > { %v2051_v52 = vshrl.u32 %v2050_v47, 5  ;;  %v2052_v23 = vand.u32 31, %v2050_v47  ;;  %v2154_v15 = vsel %vm2153_vm2, %v2152_v28, 0 }
 0x321   : > { %v5630_v32 = vpop.f32.mrb[24].mxu0  ;;  %v2156_v29 = vand.u32 31, %v2154_v15  ;;  %v2155_v28 = vshrl.u32 %v2154_v15, 5 }
 0x322   : > { %v2053_v61 = vsub.s32 32, %v2052_v23  ;;  %v2055_v10 = vshll.u32 %v6945_v34, %v2052_v23  ;;  %v2058_v3 = vshll.u32 %v6951_v6, %v2052_v23  ;;  %v5634_v21 = vpop.f32.mrb[25].mxu0  ;;  %v2061_v11 = vshll.u32 %v6939_v35, %v2052_v23 }
 0x323   : > { %v2064_v37 = vshll.u32 %v6952_v4, %v2052_v23  ;;  %v2067_v60 = vshll.u32 %v6953_v38, %v2052_v23  ;;  %vm2070_vm10 = vcmp.lt.s32.totalorder %v2051_v52, 1  ;;  %vm2071_vm15 = vcmp.lt.s32.totalorder %v2051_v52, 2 }
 0x324   : > { %v2056_v27 = vshrl.u32 %v6951_v6, %v2053_v61  ;;  %v2059_v26 = vshrl.u32 %v6939_v35, %v2053_v61  ;;  %v2062_v20 = vshrl.u32 %v6952_v4, %v2053_v61  ;;  %v2054_v48 = vshrl.u32 %v6945_v34, %v2053_v61 }
 0x325   : > { %v2065_v46 = vshrl.u32 %v6953_v38, %v2053_v61  ;;  %v2068_v59 = vshrl.u32 %v6954_v31, %v2053_v61  ;;  %vm2072_vm12 = vcmp.lt.s32.totalorder %v2051_v52, 3  ;;  %vm2073_vm14 = vcmp.lt.s32.totalorder %v2051_v52, 4 }
 0x326   : > { %v2057_v58 = vor.u32 %v2056_v27, %v2055_v10  ;;  %v2060_v5 = vor.u32 %v2059_v26, %v2058_v3  ;;  %v2063_v19 = vor.u32 %v2062_v20, %v2061_v11  ;;  %v2157_v18 = vsub.s32 32, %v2156_v29 }
 0x327   : > { %v2066_v41 = vor.u32 %v2065_v46, %v2064_v37  ;;  %v2069_v33 = vor.u32 %v2068_v59, %v2067_v60  ;;  %v2159_v23 = vshll.u32 %v6945_v34, %v2156_v29  ;;  %v2162_v60 = vshll.u32 %v6951_v6, %v2156_v29 }
 0x328   : > { %v2074_v30 = vsel %vm2070_vm10, %v2054_v48, %v2057_v58  ;;  %v2075_v43 = vsel %vm2073_vm14, %v2063_v19, 2102212464  ;;  %v2078_v44 = vsel %vm2070_vm10, %v2057_v58, %v2060_v5  ;;  %v2082_v51 = vsel %vm2070_vm10, %v2060_v5, %v2063_v19 }
 0x329   : > { %v2076_v13 = vsel %vm2072_vm12, %v2060_v5, %v2075_v43  ;;  %v2079_v36 = vsel %vm2073_vm14, %v2066_v41, 920167782  ;;  %v2083_v40 = vsel %vm2073_vm14, %v2069_v33, 1326507024  ;;  %v2160_v22 = vshrl.u32 %v6951_v6, %v2157_v18 }
 0x32a   : > { %v2077_v62 = vsel %vm2071_vm15, %v2074_v30, %v2076_v13  ;;  %v2080_v55 = vsel %vm2072_vm12, %v2063_v19, %v2079_v36  ;;  %v2084_v1 = vsel %vm2072_vm12, %v2066_v41, %v2083_v40  ;;  %v2163_v52 = vshrl.u32 %v6939_v35, %v2157_v18  ;;  %v5679_v41 = vpop.f32.mrb[26].mxu0 }
 0x32b   : > { %v2081_v17 = vsel %vm2071_vm15, %v2078_v44, %v2080_v55  ;;  %v2085_v47 = vsel %vm2071_vm15, %v2082_v51, %v2084_v1  ;;  %v2093_v37 = vmul.u32 %v5626_v9, %v2077_v62  ;;  %v2165_v27 = vshll.u32 %v6939_v35, %v2156_v29 }
 0x32c   : > { %v5657_v61 = vmul.u32.u64.low %v5626_v9, %v2085_v47  ;;  %v5658_v10 = vmul.u32.u64.high %v5626_v9, %v2085_v47, %v5657_v61  ;;  %v5661_v3 = vmul.u32.u64.low %v5626_v9, %v2081_v17  ;;  %v5662_v11 = vmul.u32.u64.high %v5626_v9, %v2081_v17, %v5661_v3 }
 0x32d   : > { %v2166_v26 = vshrl.u32 %v6952_v4, %v2157_v18  ;;  %v2168_v20 = vshll.u32 %v6952_v4, %v2156_v29  ;;  %v2169_v48 = vshrl.u32 %v6953_v38, %v2157_v18  ;;  %v2161_v46 = vor.u32 %v2160_v22, %v2159_v23 }
 0x32e   : > { %v2164_v59 = vor.u32 %v2163_v52, %v2162_v60  ;;  %v2171_v58 = vshll.u32 %v6953_v38, %v2156_v29  ;;  %v2172_v9 = vshrl.u32 %v6954_v31, %v2157_v18  ;;  %vm2095_vm5 = vc.u32 %v5658_v10, %v5661_v3 }
 0x32f   : > { %v2096_v5 = vadd.s32 1, %v5662_v11  ;;  %v2158_v19 = vshrl.u32 %v6945_v34, %v2157_v18  ;;  %v2167_v15 = vor.u32 %v2166_v26, %v2165_v27  ;;  %v2170_v33 = vor.u32 %v2169_v48, %v2168_v20 }
 0x330   : > { %v2173_v30 = vor.u32 %v2172_v9, %v2171_v58  ;;  %vm2174_vm0 = vcmp.lt.s32.totalorder %v2155_v28, 1  ;;  %vm2175_vm13 = vcmp.lt.s32.totalorder %v2155_v28, 2  ;;  %vm2176_vm11 = vcmp.lt.s32.totalorder %v2155_v28, 3 }
 0x331   : > { %v2097_v43 = vsel %vm2095_vm5, %v2096_v5, %v5662_v11  ;;  %vm2177_vm1 = vcmp.lt.s32.totalorder %v2155_v28, 4  ;;  %v2182_v29 = vsel %vm2174_vm0, %v2161_v46, %v2164_v59  ;;  %v2186_v36 = vsel %vm2174_vm0, %v2164_v59, %v2167_v15 }
 0x332   : > { %v2098_v44 = vadd.s32 %v2097_v43, %v2093_v37  ;;  %v2179_v51 = vsel %vm2177_vm1, %v2167_v15, 2102212464  ;;  %v2183_v13 = vsel %vm2177_vm1, %v2170_v33, 920167782  ;;  %v2178_v40 = vsel %vm2174_vm0, %v2158_v19, %v2161_v46 }
 0x333   : > { %v2184_v62 = vsel %vm2176_vm11, %v2167_v15, %v2183_v13  ;;  %v2187_v55 = vsel %vm2177_vm1, %v2173_v30, 1326507024  ;;  %v2256_v18 = vadd.s32 1, %v3802_v50  ;;  %v2180_v17 = vsel %vm2176_vm11, %v2164_v59, %v2179_v51 }
 0x334   : > { %v2099_v1 = vadd.s32 536870912, %v2098_v44  ;;  %v2185_v47 = vsel %vm2175_vm13, %v2182_v29, %v2184_v62  ;;  %v2188_v23 = vsel %vm2176_vm11, %v2170_v33, %v2187_v55  ;;  %v2181_v50 = vsel %vm2175_vm13, %v2178_v40, %v2180_v17 }
 0x335   : > { %v2189_v61 = vsel %vm2175_vm13, %v2186_v36, %v2188_v23  ;;  %v5685_v11 = vmul.u32.u64.low %v5628_v25, %v2185_v47  ;;  %v5686_v22 = vmul.u32.u64.high %v5628_v25, %v2185_v47, %v5685_v11  ;;  %vm2257_vm6 = vcmp.gt.s32.totalorder %v2256_v18, 0 }
 0x336   : > { %v5689_v37 = vshrl.u32 %v2099_v1, 30  ;;  %v5692_v60 = vmul.u32.u64.low %v5628_v25, %v2189_v61  ;;  %v5693_v52 = vmul.u32.u64.high %v5628_v25, %v2189_v61, %v5692_v60  ;;  %v2258_v27 = vsel %vm2257_vm6, %v2256_v18, 0  ;;  %v5722_v61 = vpop.f32.mrb[27].mxu0 }
 0x337   : > { %v6892_v20 = vand.u32 2147483647, %v5608_v0  ;;  %v2260_v48 = vand.u32 31, %v2258_v27  ;;  %v2200_v46 = vadd.s32 1, %v5686_v22  ;;  %v2197_v58 = vmul.u32 %v5628_v25, %v2181_v50  ;;  %6999 = vst [vmem:[#allocation12_spill] sm:$0xff] %v5722_v61 }
 0x338   : > { %v2101_v26 = vshll.u32 %v5689_v37, 30  ;;  %vm2199_vm3 = vc.u32 %v5693_v52, %v5685_v11  ;;  %v3782_v5 = vsel %vm1889_vm9, 1.0, %v6992_v63  ;;  %v2259_v55 = vshrl.u32 %v2258_v27, 5 }
 0x339   : > { %v2201_v28 = vsel %vm2199_vm3, %v2200_v46, %v5686_v22  ;;  %v2261_v9 = vsub.s32 32, %v2260_v48  ;;  %v2253_v15 = vand.u32 8388607, %v6892_v20  ;;  %v2263_v25 = vshll.u32 %v6945_v34, %v2260_v48 }
 0x33a   : > { %v5700_v59 = vsub.s32 %v2098_v44, %v2101_v26  ;;  %v2202_v19 = vadd.s32 %v2201_v28, %v2197_v58  ;;  %v1896_v29 = vrot.slane %v3782_v5, %v5553_v12  ;;  %v2266_v44 = vshll.u32 %v6951_v6, %v2260_v48 }
 0x33b   : > { %v2264_v53 = vshrl.u32 %v6951_v6, %v2261_v9  ;;  %v2267_v33 = vshrl.u32 %v6939_v35, %v2261_v9  ;;  %v2270_v51 = vshrl.u32 %v6952_v4, %v2261_v9  ;;  %v2272_v13 = vshll.u32 %v6952_v4, %v2260_v48 }
 0x33c   : > { %v2104_v30 = vsub.s32 0, %v5700_v59  ;;  %v2203_v43 = vadd.s32 536870912, %v2202_v19  ;;  %v2273_v36 = vshrl.u32 %v6953_v38, %v2261_v9  ;;  %v2254_v62 = vor.u32 8388608, %v2253_v15 }
 0x33d   : > { %v2269_v18 = vshll.u32 %v6939_v35, %v2260_v48  ;;  %v2265_v1 = vor.u32 %v2264_v53, %v2263_v25  ;;  %v2268_v17 = vor.u32 %v2267_v33, %v2266_v44  ;;  %v2276_v23 = vshrl.u32 %v6954_v31, %v2261_v9 }
 0x33e   : > { %v5718_v40 = vshrl.u32 %v2203_v43, 30  ;;  %v2274_v47 = vor.u32 %v2273_v36, %v2272_v13  ;;  %v3795_v22 = vmin.u32 %v2104_v30, %v5700_v59  ;;  %v2353_v50 = vand.u32 2139095040, %v5611_v14 }
 0x33f   : > { %v2271_v26 = vor.u32 %v2270_v51, %v2269_v18  ;;  %v2275_v46 = vshll.u32 %v6953_v38, %v2260_v48  ;;  %v1906_v27 = vrot.slane %v1896_v29, %v5553_v12  ;;  %vm2278_vm7 = vcmp.lt.s32.totalorder %v2259_v55, 1 }
 0x340   : > { %v2205_v60 = vshll.u32 %v5718_v40, 30  ;;  %vm2281_vm2 = vcmp.lt.s32.totalorder %v2259_v55, 4  ;;  %v1900_v28 = vrot.slane %v3782_v5, %v5555_v39  ;;  %v2286_v53 = vsel %vm2278_vm7, %v2265_v1, %v2268_v17 }
 0x341   : > { %v2277_v15 = vor.u32 %v2276_v23, %v2275_v46  ;;  %v2287_v33 = vsel %vm2281_vm2, %v2274_v47, 920167782  ;;  %v2294_v30 = vshll.u32 %v2254_v62, 8  ;;  %v2106_v43 = vclz %v3795_v22 }
 0x342   : > { %v5729_v58 = vsub.s32 %v2202_v19, %v2205_v60  ;;  %vm2280_vm10 = vcmp.lt.s32.totalorder %v2259_v55, 3  ;;  %v2354_v44 = vshrl.u32 %v2353_v50, 23  ;;  %v2262_v48 = vshrl.u32 %v6945_v34, %v2261_v9 }
 0x343   : > { %vm2279_vm15 = vcmp.lt.s32.totalorder %v2259_v55, 2  ;;  %v2288_v19 = vsel %vm2280_vm10, %v2271_v26, %v2287_v33  ;;  %v1911_v29 = vmul.f32 %v1906_v27, %v5613_v24  ;;  %v2283_v51 = vsel %vm2281_vm2, %v2271_v26, 2102212464 }
 0x344   : > { %v2208_v25 = vsub.s32 0, %v5729_v58  ;;  %v2289_v13 = vsel %vm2279_vm15, %v2286_v53, %v2288_v19  ;;  %v2290_v36 = vsel %vm2278_vm7, %v2268_v17, %v2271_v26  ;;  %v2291_v62 = vsel %vm2281_vm2, %v2277_v15, 1326507024 }
 0x345   : > { %v5743_v18 = vmul.u32.u64.low %v2294_v30, %v2289_v13  ;;  %v5744_v23 = vmul.u32.u64.high %v2294_v30, %v2289_v13, %v5743_v18  ;;  %v3796_v9 = vadd.s32 4294967294, %v2106_v43  ;;  %v2282_v22 = vsel %vm2278_vm7, %v2262_v48, %v2265_v1 }
 0x346   : > { %v3799_v5 = vmin.u32 %v2208_v25, %v5729_v58  ;;  %v2292_v60 = vsel %vm2280_vm10, %v2274_v47, %v2291_v62  ;;  %v1910_v24 = vrot.slane %v1900_v28, %v5553_v12  ;;  %v2284_v46 = vsel %vm2280_vm10, %v2268_v17, %v2283_v51 }
 0x347   : > { %v2293_v27 = vsel %vm2279_vm15, %v2290_v36, %v2292_v60  ;;  %v3806_v53 = vadd.s32 4294967169, %v2354_v44  ;;  %v5753_v26 = vadd.f32 %v1911_v29, %v5617_v42  ;;  %vm3797_vm12 = vcmp.lt.s32.totalorder %v3796_v9, 0 }
 0x348   : > { %v2210_v50 = vclz %v3799_v5  ;;  %v5755_v15 = vmul.u32.u64.low %v2294_v30, %v2293_v27  ;;  %v5756_v33 = vmul.u32.u64.high %v2294_v30, %v2293_v27, %v5755_v15  ;;  %v2285_v1 = vsel %vm2279_vm15, %v2282_v22, %v2284_v46 }
 0x349   : > { %v2360_v25 = vadd.s32 1, %v3806_v53  ;;  %v2304_v47 = vadd.s32 1, %v5744_v23  ;;  %v6891_v28 = vand.u32 2147483647, %v5611_v14  ;;  %v1912_v17 = vmul.f32 %v1910_v24, %v5615_v45 }
 0x34a   : > { %v3800_v43 = vadd.s32 4294967294, %v2210_v50  ;;  %v2109_v48 = vsel %vm3797_vm12, 0, %v3796_v9  ;;  %v2301_v44 = vmul.u32 %v2294_v30, %v2285_v1  ;;  %vm2303_vm5 = vc.u32 %v5756_v33, %v5743_v18 }
 0x34b   : > { %vm2361_vm14 = vcmp.gt.s32.totalorder %v2360_v25, 0  ;;  %v2305_v19 = vsel %vm2303_vm5, %v2304_v47, %v5744_v23  ;;  %v2357_v55 = vand.u32 8388607, %v6891_v28  ;;  %v5768_v51 = vadd.f32 %v1912_v17, %v5624_v16 }
 0x34c   : > { %v2362_v42 = vsel %vm2361_vm14, %v2360_v25, 0  ;;  %vm3801_vm0 = vcmp.lt.s32.totalorder %v3800_v43, 0  ;;  %v2306_v29 = vadd.s32 %v2305_v19, %v2301_v44  ;;  %v2110_v13 = vsub.s32 32, %v2109_v48 }
 0x34d   : > { %v2364_v5 = vand.u32 31, %v2362_v42  ;;  %v2114_v36 = vsub.s32 4294967266, %v2109_v48  ;;  %v2094_v30 = vadd.s32 %v5661_v3, %v5658_v10  ;;  %v5772_v9 = vsel %vm3801_vm0, 0, %v3800_v43 }
 0x34e   : > { %v2307_v45 = vadd.s32 536870912, %v2306_v29  ;;  %v2358_v23 = vor.u32 8388608, %v2357_v55  ;;  %v2111_v24 = vshll.u32 %v5700_v59, %v2109_v48  ;;  %v2218_v53 = vsub.s32 4294967266, %v5772_v9 }
 0x34f   : > { %v2365_v62 = vsub.s32 32, %v2364_v5  ;;  %v2112_v50 = vshrl.u32 %v2094_v30, %v2110_v13  ;;  %v2115_v27 = vadd.s32 127, %v2114_v36  ;;  %v2367_v10 = vshll.u32 %v6945_v34, %v2364_v5 }
 0x350   : > { %v5774_v22 = vshrl.u32 %v2307_v45, 30  ;;  %v2370_v3 = vshll.u32 %v6951_v6, %v2364_v5  ;;  %v2373_v25 = vshll.u32 %v6939_v35, %v2364_v5  ;;  %v2376_v1 = vshll.u32 %v6952_v4, %v2364_v5 }
 0x351   : > { %v2368_v60 = vshrl.u32 %v6951_v6, %v2365_v62  ;;  %v2371_v16 = vshrl.u32 %v6939_v35, %v2365_v62  ;;  %v2374_v46 = vshrl.u32 %v6952_v4, %v2365_v62  ;;  %v2377_v59 = vshrl.u32 %v6953_v38, %v2365_v62 }
 0x352   : > { %v2309_v15 = vshll.u32 %v5774_v22, 30  ;;  %v2363_v43 = vshrl.u32 %v2362_v42, 5  ;;  %v2380_v48 = vshrl.u32 %v6954_v31, %v2365_v62  ;;  %v2379_v13 = vshll.u32 %v6953_v38, %v2364_v5 }
 0x353   : > { %v2369_v17 = vor.u32 %v2368_v60, %v2367_v10  ;;  %v2372_v44 = vor.u32 %v2371_v16, %v2370_v3  ;;  %v2375_v19 = vor.u32 %v2374_v46, %v2373_v25  ;;  %v2378_v55 = vor.u32 %v2377_v59, %v2376_v1  ;;  %v5797_v10 = vpop.f32.mrb[28].mxu0 }
 0x354   : > { %v5787_v47 = vsub.s32 %v2306_v29, %v2309_v15  ;;  %v2116_v36 = vshll.u32 %v2115_v27, 23  ;;  %v2124_v45 = vsub.s32 4, %v5689_v37  ;;  %v2198_v30 = vadd.s32 %v5685_v11, %v5693_v52 }
 0x355   : > { %v2113_v20 = vor.u32 %v2112_v50, %v2111_v24  ;;  %v2219_v29 = vadd.s32 127, %v2218_v53  ;;  %v2381_v15 = vor.u32 %v2380_v48, %v2379_v13  ;;  %v2398_v42 = vshll.u32 %v2358_v23, 8 }
 0x356   : > { %v2312_v28 = vsub.s32 0, %v5787_v47  ;;  %v2366_v60 = vshrl.u32 %v6945_v34, %v2365_v62  ;;  %vm2382_vm13 = vcmp.lt.s32.totalorder %v2363_v43, 1  ;;  %vm2384_vm11 = vcmp.lt.s32.totalorder %v2363_v43, 3 }
 0x357   : > { %vm2385_vm1 = vcmp.lt.s32.totalorder %v2363_v43, 4  ;;  %v2390_v46 = vsel %vm2382_vm13, %v2369_v17, %v2372_v44  ;;  %v2117_v3 = vor.u32 4788187, %v2116_v36  ;;  %v2214_v11 = vsub.s32 32, %v5772_v9 }
 0x358   : > { %v3803_v16 = vmin.u32 %v2312_v28, %v5787_v47  ;;  %v2387_v5 = vsel %vm2385_vm1, %v2375_v19, 2102212464  ;;  %v2391_v27 = vsel %vm2385_vm1, %v2378_v55, 920167782  ;;  %vm2383_vm6 = vcmp.lt.s32.totalorder %v2363_v43, 2 }
 0x359   : > { %v2392_v52 = vsel %vm2384_vm11, %v2375_v19, %v2391_v27  ;;  %v2386_v24 = vsel %vm2382_vm13, %v2366_v60, %v2369_v17  ;;  %v2394_v62 = vsel %vm2382_vm13, %v2372_v44, %v2375_v19  ;;  %v2395_v50 = vsel %vm2385_vm1, %v2381_v15, 1326507024 }
 0x35a   : > { %v2393_v23 = vsel %vm2383_vm6, %v2390_v46, %v2392_v52  ;;  %v2388_v53 = vsel %vm2384_vm11, %v2372_v44, %v2387_v5  ;;  %v2396_v28 = vsel %vm2384_vm11, %v2378_v55, %v2395_v50  ;;  %v2220_v59 = vshll.u32 %v2219_v29, 23 }
 0x35b   : > { %v5804_v25 = vmul.u32.u64.low %v2398_v42, %v2393_v23  ;;  %v5805_v1 = vmul.u32.u64.high %v2398_v42, %v2393_v23, %v5804_v25  ;;  %v2314_v48 = vclz %v3803_v16  ;;  %v2397_v13 = vsel %vm2383_vm6, %v2394_v62, %v2396_v28 }
 0x35c   : > { %v2457_v36 = vand.u32 2139095040, %v5620_v2  ;;  %v2118_v27 = vand.u32 2147483647, %v2117_v3  ;;  %v5810_v17 = vmul.u32.u64.low %v2398_v42, %v2397_v13  ;;  %v5811_v60 = vmul.u32.u64.high %v2398_v42, %v2397_v13, %v5810_v17 }
 0x35d   : > { %vm2040_vm9 = vcmp.lt.s32.totalorder %v5594_v8, 0  ;;  %v2216_v19 = vshrl.u32 %v2198_v30, %v2214_v11  ;;  %v2389_v44 = vsel %vm2383_vm6, %v2386_v24, %v2388_v53  ;;  %v2120_v15 = vcvt.s32.f32 %v2113_v20 }
 0x35e   : > { %v2458_v55 = vshrl.u32 %v2457_v36, 23  ;;  %v2125_v29 = vsel %vm2040_vm9, %v2124_v45, %v5689_v37  ;;  %v2228_v16 = vsub.s32 4, %v5718_v40  ;;  %v2408_v5 = vadd.s32 1, %v5805_v1 }
 0x35f   : > { %v2215_v46 = vshll.u32 %v5729_v58, %v5772_v9  ;;  %v2221_v3 = vor.u32 4788187, %v2220_v59  ;;  %v3804_v52 = vadd.s32 4294967294, %v2314_v48  ;;  %v2121_v62 = vmul.f32 %v2120_v15, %v2118_v27 }
 0x360   : > { %v3810_v23 = vadd.s32 4294967169, %v2458_v55  ;;  %v2405_v30 = vmul.u32 %v2398_v42, %v2389_v44  ;;  %vm2407_vm3 = vc.u32 %v5811_v60, %v5804_v25  ;;  %vm5826_vm7 = vcmp.le.f32.partialorder %v2038_v57, 0.7853982  ;;  %v5860_v44 = vpop.f32.mrb[29].mxu0 }
 0x361   : > { %v2217_v37 = vor.u32 %v2216_v19, %v2215_v46  ;;  %v2409_v43 = vsel %vm2407_vm3, %v2408_v5, %v5805_v1  ;;  %v2127_v58 = vsel %vm5826_vm7, 0, %v2125_v29  ;;  %vm2144_vm2 = vcmp.lt.s32.totalorder %v5600_v56, 0  ;;  %7004 = vst [vmem:[#allocation7_spill] sm:$0xff] %v5860_v44 }
 0x362   : > { %v2464_v45 = vadd.s32 1, %v3810_v23  ;;  %v2410_v9 = vadd.s32 %v2409_v43, %v2405_v30  ;;  %v6893_v42 = vand.u32 2147483647, %v5620_v2  ;;  %v2222_v11 = vand.u32 2147483647, %v2221_v3 }
 0x363   : > { %v5838_v57 = vsel %vm2144_vm2, %v2228_v16, %v5718_v40  ;;  %vm3805_vm10 = vcmp.lt.s32.totalorder %v3804_v52, 0  ;;  %v2122_v24 = vxor.u32 2147483648, %v2121_v62  ;;  %v3783_v53 = vmul.f32 -1.442695, %v5753_v26 }
 0x364   : > { %vm2465_vm15 = vcmp.gt.s32.totalorder %v2464_v45, 0  ;;  %v2411_v50 = vadd.s32 536870912, %v2410_v9  ;;  %vm5843_vm12 = vcmp.le.f32.partialorder %v2142_v54, 0.7853982  ;;  %v2224_v59 = vcvt.s32.f32 %v2217_v37 }
 0x365   : > { %v2466_v28 = vsel %vm2465_vm15, %v2464_v45, 0  ;;  %v5847_v13 = vadd.s32 3, %v2127_v58  ;;  %v5849_v36 = vsel %vm3805_vm10, 0, %v3804_v52  ;;  %v2461_v27 = vand.u32 8388607, %v6893_v42 }
 0x366   : > { %v2468_v48 = vand.u32 31, %v2466_v28  ;;  %v5851_v40 = vshrl.u32 %v2411_v50, 30  ;;  %v2225_v17 = vmul.f32 %v2224_v59, %v2222_v11  ;;  %v2302_v54 = vadd.s32 %v5743_v18, %v5756_v33 }
 0x367   : > { %v5864_v55 = vsel %vm2040_vm9, %v2122_v24, %v2121_v62  ;;  %v2332_v15 = vsub.s32 4, %v5774_v22  ;;  %4097 = vpow2.f32 %v3783_v53  ;;  %v2322_v16 = vsub.s32 4294967266, %v5849_v36 }
 0x368   : > { %v2469_v19 = vsub.s32 32, %v2468_v48  ;;  %v2413_v29 = vshll.u32 %v5851_v40, 30  ;;  %v2462_v3 = vor.u32 8388608, %v2461_v27  ;;  %v2471_v52 = vshll.u32 %v6945_v34, %v2468_v48 }
 0x369   : > { %v2474_v23 = vshll.u32 %v6951_v6, %v2468_v48  ;;  %v2226_v62 = vxor.u32 2147483648, %v2225_v17  ;;  %vm2248_vm14 = vcmp.lt.s32.totalorder %v5608_v0, 0  ;;  %v2467_v30 = vshrl.u32 %v2466_v28, 5 }
 0x36a   : > { %v2472_v5 = vshrl.u32 %v6951_v6, %v2469_v19  ;;  %v2475_v46 = vshrl.u32 %v6939_v35, %v2469_v19  ;;  %v2478_v18 = vshrl.u32 %v6952_v4, %v2469_v19  ;;  %v5872_v33 = vsub.s32 %v2410_v9, %v2413_v29 }
 0x36b   : > { %v2477_v37 = vshll.u32 %v6939_v35, %v2468_v48  ;;  %v2561_v43 = vand.u32 2139095040, %v5622_v7  ;;  %v2480_v9 = vshll.u32 %v6952_v4, %v2468_v48  ;;  %v2481_v50 = vshrl.u32 %v6953_v38, %v2469_v19 }
 0x36c   : > { %v2416_v45 = vsub.s32 0, %v5872_v33  ;;  %v2473_v58 = vor.u32 %v2472_v5, %v2471_v52  ;;  %v2476_v11 = vor.u32 %v2475_v46, %v2474_v23  ;;  %v2483_v53 = vshll.u32 %v6953_v38, %v2468_v48 }
 0x36d   : > { %v2479_v24 = vor.u32 %v2478_v18, %v2477_v37  ;;  %v2484_v59 = vshrl.u32 %v6954_v31, %v2469_v19  ;;  %v2318_v27 = vsub.s32 32, %v5849_v36  ;;  %v2323_v28 = vadd.s32 127, %v2322_v16 }
 0x36e   : > { %v3807_v29 = vmin.u32 %v2416_v45, %v5872_v33  ;;  %v2502_v42 = vshll.u32 %v2462_v3, 8  ;;  %v7005_v26 = vand.u32 2147483647, %v5608_v0  ;;  %v2470_v46 = vshrl.u32 %v6945_v34, %v2469_v19 }
 0x36f   : > { %v2482_v18 = vor.u32 %v2481_v50, %v2480_v9  ;;  %v2485_v52 = vor.u32 %v2484_v59, %v2483_v53  ;;  %v2562_v23 = vshrl.u32 %v2561_v43, 23  ;;  %vm2486_vm0 = vcmp.lt.s32.totalorder %v2467_v30, 1 }
 0x370   : > { %vm5888_vm5 = vcmp.le.f32.partialorder %v7005_v26, 0.7853982  ;;  %vm2487_vm13 = vcmp.lt.s32.totalorder %v2467_v30, 2  ;;  %vm2488_vm11 = vcmp.lt.s32.totalorder %v2467_v30, 3  ;;  %vm2489_vm1 = vcmp.lt.s32.totalorder %v2467_v30, 4 }
 0x371   : > { %v2491_v48 = vsel %vm2489_vm1, %v2479_v24, 2102212464  ;;  %v2494_v16 = vsel %vm2486_vm0, %v2473_v58, %v2476_v11  ;;  %v2495_v37 = vsel %vm2489_vm1, %v2482_v18, 920167782  ;;  %v2498_v45 = vsel %vm2486_vm0, %v2476_v11, %v2479_v24  ;;  %v5893_v3 = vpop.eup %4097 }
 0x372   : > { %v2418_v39 = vclz %v3807_v29  ;;  %v2490_v26 = vsel %vm2486_vm0, %v2470_v46, %v2473_v58  ;;  %v2496_v12 = vsel %vm2488_vm11, %v2479_v24, %v2495_v37  ;;  %v2499_v63 = vsel %vm2489_vm1, %v2485_v52, 1326507024 }
 0x373   : > { %v2492_v49 = vsel %vm2488_vm11, %v2476_v11, %v2491_v48  ;;  %v2497_v19 = vsel %vm2487_vm13, %v2494_v16, %v2496_v12  ;;  %v2500_v9 = vsel %vm2488_vm11, %v2482_v18, %v2499_v63  ;;  %v3814_v50 = vadd.s32 4294967169, %v2562_v23 }
 0x374   : > { %v2333_v43 = vsel %vm2248_vm14, %v2332_v15, %v5774_v22  ;;  %v2501_v53 = vsel %vm2487_vm13, %v2498_v45, %v2500_v9  ;;  %v5900_v59 = vmul.u32.u64.low %v2502_v42, %v2497_v19  ;;  %v5901_v44 = vmul.u32.u64.high %v2502_v42, %v2497_v19, %v5900_v59 }
 0x375   : > { %v2227_v58 = vsel %vm2144_vm2, %v2226_v62, %v2225_v17  ;;  %v2320_v24 = vshrl.u32 %v2302_v54, %v2318_v27  ;;  %v5906_v29 = vmul.u32.u64.low %v2502_v42, %v2501_v53  ;;  %v5907_v11 = vmul.u32.u64.high %v2502_v42, %v2501_v53, %v5906_v29 }
 0x376   : > { %v2324_v12 = vshll.u32 %v2323_v28, 23  ;;  %v2493_v63 = vsel %vm2487_vm13, %v2490_v26, %v2492_v49  ;;  %v6902_v46 = vand.u32 2147483647, %v5622_v7  ;;  %v2568_v18 = vadd.s32 1, %v3814_v50 }
 0x377   : > { %v2126_v22 = vsel %vm5826_vm7, %v5594_v8, %v5864_v55  ;;  %v7008_v15 = vsel %vm5843_vm12, 0, %v5838_v57  ;;  %v2319_v54 = vshll.u32 %v5787_v47, %v5849_v36  ;;  %v3808_v62 = vadd.s32 4294967294, %v2418_v39 }
 0x378   : > { %v2235_v17 = vadd.s32 3, %v7008_v15  ;;  %v2230_v49 = vsel %vm5843_vm12, %v5600_v56, %v2227_v58  ;;  %v2335_v30 = vsel %vm5888_vm5, 0, %v2333_v43  ;;  %v2512_v27 = vadd.s32 1, %v5901_v44 }
 0x379   : > { %vm2569_vm6 = vcmp.gt.s32.totalorder %v2568_v18, 0  ;;  %v2321_v20 = vor.u32 %v2320_v24, %v2319_v54  ;;  %v2509_v55 = vmul.u32 %v2502_v42, %v2493_v63  ;;  %vm2511_vm9 = vc.u32 %v5907_v11, %v5900_v59 }
 0x37a   : > { %v2570_v57 = vsel %vm2569_vm6, %v2568_v18, 0  ;;  %4099 = vcosq.f32 %v2126_v22  ;;  %v2325_v28 = vor.u32 4788187, %v2324_v12  ;;  %v2513_v39 = vsel %vm2511_vm9, %v2512_v27, %v5901_v44 }
 0x37b   : > { %v2565_v47 = vand.u32 8388607, %v6902_v46  ;;  %4101 = vsinq.f32 %v2126_v22  ;;  %vm3809_vm3 = vcmp.lt.s32.totalorder %v3808_v62, 0  ;;  %v2514_v1 = vadd.s32 %v2513_v39, %v2509_v55 }
 0x37c   : > { %v2572_v36 = vand.u32 31, %v2570_v57  ;;  %v5933_v52 = vand.u32 3, %v5847_v13  ;;  %4103 = vcosq.f32 %v2230_v49  ;;  %v5935_v42 = vand.u32 3, %v2235_v17 }
 0x37d   : > { %v5937_v23 = vadd.s32 3, %v2335_v30  ;;  %v2328_v48 = vcvt.s32.f32 %v2321_v20  ;;  %v2515_v16 = vadd.s32 536870912, %v2514_v1  ;;  %v2665_v44 = vand.u32 2139095040, %v5630_v32 }
 0x37e   : > { %v2573_v37 = vsub.s32 32, %v2572_v36  ;;  %v2326_v45 = vand.u32 2147483647, %v2325_v28  ;;  %v5940_v26 = vsel %vm3809_vm3, 0, %v3808_v62  ;;  %v2566_v19 = vor.u32 8388608, %v2565_v47 }
 0x37f   : > { %v2575_v9 = vshll.u32 %v6945_v34, %v2572_v36  ;;  %v5943_v50 = vshrl.u32 %v2515_v16, 30  ;;  %v2578_v43 = vshll.u32 %v6951_v6, %v2572_v36  ;;  %v2584_v24 = vshll.u32 %v6952_v4, %v2572_v36 }
 0x380   : > { %v2576_v13 = vshrl.u32 %v6951_v6, %v2573_v37  ;;  %v2579_v53 = vshrl.u32 %v6939_v35, %v2573_v37  ;;  %v2582_v58 = vshrl.u32 %v6952_v4, %v2573_v37  ;;  %v2585_v29 = vshrl.u32 %v6953_v38, %v2573_v37 }
 0x381   : > { %v2588_v12 = vshrl.u32 %v6954_v31, %v2573_v37  ;;  %v2517_v63 = vshll.u32 %v5943_v50, 30  ;;  %v2571_v18 = vshrl.u32 %v2570_v57, 5  ;;  %v2581_v22 = vshll.u32 %v6939_v35, %v2572_v36 }
 0x382   : > { %v2666_v15 = vshrl.u32 %v2665_v44, 23  ;;  %v2577_v17 = vor.u32 %v2576_v13, %v2575_v9  ;;  %v2580_v54 = vor.u32 %v2579_v53, %v2578_v43  ;;  %v2586_v62 = vor.u32 %v2585_v29, %v2584_v24 }
 0x383   : > { %v2587_v30 = vshll.u32 %v6953_v38, %v2572_v36  ;;  %4105 = vsinq.f32 %v2230_v49  ;;  %vm2352_vm7 = vcmp.lt.s32.totalorder %v5611_v14, 0  ;;  %v1921_v27 = vadd.f32 1.0, %v5893_v3 }
 0x384   : > { %v5957_v20 = vsub.s32 %v2514_v1, %v2517_v63  ;;  %v2583_v55 = vor.u32 %v2582_v58, %v2581_v22  ;;  %v5959_v28 = vpop.eup %4099  ;;  %v2329_v39 = vmul.f32 %v2328_v48, %v2326_v45  ;;  %v2426_v57 = vsub.s32 4294967266, %v5940_v26 }
 0x385   : > { %7009 = vst [vmem:[#allocation17_spill] sm:$0xff] %v5959_v28  ;;  %v2436_v47 = vsub.s32 4, %v5851_v40  ;;  %v2589_v16 = vor.u32 %v2588_v12, %v2587_v30  ;;  %v5963_v44 = vpop.eup %4101  ;;  %vm2590_vm2 = vcmp.lt.s32.totalorder %v2571_v18, 1  ;;  %vm2593_vm10 = vcmp.lt.s32.totalorder %v2571_v18, 4 }
 0x386   : > { %7010 = vst [vmem:[#allocation14_spill] sm:$0xff] %v5963_v44  ;;  %v2606_v49 = vshll.u32 %v2566_v19, 8  ;;  %v3818_v36 = vadd.s32 4294967169, %v2666_v15  ;;  %v5965_v9 = vpop.eup %4103  ;;  %v7011_v3 = vand.u32 2147483647, %v5611_v14  ;;  %v2520_v48 = vsub.s32 0, %v5957_v20 }
 0x387   : > { %vm2592_vm12 = vcmp.lt.s32.totalorder %v2571_v18, 3  ;;  %v2598_v45 = vsel %vm2590_vm2, %v2577_v17, %v2580_v54  ;;  %v2599_v13 = vsel %vm2593_vm10, %v2586_v62, 920167782  ;;  %v2574_v43 = vshrl.u32 %v6945_v34, %v2573_v37 }
 0x388   : > { %vm5969_vm15 = vcmp.le.f32.partialorder %v7011_v3, 0.7853982  ;;  %vm2591_vm0 = vcmp.lt.s32.totalorder %v2571_v18, 2  ;;  %v2595_v19 = vsel %vm2593_vm10, %v2583_v55, 2102212464  ;;  %v2600_v53 = vsel %vm2592_vm12, %v2583_v55, %v2599_v13 }
 0x389   : > { %v2427_v58 = vadd.s32 127, %v2426_v57  ;;  %v2601_v24 = vsel %vm2591_vm0, %v2598_v45, %v2600_v53  ;;  %v2602_v29 = vsel %vm2590_vm2, %v2580_v54, %v2583_v55  ;;  %v2603_v12 = vsel %vm2593_vm10, %v2589_v16, 1326507024 }
 0x38a   : > { %v2594_v63 = vsel %vm2590_vm2, %v2574_v43, %v2577_v17  ;;  %v2604_v22 = vsel %vm2592_vm12, %v2586_v62, %v2603_v12  ;;  %v5982_v15 = vmul.u32.u64.low %v2606_v49, %v2601_v24  ;;  %v5983_v30 = vmul.u32.u64.high %v2606_v49, %v2601_v24, %v5982_v15 }
 0x38b   : > { %v3811_v37 = vmin.u32 %v2520_v48, %v5957_v20  ;;  %v2596_v3 = vsel %vm2592_vm12, %v2580_v54, %v2595_v19  ;;  %v2605_v46 = vsel %vm2591_vm0, %v2602_v29, %v2604_v22  ;;  %v2672_v13 = vadd.s32 1, %v3818_v36 }
 0x38c   : > { %v2330_v57 = vxor.u32 2147483648, %v2329_v39  ;;  %v3784_v45 = vmul.f32 -1.442695, %v5768_v51  ;;  %v5989_v53 = vmul.u32.u64.low %v2606_v49, %v2605_v46  ;;  %v5990_v55 = vmul.u32.u64.high %v2606_v49, %v2605_v46, %v5989_v53 }
 0x38d   : > { %v2422_v16 = vsub.s32 32, %v5940_v26  ;;  %v5996_v17 = vsel %vm2352_vm7, %v2436_v47, %v5851_v40  ;;  %v6903_v62 = vand.u32 2147483647, %v5630_v32  ;;  %vm2673_vm13 = vcmp.gt.s32.totalorder %v2672_v13, 0  ;;  %v5999_v54 = vpop.eup %4105 }
 0x38e   : > { %v2428_v48 = vshll.u32 %v2427_v58, 23  ;;  %v2597_v36 = vsel %vm2591_vm0, %v2594_v63, %v2596_v3  ;;  %v2616_v51 = vadd.s32 1, %v5983_v30  ;;  %v2674_v43 = vsel %vm2673_vm13, %v2672_v13, 0 }
 0x38f   : > { %v6004_v46 = vand.u32 3, %v5937_v23  ;;  %4107 = vrcp.f32 %v1921_v27  ;;  %v2522_v19 = vclz %v3811_v37  ;;  %v2676_v24 = vand.u32 31, %v2674_v43 }
 0x390   : > { %v6008_v40 = vsel %vm2248_vm14, %v2330_v57, %v2329_v39  ;;  %v2406_v47 = vadd.s32 %v5804_v25, %v5811_v60  ;;  %4109 = vpow2.f32 %v3784_v45  ;;  %v2423_v58 = vshll.u32 %v5872_v33, %v5940_v26 }
 0x391   : > { %7014 = vst [vmem:[#allocation15_spill] sm:$0xff] %v6004_v46  ;;  %v2613_v23 = vmul.u32 %v2606_v49, %v2597_v36  ;;  %vm2615_vm11 = vc.u32 %v5990_v55, %v5982_v15  ;;  %v2677_v27 = vsub.s32 32, %v2676_v24  ;;  %v2429_v12 = vor.u32 4788187, %v2428_v48 }
 0x392   : > { %v2424_v29 = vshrl.u32 %v2406_v47, %v2422_v16  ;;  %v2617_v39 = vsel %vm2615_vm11, %v2616_v51, %v5983_v30  ;;  %v2669_v25 = vand.u32 8388607, %v6903_v62  ;;  %v3812_v60 = vadd.s32 4294967294, %v2522_v19 }
 0x393   : > { %v2618_v63 = vadd.s32 %v2617_v39, %v2613_v23  ;;  %v2680_v22 = vshrl.u32 %v6951_v6, %v2677_v27  ;;  %v2683_v37 = vshrl.u32 %v6939_v35, %v2677_v27  ;;  %v2679_v33 = vshll.u32 %v6945_v34, %v2676_v24 }
 0x394   : > { %v2682_v26 = vshll.u32 %v6951_v6, %v2676_v24  ;;  %v2685_v49 = vshll.u32 %v6939_v35, %v2676_v24  ;;  %v2686_v3 = vshrl.u32 %v6952_v4, %v2677_v27  ;;  %v2675_v57 = vshrl.u32 %v2674_v43, 5 }
 0x395   : > { %v2619_v13 = vadd.s32 536870912, %v2618_v63  ;;  %v2688_v30 = vshll.u32 %v6952_v4, %v2676_v24  ;;  %v2689_v45 = vshrl.u32 %v6953_v38, %v2677_v27  ;;  %v2425_v53 = vor.u32 %v2424_v29, %v2423_v58 }
 0x396   : > { %v2681_v16 = vor.u32 %v2680_v22, %v2679_v33  ;;  %v2684_v48 = vor.u32 %v2683_v37, %v2682_v26  ;;  %v2687_v36 = vor.u32 %v2686_v3, %v2685_v49  ;;  %v2691_v47 = vshll.u32 %v6953_v38, %v2676_v24 }
 0x397   : > { %v6030_v51 = vshrl.u32 %v2619_v13, 30  ;;  %v2690_v19 = vor.u32 %v2689_v45, %v2688_v30  ;;  %v2692_v23 = vshrl.u32 %v6954_v31, %v2677_v27  ;;  %v2430_v39 = vand.u32 2147483647, %v2429_v12 }
 0x398   : > { %vm3813_vm14 = vcmp.lt.s32.totalorder %v3812_v60, 0  ;;  %v2670_v62 = vor.u32 8388608, %v2669_v25  ;;  %v2769_v43 = vand.u32 2139095040, %v5634_v21  ;;  %vm2694_vm1 = vcmp.lt.s32.totalorder %v2675_v57, 1 }
 0x399   : > { %v6035_v18 = vpop.eup %4107  ;;  %v2621_v46 = vshll.u32 %v6030_v51, 30  ;;  %v2693_v58 = vor.u32 %v2692_v23, %v2691_v47  ;;  %vm2697_vm6 = vcmp.lt.s32.totalorder %v2675_v57, 4  ;;  %v2678_v22 = vshrl.u32 %v6945_v34, %v2677_v27 }
 0x39a   : > { %v4110_v29 = vpop.eup %4109  ;;  %vm2696_vm9 = vcmp.lt.s32.totalorder %v2675_v57, 3  ;;  %v2702_v24 = vsel %vm2694_vm1, %v2681_v16, %v2684_v48  ;;  %v2703_v37 = vsel %vm2697_vm6, %v2690_v19, 920167782  ;;  %vm2695_vm3 = vcmp.lt.s32.totalorder %v2675_v57, 2  ;;  %1927 = vst [vmem:[%s6161_s10] sm:$0x1f] %v6035_v18 }
 0x39b   : > { %v6041_v12 = vsub.s32 %v2618_v63, %v2621_v46  ;;  %v2699_v25 = vsel %vm2697_vm6, %v2687_v36, 2102212464  ;;  %v2704_v33 = vsel %vm2696_vm9, %v2687_v36, %v2703_v37  ;;  %v2525_v26 = vsel %vm3813_vm14, 0, %v3812_v60 }
 0x39c   : > { %v2705_v49 = vsel %vm2695_vm3, %v2702_v24, %v2704_v33  ;;  %v2710_v3 = vshll.u32 %v2670_v62, 8  ;;  %v2770_v13 = vshrl.u32 %v2769_v43, 23  ;;  %v2698_v30 = vsel %vm2694_vm1, %v2678_v22, %v2681_v16 }
 0x39d   : > { %v2624_v27 = vsub.s32 0, %v6041_v12  ;;  %v2706_v45 = vsel %vm2694_vm1, %v2684_v48, %v2687_v36  ;;  %v2707_v46 = vsel %vm2697_vm6, %v2693_v58, 1326507024  ;;  %v2700_v63 = vsel %vm2696_vm9, %v2684_v48, %v2699_v25 }
 0x39e   : > { %v2708_v47 = vsel %vm2696_vm9, %v2690_v19, %v2707_v46  ;;  %v6053_v23 = vmul.u32.u64.low %v2710_v3, %v2705_v49  ;;  %v6054_v37 = vmul.u32.u64.high %v2710_v3, %v2705_v49, %v6053_v23  ;;  %v2432_v60 = vcvt.s32.f32 %v2425_v53 }
 0x39f   : > { %v2530_v24 = vsub.s32 4294967266, %v2525_v26  ;;  %v3815_v62 = vmin.u32 %v2624_v27, %v6041_v12  ;;  %v2709_v43 = vsel %vm2695_vm3, %v2706_v45, %v2708_v47  ;;  %v7015_v16 = vsel %vm5969_vm15, 0, %v5996_v17 }
 0x3a0   : > { %v2443_v36 = vadd.s32 3, %v7015_v16  ;;  %v1922_v58 = vadd.f32 1.0, %v4110_v29  ;;  %vm2456_vm2 = vcmp.lt.s32.totalorder %v5620_v2, 0  ;;  %v2433_v22 = vmul.f32 %v2432_v60, %v2430_v39 }
 0x3a1   : > { %v6064_v48 = vmul.u32.u64.low %v2710_v3, %v2709_v43  ;;  %v6065_v19 = vmul.u32.u64.high %v2710_v3, %v2709_v43, %v6064_v48  ;;  %v2626_v25 = vclz %v3815_v62  ;;  %v2701_v53 = vsel %vm2695_vm3, %v2698_v30, %v2700_v63 }
 0x3a2   : > { %v3822_v33 = vadd.s32 4294967169, %v2770_v13  ;;  %v6072_v49 = vsel %vm5888_vm5, %v5608_v0, %v6008_v40  ;;  %v2526_v27 = vsub.s32 32, %v2525_v26  ;;  %v2720_v17 = vadd.s32 1, %v6054_v37 }
 0x3a3   : > { %v6905_v29 = vand.u32 2147483647, %v5634_v21  ;;  %v2531_v45 = vadd.s32 127, %v2530_v24  ;;  %v3816_v46 = vadd.s32 4294967294, %v2626_v25  ;;  %v2873_v39 = vand.u32 2139095040, %v5679_v41 }
 0x3a4   : > { %v2776_v47 = vadd.s32 1, %v3822_v33  ;;  %v2510_v57 = vadd.s32 %v5900_v59, %v5907_v11  ;;  %v2540_v13 = vsub.s32 4, %v5943_v50  ;;  %v2717_v30 = vmul.u32 %v2710_v3, %v2701_v53 }
 0x3a5   : > { %vm2719_vm5 = vc.u32 %v6065_v19, %v6053_v23  ;;  %v2434_v5 = vxor.u32 2147483648, %v2433_v22  ;;  %vm3817_vm10 = vcmp.lt.s32.totalorder %v3816_v46, 0  ;;  %4111 = vrcp.f32 %v1922_v58 }
 0x3a6   : > { %v2721_v40 = vsel %vm2719_vm5, %v2720_v17, %v6054_v37  ;;  %vm2777_vm12 = vcmp.gt.s32.totalorder %v2776_v47, 0  ;;  %v2528_v63 = vshrl.u32 %v2510_v57, %v2526_v27  ;;  %4113 = vcosq.f32 %v6072_v49 }
 0x3a7   : > { %v2722_v60 = vadd.s32 %v2721_v40, %v2717_v30  ;;  %v2778_v24 = vsel %vm2777_vm12, %v2776_v47, 0  ;;  %v2532_v62 = vshll.u32 %v2531_v45, 23  ;;  %v2773_v59 = vand.u32 8388607, %v6905_v29 }
 0x3a8   : > { %v2874_v11 = vshrl.u32 %v2873_v39, 23  ;;  %v2527_v3 = vshll.u32 %v5957_v20, %v2525_v26  ;;  %v6087_v43 = vsel %vm3817_vm10, 0, %v3816_v46  ;;  %v2780_v48 = vand.u32 31, %v2778_v24 }
 0x3a9   : > { %v2723_v16 = vadd.s32 536870912, %v2722_v60  ;;  %v6091_v37 = vsel %vm2352_vm7, %v2434_v5, %v2433_v22  ;;  %v6093_v58 = vand.u32 3, %v2443_v36  ;;  %v6098_v25 = vsel %vm2456_vm2, %v2540_v13, %v5943_v50 }
 0x3aa   : > { %v6101_v33 = vor.u32 %v2528_v63, %v2527_v3  ;;  %v2614_v20 = vadd.s32 %v5982_v15, %v5990_v55  ;;  %v2781_v27 = vsub.s32 32, %v2780_v48  ;;  %v6107_v17 = vor.u32 4788187, %v2532_v62 }
 0x3ab   : > { %v6105_v26 = vshrl.u32 %v2723_v16, 30  ;;  %v2630_v36 = vsub.s32 32, %v6087_v43  ;;  %v2774_v22 = vor.u32 8388608, %v2773_v59  ;;  %v3826_v45 = vadd.s32 4294967169, %v2874_v11 }
 0x3ac   : > { %v2634_v46 = vsub.s32 4294967266, %v6087_v43  ;;  %v2783_v47 = vshll.u32 %v6945_v34, %v2780_v48  ;;  %v2784_v39 = vshrl.u32 %v6951_v6, %v2781_v27  ;;  %v2786_v57 = vshll.u32 %v6951_v6, %v2780_v48 }
 0x3ad   : > { %v2725_v50 = vshll.u32 %v6105_v26, 30  ;;  %v2787_v15 = vshrl.u32 %v6939_v35, %v2781_v27  ;;  %v2789_v55 = vshll.u32 %v6939_v35, %v2780_v48  ;;  %v2790_v13 = vshrl.u32 %v6952_v4, %v2781_v27 }
 0x3ae   : > { %v2779_v5 = vshrl.u32 %v2778_v24, 5  ;;  %v2792_v40 = vshll.u32 %v6952_v4, %v2780_v48  ;;  %v2793_v63 = vshrl.u32 %v6953_v38, %v2781_v27  ;;  %v2536_v62 = vcvt.s32.f32 %v6101_v33 }
 0x3af   : > { %v6118_v30 = vsub.s32 %v2722_v60, %v2725_v50  ;;  %v2785_v59 = vor.u32 %v2784_v39, %v2783_v47  ;;  %v2788_v11 = vor.u32 %v2787_v15, %v2786_v57  ;;  %v2791_v3 = vor.u32 %v2790_v13, %v2789_v55  ;;  %v4112_v16 = vpop.eup %4111 }
 0x3b0   : > { %v7016_v29 = vand.u32 2147483647, %v5620_v2  ;;  %v2534_v60 = vand.u32 2147483647, %v6107_v17  ;;  %v2794_v50 = vor.u32 %v2793_v63, %v2792_v40  ;;  %v2814_v28 = vshll.u32 %v2774_v22, 8  ;;  %v6131_v44 = vpop.eup %4113 }
 0x3b1   : > { %v2728_v24 = vsub.s32 0, %v6118_v30  ;;  %7019 = vst [vmem:[#allocation16_spill] sm:$0xff] %v6131_v44  ;;  %v2632_v0 = vshrl.u32 %v2614_v20, %v2630_v36  ;;  %v2795_v33 = vshll.u32 %v6953_v38, %v2780_v48  ;;  %v2796_v47 = vshrl.u32 %v6954_v31, %v2781_v27  ;;  %1928 = vst [vmem:[%s6161_s10 + $0x8] sm:$0x1f] %v4112_v16 }
 0x3b2   : > { %vm6125_vm7 = vcmp.le.f32.partialorder %v7016_v29, 0.7853982  ;;  %v2880_v39 = vadd.s32 1, %v3826_v45  ;;  %v2635_v57 = vadd.s32 127, %v2634_v46  ;;  %vm2798_vm0 = vcmp.lt.s32.totalorder %v2779_v5, 1 }
 0x3b3   : > { %v3819_v29 = vmin.u32 %v2728_v24, %v6118_v30  ;;  %vm2801_vm13 = vcmp.lt.s32.totalorder %v2779_v5, 4  ;;  %v2782_v15 = vshrl.u32 %v6945_v34, %v2781_v27  ;;  %v2797_v17 = vor.u32 %v2796_v47, %v2795_v33 }
 0x3b4   : > { %v2803_v55 = vsel %vm2801_vm13, %v2791_v3, 2102212464  ;;  %v2806_v13 = vsel %vm2798_vm0, %v2785_v59, %v2788_v11  ;;  %vm2800_vm11 = vcmp.lt.s32.totalorder %v2779_v5, 3  ;;  %v2807_v22 = vsel %vm2801_vm13, %v2794_v50, 920167782 }
 0x3b5   : > { %v2730_v40 = vclz %v3819_v29  ;;  %v2810_v20 = vsel %vm2798_vm0, %v2788_v11, %v2791_v3  ;;  %vm2799_vm14 = vcmp.lt.s32.totalorder %v2779_v5, 2  ;;  %v2802_v48 = vsel %vm2798_vm0, %v2782_v15, %v2785_v59 }
 0x3b6   : > { %v2808_v36 = vsel %vm2800_vm11, %v2791_v3, %v2807_v22  ;;  %v2811_v63 = vsel %vm2801_vm13, %v2797_v17, 1326507024  ;;  %v2804_v46 = vsel %vm2800_vm11, %v2788_v11, %v2803_v55  ;;  %v2636_v8 = vshll.u32 %v2635_v57, 23 }
 0x3b7   : > { %v3820_v45 = vadd.s32 4294967294, %v2730_v40  ;;  %v2809_v24 = vsel %vm2799_vm14, %v2806_v13, %v2808_v36  ;;  %v2812_v44 = vsel %vm2800_vm11, %v2794_v50, %v2811_v63  ;;  %v2631_v29 = vshll.u32 %v6041_v12, %v6087_v43 }
 0x3b8   : > { %v2813_v27 = vsel %vm2799_vm14, %v2810_v20, %v2812_v44  ;;  %v6139_v33 = vmul.u32.u64.low %v2814_v28, %v2809_v24  ;;  %v6140_v47 = vmul.u32.u64.high %v2814_v28, %v2809_v24, %v6139_v33  ;;  %v2543_v11 = vsel %vm6125_vm7, 0, %v6098_v25 }
 0x3b9   : > { %vm3821_vm1 = vcmp.lt.s32.totalorder %v3820_v45, 0  ;;  %v6145_v59 = vmul.u32.u64.low %v2814_v28, %v2813_v27  ;;  %v6146_v3 = vmul.u32.u64.high %v2814_v28, %v2813_v27, %v6145_v59  ;;  %v2805_v44 = vsel %vm2799_vm14, %v2802_v48, %v2804_v46 }
 0x3ba   : > { %v6152_v50 = vsel %vm3821_vm1, 0, %v3820_v45  ;;  %vm2881_vm6 = vcmp.gt.s32.totalorder %v2880_v39, 0  ;;  %v2537_v57 = vmul.f32 %v2536_v62, %v2534_v60  ;;  %v2633_v15 = vor.u32 %v2632_v0, %v2631_v29 }
 0x3bb   : > { %v7020_v12 = vand.u32 2147483647, %v5679_v41  ;;  %v2882_v17 = vsel %vm2881_vm6, %v2880_v39, 0  ;;  %4115 = vsinq.f32 %v6072_v49  ;;  %v2637_v55 = vor.u32 4788187, %v2636_v8 }
 0x3bc   : > { %v2824_v13 = vadd.s32 1, %v6140_v47  ;;  %v2884_v40 = vand.u32 31, %v2882_v17  ;;  %v6170_v0 = vsel %vm5969_vm15, %v5611_v14, %v6091_v37  ;;  %v2738_v25 = vsub.s32 4294967266, %v6152_v50 }
 0x3bd   : > { %v2877_v43 = vand.u32 8388607, %v7020_v12  ;;  %v2821_v49 = vmul.u32 %v2814_v28, %v2805_v44  ;;  %vm2823_vm9 = vc.u32 %v6146_v3, %v6139_v33  ;;  %v6175_v8 = vadd.s32 3, %v2543_v11 }
 0x3be   : > { %v2644_v5 = vsub.s32 4, %v6030_v51  ;;  %v2825_v62 = vsel %vm2823_vm9, %v2824_v13, %v6140_v47  ;;  %v2885_v18 = vsub.s32 32, %v2884_v40  ;;  %v2538_v16 = vxor.u32 2147483648, %v2537_v57 }
 0x3bf   : > { %v2640_v60 = vcvt.s32.f32 %v2633_v15  ;;  %v2826_v39 = vadd.s32 %v2825_v62, %v2821_v49  ;;  %v2878_v22 = vor.u32 8388608, %v2877_v43  ;;  %v2638_v1 = vand.u32 2147483647, %v2637_v55 }
 0x3c0   : > { %v2888_v37 = vshrl.u32 %v6951_v6, %v2885_v18  ;;  %v2891_v20 = vshrl.u32 %v6939_v35, %v2885_v18  ;;  %v2894_v28 = vshrl.u32 %v6952_v4, %v2885_v18  ;;  %v2734_v48 = vsub.s32 32, %v6152_v50 }
 0x3c1   : > { %v2739_v36 = vadd.s32 127, %v2738_v25  ;;  %v2827_v63 = vadd.s32 536870912, %v2826_v39  ;;  %v2887_v45 = vshll.u32 %v6945_v34, %v2884_v40  ;;  %v2890_v46 = vshll.u32 %v6951_v6, %v2884_v40 }
 0x3c2   : > { %v2893_v24 = vshll.u32 %v6939_v35, %v2884_v40  ;;  %v2896_v27 = vshll.u32 %v6952_v4, %v2884_v40  ;;  %v2897_v47 = vshrl.u32 %v6953_v38, %v2885_v18  ;;  %v2883_v59 = vshrl.u32 %v2882_v17, 5 }
 0x3c3   : > { %v6188_v29 = vshrl.u32 %v2827_v63, 30  ;;  %v2899_v11 = vshll.u32 %v6953_v38, %v2884_v40  ;;  %v2900_v44 = vshrl.u32 %v6954_v31, %v2885_v18  ;;  %v2889_v15 = vor.u32 %v2888_v37, %v2887_v45 }
 0x3c4   : > { %v2892_v12 = vor.u32 %v2891_v20, %v2890_v46  ;;  %v2895_v43 = vor.u32 %v2894_v28, %v2893_v24  ;;  %v2898_v55 = vor.u32 %v2897_v47, %v2896_v27  ;;  %v2539_v13 = vsel %vm2456_vm2, %v2538_v16, %v2537_v57 }
 0x3c5   : > { %v2718_v25 = vadd.s32 %v6053_v23, %v6065_v19  ;;  %v2829_v49 = vshll.u32 %v6188_v29, 30  ;;  %v2901_v62 = vor.u32 %v2900_v44, %v2899_v11  ;;  %v6197_v63 = vpop.eup %4115  ;;  %vm2560_vm15 = vcmp.lt.s32.totalorder %v5622_v7, 0 }
 0x3c6   : > { %v2641_v17 = vmul.f32 %v2640_v60, %v2638_v1  ;;  %v2735_v40 = vshll.u32 %v6118_v30, %v6152_v50  ;;  %v2740_v37 = vshll.u32 %v2739_v36, 23  ;;  %v2918_v20 = vshll.u32 %v2878_v22, 8 }
 0x3c7   : > { %v2736_v28 = vshrl.u32 %v2718_v25, %v2734_v48  ;;  %v6202_v45 = vsub.s32 %v2826_v39, %v2829_v49  ;;  %vm2902_vm3 = vcmp.lt.s32.totalorder %v2883_v59, 1  ;;  %vm2905_vm2 = vcmp.lt.s32.totalorder %v2883_v59, 4 }
 0x3c8   : > { %v2907_v57 = vsel %vm2905_vm2, %v2895_v43, 2102212464  ;;  %v2910_v23 = vsel %vm2902_vm3, %v2889_v15, %v2892_v12  ;;  %v2911_v19 = vsel %vm2905_vm2, %v2898_v55, 920167782  ;;  %v2915_v16 = vsel %vm2905_vm2, %v2901_v62, 1326507024 }
 0x3c9   : > { %v2832_v46 = vsub.s32 0, %v6202_v45  ;;  %v2886_v24 = vshrl.u32 %v6945_v34, %v2885_v18  ;;  %vm2904_vm5 = vcmp.lt.s32.totalorder %v2883_v59, 3  ;;  %v2914_v60 = vsel %vm2902_vm3, %v2892_v12, %v2895_v43 }
 0x3ca   : > { %v2741_v1 = vor.u32 4788187, %v2740_v37  ;;  %vm2903_vm10 = vcmp.lt.s32.totalorder %v2883_v59, 2  ;;  %v2912_v30 = vsel %vm2904_vm5, %v2895_v43, %v2911_v19  ;;  %v2916_v50 = vsel %vm2904_vm5, %v2898_v55, %v2915_v16 }
 0x3cb   : > { %v3823_v22 = vmin.u32 %v2832_v46, %v6202_v45  ;;  %v2906_v39 = vsel %vm2902_vm3, %v2886_v24, %v2889_v15  ;;  %v2908_v48 = vsel %vm2904_vm5, %v2892_v12, %v2907_v57  ;;  %v2913_v36 = vsel %vm2903_vm10, %v2910_v23, %v2912_v30 }
 0x3cc   : > { %v7021_v27 = vand.u32 2147483647, %v5622_v7  ;;  %v2737_v11 = vor.u32 %v2736_v28, %v2735_v40  ;;  %v2917_v18 = vsel %vm2903_vm10, %v2914_v60, %v2916_v50  ;;  %vm2664_vm0 = vcmp.lt.s32.totalorder %v5630_v32, 0 }
 0x3cd   : > { %v6215_v44 = vmul.u32.u64.low %v2918_v20, %v2913_v36  ;;  %v6216_v25 = vmul.u32.u64.high %v2918_v20, %v2913_v36, %v6215_v44  ;;  %v2834_v43 = vclz %v3823_v22  ;;  %v2977_v55 = vand.u32 2139095040, %v5722_v61 }
 0x3ce   : > { %vm6210_vm12 = vcmp.le.f32.partialorder %v7021_v27, 0.7853982  ;;  %v6220_v15 = vmul.u32.u64.low %v2918_v20, %v2917_v18  ;;  %v6221_v12 = vmul.u32.u64.high %v2918_v20, %v2917_v18, %v6220_v15  ;;  %4117 = vcosq.f32 %v6170_v0 }
 0x3cf   : > { %v2642_v49 = vxor.u32 2147483648, %v2641_v17  ;;  %v2742_v62 = vand.u32 2147483647, %v2741_v1  ;;  %v2909_v40 = vsel %vm2903_vm10, %v2906_v39, %v2908_v48  ;;  %4119 = vsinq.f32 %v6170_v0 }
 0x3d0   : > { %v2645_v37 = vsel %vm2560_vm15, %v2644_v5, %v6030_v51  ;;  %v3824_v28 = vadd.s32 4294967294, %v2834_v43  ;;  %v2978_v57 = vshrl.u32 %v2977_v55, 23  ;;  %v2542_v23 = vsel %vm6125_vm7, %v5620_v2, %v2539_v13 }
 0x3d1   : > { %v7024_v19 = vand.u32 2147483647, %v5630_v32  ;;  %v2744_v59 = vcvt.s32.f32 %v2737_v11  ;;  %v2928_v0 = vadd.s32 1, %v6216_v25  ;;  %v3081_v46 = vand.u32 2139095040, %v5797_v10 }
 0x3d2   : > { %vm3825_vm11 = vcmp.lt.s32.totalorder %v3824_v28, 0  ;;  %v2925_v24 = vmul.u32 %v2918_v20, %v2909_v40  ;;  %vm2927_vm14 = vc.u32 %v6221_v12, %v6215_v44  ;;  %v3830_v51 = vadd.s32 4294967169, %v2978_v57 }
 0x3d3   : > { %vm6237_vm13 = vcmp.le.f32.partialorder %v7024_v19, 0.7853982  ;;  %v2643_v53 = vsel %vm2560_vm15, %v2642_v49, %v2641_v17  ;;  %v2745_v5 = vmul.f32 %v2744_v59, %v2742_v62  ;;  %v2748_v13 = vsub.s32 4, %v6105_v26 }
 0x3d4   : > { %v2929_v60 = vsel %vm2927_vm14, %v2928_v0, %v6216_v25  ;;  %v6249_v1 = vsel %vm3825_vm11, 0, %v3824_v28  ;;  %v2852_v30 = vsub.s32 4, %v6188_v29  ;;  %v6913_v22 = vand.u32 2147483647, %v5722_v61 }
 0x3d5   : > { %v2930_v50 = vadd.s32 %v2929_v60, %v2925_v24  ;;  %4121 = vcosq.f32 %v2542_v23  ;;  %vm2768_vm7 = vcmp.lt.s32.totalorder %v5634_v21, 0  ;;  %v2984_v20 = vadd.s32 1, %v3830_v51 }
 0x3d6   : > { %v3082_v39 = vshrl.u32 %v3081_v46, 23  ;;  %4123 = vsinq.f32 %v2542_v23  ;;  %v2646_v17 = vsel %vm6210_vm12, %v5622_v7, %v2643_v53  ;;  %v2647_v48 = vsel %vm6210_vm12, 0, %v2645_v37 }
 0x3d7   : > { %v2931_v36 = vadd.s32 536870912, %v2930_v50  ;;  %v2746_v27 = vxor.u32 2147483648, %v2745_v5  ;;  %v6262_v11 = vsel %vm2664_vm0, %v2748_v13, %v6105_v26  ;;  %v2842_v18 = vsub.s32 4294967266, %v6249_v1 }
 0x3d8   : > { %vm2985_vm1 = vcmp.gt.s32.totalorder %v2984_v20, 0  ;;  %v6268_v25 = vsel %vm2768_vm7, %v2852_v30, %v6188_v29  ;;  %v2981_v47 = vand.u32 8388607, %v6913_v22  ;;  %v6274_v55 = vpop.eup %4117  ;;  %4125 = vcosq.f32 %v2646_v17 }
 0x3d9   : > { %v6270_v43 = vshrl.u32 %v2931_v36, 30  ;;  %v2986_v15 = vsel %vm2985_vm1, %v2984_v20, 0  ;;  %v7027_v26 = vand.u32 2147483647, %v5634_v21  ;;  %v3834_v40 = vadd.s32 4294967169, %v3082_v39  ;;  %v6282_v37 = vpop.eup %4119 }
 0x3da   : > { %v2988_v62 = vand.u32 31, %v2986_v15  ;;  %4127 = vsinq.f32 %v2646_v17  ;;  %v6284_v29 = vadd.s32 3, %v2647_v48  ;;  %v2822_v23 = vadd.s32 %v6139_v33, %v6146_v3 }
 0x3db   : > { %vm6278_vm6 = vcmp.le.f32.partialorder %v7027_v26, 0.7853982  ;;  %v2933_v57 = vshll.u32 %v6270_v43, 30  ;;  %v2843_v19 = vadd.s32 127, %v2842_v18  ;;  %v6297_v46 = vsel %vm2664_vm0, %v2746_v27, %v2745_v5 }
 0x3dc   : > { %v2989_v0 = vsub.s32 32, %v2988_v62  ;;  %v2982_v51 = vor.u32 8388608, %v2981_v47  ;;  %v2838_v13 = vsub.s32 32, %v6249_v1  ;;  %v3088_v3 = vadd.s32 1, %v3834_v40 }
 0x3dd   : > { %v6299_v24 = vsub.s32 %v2930_v50, %v2933_v57  ;;  %v2991_v20 = vshll.u32 %v6945_v34, %v2988_v62  ;;  %v2994_v39 = vshll.u32 %v6951_v6, %v2988_v62  ;;  %v2844_v17 = vshll.u32 %v2843_v19, 23 }
 0x3de   : > { %v2992_v60 = vshrl.u32 %v6951_v6, %v2989_v0  ;;  %v2995_v33 = vshrl.u32 %v6939_v35, %v2989_v0  ;;  %v2998_v5 = vshrl.u32 %v6952_v4, %v2989_v0  ;;  %v2997_v48 = vshll.u32 %v6939_v35, %v2988_v62 }
 0x3df   : > { %v2936_v30 = vsub.s32 0, %v6299_v24  ;;  %v6309_v50 = vpop.eup %4121  ;;  %v3000_v36 = vshll.u32 %v6952_v4, %v2988_v62  ;;  %v3001_v27 = vshrl.u32 %v6953_v38, %v2989_v0  ;;  %v2987_v26 = vshrl.u32 %v2986_v15, 5 }
 0x3e0   : > { %7030 = vst [vmem:[#allocation18_spill] sm:$0xff] %v6309_v50  ;;  %v6314_v18 = vpop.eup %4123  ;;  %v2993_v40 = vor.u32 %v2992_v60, %v2991_v20  ;;  %v2996_v57 = vor.u32 %v2995_v33, %v2994_v39  ;;  %v2999_v22 = vor.u32 %v2998_v5, %v2997_v48  ;;  %v3003_v28 = vshll.u32 %v6953_v38, %v2988_v62 }
 0x3e1   : > { %7031 = vst [vmem:[#allocation19_spill] sm:$0xff] %v6314_v18  ;;  %v3827_v47 = vmin.u32 %v2936_v30, %v6299_v24  ;;  %v3002_v59 = vor.u32 %v3001_v27, %v3000_v36  ;;  %v3004_v53 = vshrl.u32 %v6954_v31, %v2989_v0  ;;  %v2839_v19 = vshll.u32 %v6202_v45, %v6249_v1 }
 0x3e2   : > { %v3022_v7 = vshll.u32 %v2982_v51, 8  ;;  %v7032_v2 = vand.u32 2147483647, %v5797_v10  ;;  %v6325_v18 = vpop.eup %4125  ;;  %v2840_v15 = vshrl.u32 %v2822_v23, %v2838_v13  ;;  %v2845_v60 = vor.u32 4788187, %v2844_v17 }
 0x3e3   : > { %v2938_v50 = vclz %v3827_v47  ;;  %v3005_v33 = vor.u32 %v3004_v53, %v3003_v28  ;;  %vm3089_vm9 = vcmp.gt.s32.totalorder %v3088_v3, 0  ;;  %v2990_v20 = vshrl.u32 %v6945_v34, %v2989_v0 }
 0x3e4   : > { %v6323_v61 = vand.u32 8388607, %v7032_v2  ;;  %v6327_v30 = vpop.eup %4127  ;;  %vm3006_vm15 = vcmp.lt.s32.totalorder %v2987_v26, 1  ;;  %vm3009_vm3 = vcmp.lt.s32.totalorder %v2987_v26, 4  ;;  %vm3008_vm2 = vcmp.lt.s32.totalorder %v2987_v26, 3 }
 0x3e5   : > { %v3828_v62 = vadd.s32 4294967294, %v2938_v50  ;;  %v3011_v45 = vsel %vm3009_vm3, %v2999_v22, 2102212464  ;;  %v3014_v1 = vsel %vm3006_vm15, %v2993_v40, %v2996_v57  ;;  %v3015_v51 = vsel %vm3009_vm3, %v3002_v59, 920167782 }
 0x3e6   : > { %vm3007_vm10 = vcmp.lt.s32.totalorder %v2987_v26, 2  ;;  %v3016_v2 = vsel %vm3008_vm2, %v2999_v22, %v3015_v51  ;;  %v3018_v39 = vsel %vm3006_vm15, %v2996_v57, %v2999_v22  ;;  %v3010_v23 = vsel %vm3006_vm15, %v2990_v20, %v2993_v40 }
 0x3e7   : > { %vm3829_vm5 = vcmp.lt.s32.totalorder %v3828_v62, 0  ;;  %v3017_v28 = vsel %vm3007_vm10, %v3014_v1, %v3016_v2  ;;  %v3019_v53 = vsel %vm3009_vm3, %v3005_v33, 1326507024  ;;  %v3012_v50 = vsel %vm3008_vm2, %v2996_v57, %v3011_v45  ;;  %v7033_v2 = vld [vmem:[#allocation7_spill] sm:$0xff] }
 0x3e8   : > { %v2941_v5 = vsel %vm3829_vm5, 0, %v3828_v62  ;;  %v3020_v48 = vsel %vm3008_vm2, %v3002_v59, %v3019_v53  ;;  %v2841_v0 = vor.u32 %v2840_v15, %v2839_v19  ;;  %v2926_v51 = vadd.s32 %v6215_v44, %v6221_v12 }
 0x3e9   : > { %v2942_v13 = vsub.s32 32, %v2941_v5  ;;  %v2946_v17 = vsub.s32 4294967266, %v2941_v5  ;;  %v3021_v36 = vsel %vm3007_vm10, %v3018_v39, %v3020_v48  ;;  %v6345_v57 = vsel %vm6237_vm13, %v5630_v32, %v6297_v46 }
 0x3ea   : > { %v6332_v27 = vmul.u32.u64.low %v3022_v7, %v3017_v28  ;;  %v6333_v47 = vmul.u32.u64.high %v3022_v7, %v3017_v28, %v6332_v27  ;;  %v6338_v62 = vmul.u32.u64.low %v3022_v7, %v3021_v36  ;;  %v6339_v40 = vmul.u32.u64.high %v3022_v7, %v3021_v36, %v6338_v62 }
 0x3eb   : > { %v2947_v22 = vadd.s32 127, %v2946_v17  ;;  %v2846_v59 = vand.u32 2147483647, %v2845_v60  ;;  %vm2872_vm12 = vcmp.lt.s32.totalorder %v5679_v41, 0  ;;  %v3013_v19 = vsel %vm3007_vm10, %v3010_v23, %v3012_v50 }
 0x3ec   : > { %v3090_v15 = vsel %vm3089_vm9, %v3088_v3, 0  ;;  %v2944_v33 = vshrl.u32 %v2926_v51, %v2942_v13  ;;  %v3086_v44 = vor.u32 8388608, %v6323_v61  ;;  %v2848_v45 = vcvt.s32.f32 %v2841_v0 }
 0x3ed   : > { %v2948_v20 = vshll.u32 %v2947_v22, 23  ;;  %v3092_v12 = vand.u32 31, %v3090_v15  ;;  %v3032_v1 = vadd.s32 1, %v6333_v47  ;;  %v3185_v46 = vand.u32 2139095040, %v7033_v2 }
 0x3ee   : > { %v2943_v60 = vshll.u32 %v6299_v24, %v2941_v5  ;;  %v3029_v53 = vmul.u32 %v3022_v7, %v3013_v19  ;;  %vm3031_vm0 = vc.u32 %v6339_v40, %v6332_v27  ;;  %v2849_v3 = vmul.f32 %v2848_v45, %v2846_v59 }
 0x3ef   : > { %v2949_v28 = vor.u32 4788187, %v2948_v20  ;;  %v7034_v26 = vand.u32 2147483647, %v5679_v41  ;;  %v2956_v23 = vsub.s32 4, %v6270_v43  ;;  %v3033_v13 = vsel %vm3031_vm0, %v3032_v1, %v6333_v47 }
 0x3f0   : > { %v3093_v17 = vsub.s32 32, %v3092_v12  ;;  %v2945_v50 = vor.u32 %v2944_v33, %v2943_v60  ;;  %v3034_v48 = vadd.s32 %v3033_v13, %v3029_v53  ;;  %v6365_v24 = vshrl.u32 %v3090_v15, 5 }
 0x3f1   : > { %vm6359_vm11 = vcmp.le.f32.partialorder %v7034_v26, 0.7853982  ;;  %v3095_v7 = vshll.u32 %v6945_v34, %v3092_v12  ;;  %v3098_v0 = vshll.u32 %v6951_v6, %v3092_v12  ;;  %v2950_v22 = vand.u32 2147483647, %v2949_v28 }
 0x3f2   : > { %v3096_v5 = vshrl.u32 %v6951_v6, %v3093_v17  ;;  %v3099_v36 = vshrl.u32 %v6939_v35, %v3093_v17  ;;  %v3102_v51 = vshrl.u32 %v6952_v4, %v3093_v17  ;;  %v3035_v62 = vadd.s32 536870912, %v3034_v48 }
 0x3f3   : > { %v3104_v59 = vshll.u32 %v6952_v4, %v3092_v12  ;;  %v3105_v47 = vshrl.u32 %v6953_v38, %v3093_v17  ;;  %v3101_v15 = vshll.u32 %v6939_v35, %v3092_v12  ;;  %v3108_v20 = vshrl.u32 %v6954_v31, %v3093_v17 }
 0x3f4   : > { %v3097_v19 = vor.u32 %v3096_v5, %v3095_v7  ;;  %v3100_v33 = vor.u32 %v3099_v36, %v3098_v0  ;;  %v2957_v45 = vsel %vm2872_vm12, %v2956_v23, %v6270_v43  ;;  %v6379_v1 = vshrl.u32 %v3035_v62, 30 }
 0x3f5   : > { %v3106_v60 = vor.u32 %v3105_v47, %v3104_v59  ;;  %v3186_v53 = vshrl.u32 %v3185_v46, 23  ;;  %v2850_v28 = vxor.u32 2147483648, %v2849_v3  ;;  %v2952_v26 = vcvt.s32.f32 %v2945_v50 }
 0x3f6   : > { %v3103_v13 = vor.u32 %v3102_v51, %v3101_v15  ;;  %v3107_v39 = vshll.u32 %v6953_v38, %v3092_v12  ;;  %v3037_v7 = vshll.u32 %v6379_v1, 30  ;;  %vm3110_vm14 = vcmp.lt.s32.totalorder %v6365_v24, 1 }
 0x3f7   : > { %vm3113_vm1 = vcmp.lt.s32.totalorder %v6365_v24, 4  ;;  %v3126_v5 = vshll.u32 %v3086_v44, 8  ;;  %v2953_v0 = vmul.f32 %v2952_v26, %v2950_v22  ;;  %v3118_v43 = vsel %vm3110_vm14, %v3097_v19, %v3100_v33 }
 0x3f8   : > { %v3109_v36 = vor.u32 %v3108_v20, %v3107_v39  ;;  %v3119_v46 = vsel %vm3113_vm1, %v3106_v60, 920167782  ;;  %v2959_v23 = vsel %vm6359_vm11, 0, %v2957_v45  ;;  %v6391_v50 = vsub.s32 %v3034_v48, %v3037_v7 }
 0x3f9   : > { %vm3112_vm9 = vcmp.lt.s32.totalorder %v6365_v24, 3  ;;  %v3838_v12 = vadd.s32 4294967169, %v3186_v53  ;;  %v2851_v51 = vsel %vm2768_vm7, %v2850_v28, %v2849_v3  ;;  %v3094_v44 = vshrl.u32 %v6945_v34, %v3093_v17 }
 0x3fa   : > { %vm3111_vm15 = vcmp.lt.s32.totalorder %v6365_v24, 2  ;;  %v3120_v39 = vsel %vm3112_vm9, %v3103_v13, %v3119_v46  ;;  %v3040_v22 = vsub.s32 0, %v6391_v50  ;;  %v3115_v62 = vsel %vm3113_vm1, %v3103_v13, 2102212464 }
 0x3fb   : > { %v3121_v48 = vsel %vm3111_vm15, %v3118_v43, %v3120_v39  ;;  %v3122_v59 = vsel %vm3110_vm14, %v3100_v33, %v3103_v13  ;;  %v2954_v47 = vxor.u32 2147483648, %v2953_v0  ;;  %v3123_v3 = vsel %vm3113_vm1, %v3109_v36, 1326507024 }
 0x3fc   : > { %v6409_v17 = vmul.u32.u64.low %v3126_v5, %v3121_v48  ;;  %v6410_v15 = vmul.u32.u64.high %v3126_v5, %v3121_v48, %v6409_v17  ;;  %v2854_v20 = vsel %vm6278_vm6, %v5634_v21, %v2851_v51  ;;  %v3831_v45 = vmin.u32 %v3040_v22, %v6391_v50 }
 0x3fd   : > { %v3124_v53 = vsel %vm3112_vm9, %v3106_v60, %v3123_v3  ;;  %v3192_v28 = vadd.s32 1, %v3838_v12  ;;  %v3114_v26 = vsel %vm3110_vm14, %v3094_v44, %v3097_v19  ;;  %v3116_v13 = vsel %vm3112_vm9, %v3100_v33, %v3115_v62 }
 0x3fe   : > { %v3125_v7 = vsel %vm3111_vm15, %v3122_v59, %v3124_v53  ;;  %v7037_v36 = vand.u32 2147483647, %v7033_v2  ;;  %v3042_v46 = vclz %v3831_v45  ;;  %4129 = vcosq.f32 %v6345_v57 }
 0x3ff   : > { %v6427_v51 = vmul.u32.u64.low %v3126_v5, %v3125_v7  ;;  %v6428_v39 = vmul.u32.u64.high %v3126_v5, %v3125_v7, %v6427_v51  ;;  %vm3193_vm7 = vcmp.gt.s32.totalorder %v3192_v28, 0  ;;  %v2955_v60 = vsel %vm2872_vm12, %v2954_v47, %v2953_v0 }
 0x400   : > { %v3189_v43 = vand.u32 8388607, %v7037_v36  ;;  %v3136_v19 = vadd.s32 1, %v6410_v15  ;;  %v3194_v12 = vsel %vm3193_vm7, %v3192_v28, 0  ;;  %4131 = vsinq.f32 %v6345_v57 }
 0x401   : > { %v3832_v33 = vadd.s32 4294967294, %v3042_v46  ;;  %v3117_v44 = vsel %vm3111_vm15, %v3114_v26, %v3116_v13  ;;  %v3196_v22 = vand.u32 31, %v3194_v12  ;;  %v7038_v62 = vsel %vm6237_vm13, 0, %v6262_v11 }
 0x402   : > { %v2755_v48 = vadd.s32 3, %v7038_v62  ;;  %4133 = vcosq.f32 %v2854_v20  ;;  %v7039_v0 = vsel %vm6278_vm6, 0, %v6268_v25  ;;  %v2963_v47 = vadd.s32 3, %v2959_v23 }
 0x403   : > { %v2859_v59 = vadd.s32 3, %v7039_v0  ;;  %v2958_v57 = vsel %vm6359_vm11, %v5679_v41, %v2955_v60  ;;  %vm3833_vm3 = vcmp.lt.s32.totalorder %v3832_v33, 0  ;;  %vm3135_vm2 = vc.u32 %v6428_v39, %v6409_v17 }
 0x404   : > { %v3190_v24 = vor.u32 8388608, %v3189_v43  ;;  %v3045_v16 = vsel %vm3833_vm3, 0, %v3832_v33  ;;  %v3133_v3 = vmul.u32 %v3126_v5, %v3117_v44  ;;  %v3137_v11 = vsel %vm3135_vm2, %v3136_v19, %v6410_v15 }
 0x405   : > { %v3197_v45 = vsub.s32 32, %v3196_v22  ;;  %v6452_v49 = vand.u32 3, %v6175_v8  ;;  %v6455_v25 = vand.u32 3, %v6284_v29  ;;  %4135 = vsinq.f32 %v2854_v20 }
 0x406   : > { %v3050_v23 = vsub.s32 4294967266, %v3045_v16  ;;  %v6457_v61 = vand.u32 3, %v2755_v48  ;;  %v6459_v53 = vand.u32 3, %v2859_v59  ;;  %4137 = vcosq.f32 %v2958_v57 }
 0x407   : > { %v3138_v28 = vadd.s32 %v3137_v11, %v3133_v3  ;;  %4139 = vsinq.f32 %v2958_v57  ;;  %v6461_v26 = vand.u32 3, %v2963_v47  ;;  %v3030_v5 = vadd.s32 %v6332_v27, %v6339_v40 }
 0x408   : > { %v3046_v15 = vsub.s32 32, %v3045_v16  ;;  %v3200_v13 = vshrl.u32 %v6951_v6, %v3197_v45  ;;  %v6466_v29 = vshll.u32 %v3190_v24, 8  ;;  %vm2238_vm13 = vcmp.eq.s32.totalorder %v5935_v42, 0  ;;  %v6473_v46 = vpop.eup %4129 }
 0x409   : > { %v3139_v8 = vadd.s32 536870912, %v3138_v28  ;;  %v3051_v20 = vadd.s32 127, %v3050_v23  ;;  %v6469_v7 = vshrl.u32 %v3194_v12, 5  ;;  %v3203_v36 = vshrl.u32 %v6939_v35, %v3197_v45 }
 0x40a   : > { %v2239_v43 = vxor.u32 2147483648, %v5999_v54  ;;  %v3199_v27 = vshll.u32 %v6945_v34, %v3196_v22  ;;  %v3205_v40 = vshll.u32 %v6939_v35, %v3196_v22  ;;  %v3206_v60 = vshrl.u32 %v6952_v4, %v3197_v45  ;;  %v6480_v19 = vpop.eup %4131 }
 0x40b   : > { %v6475_v51 = vshrl.u32 %v3139_v8, 30  ;;  %v3048_v33 = vshrl.u32 %v3030_v5, %v3046_v15  ;;  %v3202_v12 = vshll.u32 %v6951_v6, %v3196_v22  ;;  %v3208_v44 = vshll.u32 %v6952_v4, %v3196_v22 }
 0x40c   : > { %v3209_v62 = vshrl.u32 %v6953_v38, %v3197_v45  ;;  %v6485_v48 = vpop.eup %4133  ;;  %v3201_v59 = vor.u32 %v3200_v13, %v3199_v27  ;;  %v3207_v47 = vor.u32 %v3206_v60, %v3205_v40  ;;  %v3212_v57 = vshrl.u32 %v6954_v31, %v3197_v45 }
 0x40d   : > { %v3141_v0 = vshll.u32 %v6475_v51, 30  ;;  %v3052_v35 = vshll.u32 %v3051_v20, 23  ;;  %v3204_v24 = vor.u32 %v3203_v36, %v3202_v12  ;;  %v3211_v11 = vshll.u32 %v6953_v38, %v3196_v22 }
 0x40e   : > { %v3210_v3 = vor.u32 %v3209_v62, %v3208_v44  ;;  %vm2237_vm6 = vcmp.lt.s32.totalorder %v5935_v42, 2  ;;  %v3047_v6 = vshll.u32 %v6391_v50, %v3045_v16  ;;  %vm2241_vm5 = vcmp.eq.s32.totalorder %v5935_v42, 2 }
 0x40f   : > { %v6492_v4 = vsub.s32 %v3138_v28, %v3141_v0  ;;  %v2242_v23 = vxor.u32 2147483648, %v5965_v9  ;;  %v6496_v5 = vpop.eup %4135  ;;  %vm3080_vm10 = vcmp.lt.s32.totalorder %v5797_v10, 0  ;;  %v3198_v31 = vshrl.u32 %v6945_v34, %v3197_v45 }
 0x410   : > { %v3213_v15 = vor.u32 %v3212_v57, %v3211_v11  ;;  %vm3217_vm12 = vcmp.lt.s32.totalorder %v6469_v7, 4  ;;  %v2240_v38 = vsel %vm2238_vm13, %v5965_v9, %v2239_v43  ;;  %v6504_v50 = vpop.eup %4137  ;;  %v6506_v22 = vor.u32 %v3048_v33, %v3047_v6 }
 0x411   : > { %v3144_v16 = vsub.s32 0, %v6492_v4  ;;  %vm3214_vm0 = vcmp.lt.s32.totalorder %v6469_v7, 1  ;;  %v3219_v28 = vsel %vm3217_vm12, %v3207_v47, 2102212464  ;;  %vm2234_vm11 = vweird.f32 %v5600_v56  ;;  %v6513_v34 = vpop.eup %4139 }
 0x412   : > { %v6515_v45 = vor.u32 4788187, %v3052_v35  ;;  %vm3216_vm14 = vcmp.lt.s32.totalorder %v6469_v7, 3  ;;  %v3222_v9 = vsel %vm3214_vm0, %v3201_v59, %v3204_v24  ;;  %v3223_v8 = vsel %vm3217_vm12, %v3210_v3, 920167782 }
 0x413   : > { %vm2446_vm1 = vcmp.eq.s32.totalorder %v6093_v58, 0  ;;  %v3835_v13 = vmin.u32 %v3144_v16, %v6492_v4  ;;  %v3218_v20 = vsel %vm3214_vm0, %v3198_v31, %v3201_v59  ;;  %v3220_v36 = vsel %vm3216_vm14, %v3204_v24, %v3219_v28 }
 0x414   : > { %v3224_v43 = vsel %vm3216_vm14, %v3207_v47, %v3223_v8  ;;  %v3134_v27 = vadd.s32 %v6409_v17, %v6428_v39  ;;  %vm3215_vm9 = vcmp.lt.s32.totalorder %v6469_v7, 2  ;;  %v3226_v40 = vsel %vm3214_vm0, %v3204_v24, %v3207_v47  ;;  %v7043_v8 = vld [vmem:[#allocation10_spill] sm:$0xff] }
 0x415   : > { %v3227_v60 = vsel %vm3217_vm12, %v3213_v15, 1326507024  ;;  %vm2445_vm15 = vcmp.lt.s32.totalorder %v6093_v58, 2  ;;  %v2970_v33 = vxor.u32 2147483648, %v6504_v50  ;;  %v3146_v12 = vclz %v3835_v13  ;;  %v7044_v13 = vld [vmem:[#allocation8_spill] sm:$0xff] }
 0x416   : > { %v3164_v44 = vsub.s32 4, %v6475_v51  ;;  %v3225_v62 = vsel %vm3215_vm9, %v3222_v9, %v3224_v43  ;;  %vm2442_vm7 = vweird.f32 %v5611_v14  ;;  %v3056_v0 = vcvt.s32.f32 %v6506_v22  ;;  %v7045_v43 = vld [vmem:[#allocation14_spill] sm:$0xff] }
 0x417   : > { %v3221_v59 = vsel %vm3215_vm9, %v3218_v20, %v3220_v36  ;;  %v3228_v17 = vsel %vm3216_vm14, %v3210_v3, %v3227_v60  ;;  %v2243_v39 = vsel %vm2241_vm5, %v2242_v23, %v5999_v54  ;;  %v3054_v47 = vand.u32 2147483647, %v6515_v45 }
 0x418   : > { %v3836_v57 = vadd.s32 4294967294, %v3146_v12  ;;  %v3229_v35 = vsel %vm3215_vm9, %v3226_v40, %v3228_v17  ;;  %v2244_v24 = vsel %vm2237_vm6, %v2240_v38, %v2243_v39  ;;  %v7040_v11 = vand.u32 2147483647, %v5797_v10  ;;  %v7046_v12 = vld [vmem:[#allocation17_spill] sm:$0xff] }
 0x419   : > { %v6551_v7 = vmul.u32.u64.low %v6466_v29, %v3229_v35  ;;  %v6552_v3 = vmul.u32.u64.high %v6466_v29, %v3229_v35, %v6551_v7  ;;  %v6555_v31 = vmul.u32.u64.low %v6466_v29, %v3225_v62  ;;  %v6556_v54 = vmul.u32.u64.high %v6466_v29, %v3225_v62, %v6555_v31 }
 0x41a   : > { %vm6546_vm3 = vcmp.le.f32.partialorder %v7040_v11, 0.7853982  ;;  %vm3837_vm2 = vcmp.lt.s32.totalorder %v3836_v57, 0  ;;  %v3165_v42 = vsel %vm3080_vm10, %v3164_v44, %v6475_v51  ;;  %v3237_v23 = vmul.u32 %v6466_v29, %v3221_v59  ;;  %v7047_v7 = vld [vmem:[#allocation15_spill] sm:$0xff] }
 0x41b   : > { %v2447_v15 = vxor.u32 2147483648, %v6282_v37  ;;  %v3149_v38 = vsel %vm3837_vm2, 0, %v3836_v57  ;;  %v2245_v22 = vsel %vm2234_vm11, nan, %v2244_v24  ;;  %vm2449_vm13 = vcmp.eq.s32.totalorder %v6093_v58, 2 }
 0x41c   : > { %v2450_v16 = vxor.u32 2147483648, %v6274_v55  ;;  %v3150_v28 = vsub.s32 32, %v3149_v38  ;;  %v3154_v45 = vsub.s32 4294967266, %v3149_v38  ;;  %vm2134_vm6 = vcmp.eq.s32.totalorder %v5933_v52, 0 }
 0x41d   : > { %v2448_v9 = vsel %vm2446_vm1, %v6274_v55, %v2447_v15  ;;  %v3151_v29 = vshll.u32 %v6492_v4, %v3149_v38  ;;  %vm3239_vm5 = vc.u32 %v6552_v3, %v6555_v31  ;;  %v3240_v56 = vadd.s32 1, %v6556_v54 }
 0x41e   : > { %v2451_v51 = vsel %vm2449_vm13, %v2450_v16, %v6282_v37  ;;  %vm2130_vm12 = vweird.f32 %v7043_v8  ;;  %vm2338_vm0 = vweird.f32 %v7044_v13  ;;  %v3152_v20 = vshrl.u32 %v3134_v27, %v3150_v28 }
 0x41f   : > { %v3155_v36 = vadd.s32 127, %v3154_v45  ;;  %v2452_v55 = vsel %vm2445_vm15, %v2448_v9, %v2451_v51  ;;  %v2135_v40 = vxor.u32 2147483648, %v7045_v43  ;;  %v3241_v4 = vsel %vm3239_vm5, %v3240_v56, %v6556_v54 }
 0x420   : > { %v2453_v60 = vsel %vm2442_vm7, nan, %v2452_v55  ;;  %vm2137_vm11 = vcmp.eq.s32.totalorder %v5933_v52, 2  ;;  %v2138_v37 = vxor.u32 2147483648, %v7046_v12  ;;  %vm2969_vm14 = vcmp.eq.s32.totalorder %v6461_v26, 2 }
 0x421   : > { %v3153_v44 = vor.u32 %v3152_v20, %v3151_v29  ;;  %v3156_v62 = vshll.u32 %v3155_v36, 23  ;;  %v3242_v27 = vadd.s32 %v3241_v4, %v3237_v23  ;;  %v3884_v59 = vpack.c.bf16 %v2453_v60, %v2245_v22 }
 0x422   : > { %v2967_v58 = vxor.u32 2147483648, %v6513_v34  ;;  %v6589_v17 = vmul.f32 %v3056_v0, %v3054_v47  ;;  %v2136_v39 = vsel %vm2134_vm6, %v7046_v12, %v2135_v40  ;;  %v2139_v14 = vsel %vm2137_vm11, %v2138_v37, %v7045_v43  ;;  %v7048_v47 = vld [vmem:[#allocation16_spill] sm:$0xff] }
 0x423   : > { %v3157_v57 = vor.u32 4788187, %v3156_v62  ;;  %v3167_v35 = vsel %vm6546_vm3, 0, %v3165_v42  ;;  %v3243_v24 = vadd.s32 536870912, %v3242_v27  ;;  %3885 = vmatprep.subr.bf16.mxu1 %v3884_v59  ;;  %vm2133_vm1 = vcmp.lt.s32.totalorder %v5933_v52, 2 }
 0x424   : > { %v3160_v11 = vcvt.s32.f32 %v3153_v44  ;;  %vm2342_vm9 = vcmp.eq.s32.totalorder %v7047_v7, 0  ;;  %v2343_v0 = vxor.u32 2147483648, %v6197_v63  ;;  %v2346_v54 = vxor.u32 2147483648, %v7048_v47  ;;  %v7050_v44 = vld [vmem:[#allocation13_spill] sm:$0xff] }
 0x425   : > { %v3158_v23 = vand.u32 2147483647, %v3157_v57  ;;  %v6601_v15 = vshrl.u32 %v3243_v24, 30  ;;  %v2140_v38 = vsel %vm2133_vm1, %v2136_v39, %v2139_v14  ;;  %vm2345_vm15 = vcmp.eq.s32.totalorder %v7047_v7, 2 }
 0x426   : > { %vm2341_vm7 = vcmp.lt.s32.totalorder %v7047_v7, 2  ;;  %v2344_v42 = vsel %vm2342_vm9, %v7048_v47, %v2343_v0  ;;  %v2347_v22 = vsel %vm2345_vm15, %v2346_v54, %v6197_v63  ;;  %v2655_v52 = vxor.u32 2147483648, %v6327_v30 }
 0x427   : > { %v3161_v16 = vmul.f32 %v3160_v11, %v3158_v23  ;;  %v3171_v28 = vadd.s32 3, %v3167_v35  ;;  %v3245_v45 = vshll.u32 %v6601_v15, 30  ;;  %v2348_v9 = vsel %vm2341_vm7, %v2344_v42, %v2347_v22 }
 0x428   : > { %v2141_v29 = vsel %vm2130_vm12, nan, %v2140_v38  ;;  %v2349_v56 = vsel %vm2338_vm0, nan, %v2348_v9  ;;  %vm2654_vm2 = vcmp.eq.s32.totalorder %v6455_v25, 0  ;;  %v2658_v51 = vxor.u32 2147483648, %v6325_v18 }
 0x429   : > { %v3162_v20 = vxor.u32 2147483648, %v3161_v16  ;;  %v6615_v36 = vsub.s32 %v3242_v27, %v3245_v45  ;;  %v3886_v63 = vpack.c.bf16 %v2349_v56, %v2141_v29  ;;  %vm2657_vm13 = vcmp.eq.s32.totalorder %v6455_v25, 2  ;;  %v7051_v27 = vld [vmem:[#allocation11_spill] sm:$0xff] }
 0x42a   : > { %vm2966_vm6 = vcmp.eq.s32.totalorder %v6461_v26, 0  ;;  %v2971_v8 = vsel %vm2969_vm14, %v2970_v33, %v6513_v34  ;;  %v2656_v13 = vsel %vm2654_vm2, %v6325_v18, %v2655_v52  ;;  %v2659_v55 = vsel %vm2657_vm13, %v2658_v51, %v6327_v30  ;;  %v7049_v30 = vld [vmem:[#allocation12_spill] sm:$0xff] }
 0x42b   : > { %v2968_v43 = vsel %vm2966_vm6, %v6504_v50, %v2967_v58  ;;  %v3058_v40 = vxor.u32 2147483648, %v6589_v17  ;;  %v3163_v4 = vsel %vm3080_vm10, %v3162_v20, %v3161_v16  ;;  %v3248_v60 = vsub.s32 0, %v6615_v36  ;;  %3887 = vmatpush1.bf16.msra.mxu1 %v3886_v63 }
 0x42c   : > { %v3166_v12 = vsel %vm6546_vm3, %v5797_v10, %v3163_v4  ;;  %v6634_v37 = vand.u32 3, %v3171_v28  ;;  %vm2653_vm5 = vcmp.lt.s32.totalorder %v6455_v25, 2  ;;  %v2863_v18 = vxor.u32 2147483648, %v6496_v5 }
 0x42d   : > { %vm2965_vm12 = vcmp.lt.s32.totalorder %v6461_v26, 2  ;;  %vm2976_vm0 = vcmp.lt.s32.totalorder %v7049_v30, 0  ;;  %4141 = vcosq.f32 %v3166_v12  ;;  %v3839_v50 = vmin.u32 %v3248_v60, %v6615_v36 }
 0x42e   : > { %v2660_v34 = vsel %vm2653_vm5, %v2656_v13, %v2659_v55  ;;  %vm2862_vm10 = vcmp.eq.s32.totalorder %v6459_v53, 0  ;;  %4143 = vsinq.f32 %v3166_v12  ;;  %v3238_v33 = vadd.s32 %v6555_v31, %v6552_v3  ;;  %v7052_v31 = vld [vmem:[#allocation19_spill] sm:$0xff] }
 0x42f   : > { %v2864_v6 = vsel %vm2862_vm10, %v6485_v48, %v2863_v18  ;;  %v2866_v25 = vxor.u32 2147483648, %v6485_v48  ;;  %vm2546_vm3 = vweird.f32 %v7050_v44  ;;  %vm2754_vm11 = vweird.f32 %v5630_v32 }
 0x430   : > { %v3250_v62 = vclz %v3839_v50  ;;  %vm2650_vm14 = vweird.f32 %v7051_v27  ;;  %vm2858_vm1 = vweird.f32 %v5634_v21  ;;  %vm2865_vm9 = vcmp.eq.s32.totalorder %v6459_v53, 2  ;;  %v7056_v21 = vld [vmem:[#allocation18_spill] sm:$0xff] }
 0x431   : > { %v2661_v59 = vsel %vm2650_vm14, nan, %v2660_v34  ;;  %vm2861_vm15 = vcmp.lt.s32.totalorder %v6459_v53, 2  ;;  %v2867_v3 = vsel %vm2865_vm9, %v2866_v25, %v6496_v5  ;;  %v2551_v58 = vxor.u32 2147483648, %v7052_v31 }
 0x432   : > { %v7053_v48 = vand.u32 2147483647, %v7049_v30  ;;  %v3840_v14 = vadd.s32 4294967294, %v3250_v62  ;;  %v2868_v57 = vsel %vm2861_vm15, %v2864_v6, %v2867_v3  ;;  %vm2550_vm2 = vcmp.eq.s32.totalorder %v6452_v49, 0 }
 0x433   : > { %v2554_v35 = vxor.u32 2147483648, %v7056_v21  ;;  %v2869_v24 = vsel %vm2858_vm1, nan, %v2868_v57  ;;  %v2552_v11 = vsel %vm2550_vm2, %v7056_v21, %v2551_v58  ;;  %vm2553_vm13 = vcmp.eq.s32.totalorder %v6452_v49, 2 }
 0x434   : > { %vm6656_vm7 = vcmp.le.f32.partialorder %v7053_v48, 0.7853982  ;;  %v2759_v53 = vxor.u32 2147483648, %v6480_v19  ;;  %vm3841_vm6 = vcmp.lt.s32.totalorder %v3840_v14, 0  ;;  %v3888_v5 = vpack.c.bf16 %v2869_v24, %v2661_v59 }
 0x435   : > { %v2555_v7 = vsel %vm2553_vm13, %v2554_v35, %v7052_v31  ;;  %vm2758_vm5 = vcmp.eq.s32.totalorder %v6457_v61, 0  ;;  %v3253_v0 = vsel %vm3841_vm6, 0, %v3840_v14  ;;  %vm2549_vm10 = vcmp.lt.s32.totalorder %v6452_v49, 2 }
 0x436   : > { %v2760_v47 = vsel %vm2758_vm5, %v6473_v46, %v2759_v53  ;;  %v2762_v54 = vxor.u32 2147483648, %v6473_v46  ;;  %v3254_v23 = vsub.s32 32, %v3253_v0  ;;  %v3258_v38 = vsub.s32 4294967266, %v3253_v0  ;;  %3889 = vmatprep.subr.bf16.mxu1 %v3888_v5 }
 0x437   : > { %v2556_v42 = vsel %vm2549_vm10, %v2552_v11, %v2555_v7  ;;  %vm2761_vm14 = vcmp.eq.s32.totalorder %v6457_v61, 2  ;;  %v2972_v22 = vsel %vm2965_vm12, %v2968_v43, %v2971_v8  ;;  %v3059_v52 = vsel %vm2976_vm0, %v3058_v40, %v6589_v17  ;;  %v4142_v16 = vpop.eup %4141 }
 0x438   : > { %vm2757_vm1 = vcmp.lt.s32.totalorder %v6457_v61, 2  ;;  %v2763_v49 = vsel %vm2761_vm14, %v2762_v54, %v6480_v19  ;;  %v3255_v46 = vshll.u32 %v6615_v36, %v3253_v0  ;;  %v3256_v28 = vshrl.u32 %v3238_v33, %v3254_v23  ;;  %v4144_v29 = vpop.eup %4143  ;;  %v4168_v23 = vld [vmem:[%s6852_s2] sm:$0xff] }
 0x439   : > { %v3259_v45 = vadd.s32 127, %v3258_v38  ;;  %v2764_v9 = vsel %vm2757_vm1, %v2760_v47, %v2763_v49  ;;  %vm3177_vm9 = vcmp.eq.s32.totalorder %v6634_v37, 2  ;;  %v3178_v56 = vxor.u32 2147483648, %v4142_v16  ;;  %v4174_v49 = vld [vmem:[%s6852_s2 + $0x30] sm:$0xff] }
 0x43a   : > { %v2557_v26 = vsel %vm2546_vm3, nan, %v2556_v42  ;;  %v2765_v17 = vsel %vm2754_vm11, nan, %v2764_v9  ;;  %v3175_v51 = vxor.u32 2147483648, %v4144_v29  ;;  %v3257_v61 = vor.u32 %v3256_v28, %v3255_v46  ;;  %v4171_v42 = vld [vmem:[%s6852_s2 + $0x18] sm:$0xff]  ;;  %v6749_v46 = vld [vmem:[%s4324_s28 + $0x8] sm:$0xff]  ;;  %v7060_v9 = vld [vmem:[#allocation5_spill] sm:$0xff] }
 0x43b   : > { %v3260_v20 = vshll.u32 %v3259_v45, 23  ;;  %v3890_v19 = vpack.c.bf16 %v2765_v17, %v2557_v26  ;;  %v3062_v36 = vsel %vm6656_vm7, %v7049_v30, %v3059_v52  ;;  %vm3174_vm12 = vcmp.eq.s32.totalorder %v6634_v37, 0  ;;  %v4173_v52 = vld [vmem:[%s6852_s2 + $0x28] sm:$0xff]  ;;  %s3869_s28 = sshll.u32 %s4291_s16, 9  ;;  %s4249_s16 = smov [#allocation2]  }
 0x43c   : > { %v3179_v63 = vsel %vm3177_vm9, %v3178_v56, %v4144_v29  ;;  %vm2962_vm15 = vweird.f32 %v5679_v41  ;;  %vm3173_vm2 = vcmp.lt.s32.totalorder %v6634_v37, 2  ;;  %v3176_v8 = vsel %vm3174_vm12, %v4142_v16, %v3175_v51  ;;  %v4175_v16 = vld [vmem:[%s6852_s2 + $0x38] sm:$0xff]  ;;  %v7061_v17 = vld [vmem:[#allocation6_spill] sm:$0xff]  ;;  %s6804_s24 = scalar_lea.hbm %s6853_s3, %s3869_s28  ;;  %s4181_s27 = sshll.u32 %s4249_s16, 4  ;;  %s4182_s27 = int_to_ptr.vmem [resolvable:$false] %s4181_s27 }
 0x43d   : > { %v3261_v13 = vor.u32 4788187, %v3260_v20  ;;  %3891 = vmatpush1.bf16.msra.mxu1 %v3890_v19  ;;  %v2973_v32 = vsel %vm2962_vm15, nan, %v2972_v22  ;;  %v3060_v55 = vsub.s32 4, %v6379_v1  ;;  %vm3170_vm3 = vweird.f32 %v5797_v10  ;;  %v4172_v22 = vld [vmem:[%s6852_s2 + $0x20] sm:$0xff]  ;;  %s4183_s29 = scalar_lea.vmem %s4182_s27, 1024  ;;  %p4184_p0 = scmp.lt.s32.totalorder %s6806_s17, %s4182_s27 }
 0x43e   : > { %v3180_v43 = vsel %vm3173_vm2, %v3176_v8, %v3179_v63  ;;  %4145 = vcosq.f32 %v3062_v36  ;;  %v3264_v60 = vcvt.s32.f32 %v3257_v61  ;;  %v3268_v41 = vsub.s32 4, %v6601_v15  ;;  %p4185_p1 = scmp.lt.s32.totalorder %s4183_s29, %s4177_s26 }
 0x43f   : > { %v3181_v40 = vsel %vm3170_vm3, nan, %v3180_v43  ;;  %v3262_v4 = vand.u32 2147483647, %v3261_v13  ;;  %4147 = vsinq.f32 %v3062_v36  ;;  %v3061_v37 = vsel %vm2976_vm0, %v3060_v55, %v6379_v1 }
 0x440   : > { %v3895_v12 = vpack.c.bf16 %v3181_v40, %v2973_v32  ;;  %vm3184_vm11 = vcmp.lt.s32.totalorder %v7033_v2, 0  ;;  %v3063_v10 = vsel %vm6656_vm7, 0, %v3061_v37  ;;  %v7057_v34 = vand.u32 2147483647, %v7033_v2  ;;  %p4186_p2 = por %p4185_p1, %p4184_p0 }
 0x441   : > { %v3265_v18 = vmul.f32 %v3264_v60, %v3262_v4  ;;  %v3269_v6 = vsel %vm3184_vm11, %v3268_v41, %v6601_v15  ;;  %v3067_v44 = vadd.s32 3, %v3063_v10  ;;  %vm3066_vm1 = vweird.f32 %v7049_v30  ;;  %v4170_v30 = vld [vmem:[%s6852_s2 + $0x10] sm:$0xff] }
 0x442   : > { %vm3183_vm13 = vcmp.le.f32.partialorder %v7057_v34, 0.7853982  ;;  %vm3274_vm9 = vweird.f32 %v7033_v2  ;;  %v7059_v38 = vmov 0.0   ;;  %vm3431_vm12 = vcmp.eq.f32.partialorder %v6749_v46, 1.0  ;;  %p4187_p3 = pnand %p4186_p2, %p4180_p13 }
 0x443   : > { %v3266_v50 = vxor.u32 2147483648, %v3265_v18  ;;  %v3271_v62 = vsel %vm3183_vm13, 0, %v3269_v6  ;;  %v3068_v3 = vand.u32 3, %v3067_v44  ;;  %v3853_v45 = vsel %vm3431_vm12, 1.0, %v7059_v38 }
 0x444   : > { %v3275_v59 = vadd.s32 3, %v3271_v62  ;;  %vm3457_vm15 = vcmp.eq.f32.partialorder %v6749_v46, 2.0  ;;  %v3438_v56 = vrot.slane %v3853_v45, %v7060_v9  ;;  %v3442_v61 = vrot.slane %v3853_v45, %v7061_v17 }
 0x445   : > { %v3267_v33 = vsel %vm3184_vm11, %v3266_v50, %v3265_v18  ;;  %vm3070_vm0 = vcmp.eq.s32.totalorder %v3068_v3, 0  ;;  %vm3073_vm7 = vcmp.eq.s32.totalorder %v3068_v3, 2  ;;  %vm3069_vm5 = vcmp.lt.s32.totalorder %v3068_v3, 2 }
 0x446   : > { %v3270_v25 = vsel %vm3183_vm13, %v7033_v2, %v3267_v33  ;;  %v3276_v48 = vand.u32 3, %v3275_v59  ;;  %v4169_v2 = vld [vmem:[%s6852_s2 + $0x8] sm:$0xff]  ;;  %v3854_v26 = vsel %vm3457_vm15, 1.0, %v7059_v38  ;;  %v3448_v8 = vrot.slane %v3438_v56, %v7060_v9 }
 0x447   : > { %4149 = vcosq.f32 %v3270_v25  ;;  %v3464_v19 = vrot.slane %v3854_v26, %v7060_v9  ;;  %v3468_v13 = vrot.slane %v3854_v26, %v7061_v17  ;;  %v3452_v55 = vrot.slane %v3442_v61, %v7060_v9 }
 0x448   : > { %4151 = vsinq.f32 %v3270_v25  ;;  %v4146_v27 = vpop.eup %4145  ;;  %vm3281_vm6 = vcmp.eq.s32.totalorder %v3276_v48, 2  ;;  %vm3278_vm10 = vcmp.eq.s32.totalorder %v3276_v48, 0  ;;  %vm3277_vm14 = vcmp.lt.s32.totalorder %v3276_v48, 2 }
 0x449   : > { %v4148_v1 = vpop.eup %4147  ;;  %v3074_v58 = vxor.u32 2147483648, %v4146_v27  ;;  %vm3509_vm2 = vcmp.eq.f32.partialorder %v6749_v46, 4.0  ;;  %v3474_v4 = vrot.slane %v3464_v19, %v7060_v9  ;;  %v3478_v41 = vrot.slane %v3468_v13, %v7060_v9 }
 0x44a   : > { %v3071_v31 = vxor.u32 2147483648, %v4148_v1  ;;  %v3856_v33 = vsel %vm3509_vm2, 1.0, %v7059_v38  ;;  %vm3535_vm3 = vcmp.eq.f32.partialorder %v6749_v46, 5.0  ;;  %vm3561_vm11 = vcmp.eq.f32.partialorder %v6749_v46, 6.0 }
 0x44b   : > { %v3075_v57 = vsel %vm3073_vm7, %v3074_v58, %v4148_v1  ;;  %v3516_v59 = vrot.slane %v3856_v33, %v7060_v9  ;;  %v3520_v58 = vrot.slane %v3856_v33, %v7061_v17  ;;  %v3857_v48 = vsel %vm3535_vm3, 1.0, %v7059_v38 }
 0x44c   : > { %v3072_v14 = vsel %vm3070_vm0, %v4146_v27, %v3071_v31  ;;  %vm3587_vm13 = vcmp.eq.f32.partialorder %v6749_v46, 7.0 }
 0x44d   : > { %v3076_v11 = vsel %vm3069_vm5, %v3072_v14, %v3075_v57 }
 0x44e   : > { %v3077_v0 = vsel %vm3066_vm1, nan, %v3076_v11 }
 0x451   : > { %v4150_v39 = vpop.eup %4149 }
 0x452   : > { %v4152_v21 = vpop.eup %4151  ;;  %v3282_v15 = vxor.u32 2147483648, %v4150_v39 }
 0x453   : > { %v3279_v35 = vxor.u32 2147483648, %v4152_v21 }
 0x454   : > { %v3283_v24 = vsel %vm3281_vm6, %v3282_v15, %v4152_v21 }
 0x455   : > { %v3280_v53 = vsel %vm3278_vm10, %v4150_v39, %v3279_v35  ;;  %v3526_v35 = vrot.slane %v3516_v59, %v7060_v9 }
 0x456   : > { %v3284_v5 = vsel %vm3277_vm14, %v3280_v53, %v3283_v24  ;;  %v3542_v24 = vrot.slane %v3857_v48, %v7060_v9  ;;  %v3530_v53 = vrot.slane %v3520_v58, %v7060_v9 }
 0x457   : > { %v3285_v7 = vsel %vm3274_vm9, nan, %v3284_v5  ;;  %v3546_v5 = vrot.slane %v3857_v48, %v7061_v17 }
 0x458   : > { %v3892_v47 = vpack.c.bf16 %v3285_v7, %v3077_v0  ;;  %v3858_v7 = vsel %vm3561_vm11, 1.0, %v7059_v38 }
 0x45a   : > { %3894 = vmatprep.subr.msk.bf16.mxu1 %vm5465_vm4, %v3892_v47 }
 0x45b   : > { %3897 = vmatpush1.bf16.msk.msra.mxu1 %vm5465_vm4, %v3895_v12  ;;  %vm3405_vm4 = vcmp.eq.f32.partialorder %v6749_v46, 0.0 }
 0x45c   : > { %v3852_v28 = vsel %vm3405_vm4, 1.0, %v7059_v38 }
 0x45d   : > { %v3412_v29 = vrot.slane %v3852_v28, %v7060_v9  ;;  %v3416_v51 = vrot.slane %v3852_v28, %v7061_v17 }
 0x45e   : > { %3844 = vmatmul.mubr.msk.f32.vlgmr.msra.gmra.mrb[10].mxu1 %vm1562_vm8, %v4168_v23 }
 0x45f   : > { %3362 = vmatprep.mubr.f32.mxu1 %v7059_v38  ;;  %v3422_v36 = vrot.slane %v3412_v29, %v7060_v9  ;;  %v3426_v32 = vrot.slane %v3416_v51, %v7060_v9 }
 0x462   : > { %3845 = vmatmul.mubr.msk.f32.gmra.mrb[12].mxu1 %vm1562_vm8, %v4169_v2 }
 0x463   : > { %3368 = vmatprep.mubr.f32.mxu1 %v7059_v38 }
 0x466   : > { %3846 = vmatmul.mubr.msk.f32.gmra.mrb[14].mxu1 %vm1562_vm8, %v4170_v30  ;;  %v3552_v30 = vrot.slane %v3542_v24, %v7060_v9 }
 0x467   : > { %3374 = vmatprep.mubr.f32.mxu1 %v7059_v38 }
 0x46a   : > { %3847 = vmatmul.mubr.msk.f32.gmra.mrb[16].mxu1 %vm1562_vm8, %v4171_v42  ;;  %v3568_v42 = vrot.slane %v3858_v7, %v7060_v9 }
 0x46b   : > { %3380 = vmatprep.mubr.f32.mxu1 %v7059_v38 }
 0x46c   : > { %v3578_v26 = vrot.slane %v3568_v42, %v7060_v9 }
 0x46e   : > { %3848 = vmatmul.mubr.msk.f32.gmra.mrb[18].mxu1 %vm1562_vm8, %v4172_v22 }
 0x46f   : > { %3386 = vmatprep.mubr.f32.mxu1 %v7059_v38 }
 0x472   : > { %3849 = vmatmul.mubr.msk.f32.gmra.mrb[20].mxu1 %vm1562_vm8, %v4173_v52  ;;  %v3556_v52 = vrot.slane %v3546_v5, %v7060_v9 }
 0x473   : > { %3392 = vmatprep.mubr.f32.mxu1 %v7059_v38 }
 0x476   : > { %3850 = vmatmul.mubr.msk.f32.gmra.mrb[22].mxu1 %vm1562_vm8, %v4174_v49  ;;  %v3572_v49 = vrot.slane %v3858_v7, %v7061_v17 }
 0x477   : > { %3398 = vmatprep.mubr.f32.mxu1 %v7059_v38 }
 0x47a   : > { %3851 = vmatmul.mubr.msk.f32.gmra.mrb[24].mxu1 %vm1562_vm8, %v4175_v16  ;;  %vm3483_vm8 = vcmp.eq.f32.partialorder %v6749_v46, 3.0  ;;  %v3859_v16 = vsel %vm3587_vm13, 1.0, %v7059_v38 }
 0x47b   : > { %v3855_v43 = vsel %vm3483_vm8, 1.0, %v7059_v38  ;;  %v3594_v51 = vrot.slane %v3859_v16, %v7060_v9  ;;  %v3598_v19 = vrot.slane %v3859_v16, %v7061_v17 }
 0x47c   : > { %v3490_v37 = vrot.slane %v3855_v43, %v7060_v9  ;;  %v3494_v34 = vrot.slane %v3855_v43, %v7061_v17 }
 0x47d   : > { %v3604_v38 = vrot.slane %v3594_v51, %v7060_v9  ;;  %v3608_v43 = vrot.slane %v3598_v19, %v7060_v9 }
 0x47e   : > { %v3500_v1 = vrot.slane %v3490_v37, %v7060_v9  ;;  %v3504_v31 = vrot.slane %v3494_v34, %v7060_v9 }
 0x531   : > { %v3358_v20 = vpop.f32.mrb[10].mxu1 }
 0x532   : > { %v3360_v63 = vpop.f32.mrb[11].mxu1  ;;  %v3427_v60 = vmul.f32 %v3422_v36, %v3358_v20  ;;  %v3582_v20 = vrot.slane %v3572_v49, %v7060_v9 }
 0x533   : > { %v3428_v50 = vmul.f32 %v3426_v32, %v3360_v63 }
 0x535   : > { %v3364_v40 = vpop.f32.mrb[12].mxu1 }
 0x536   : > { %v3453_v12 = vmul.f32 %v3448_v8, %v3364_v40  ;;  %v3366_v18 = vpop.f32.mrb[13].mxu1 }
 0x537   : > { %v3454_v10 = vmul.f32 %v3452_v55, %v3366_v18 }
 0x538   : > { %v3455_v6 = vadd.f32 %v3453_v12, %v3427_v60 }
 0x539   : > { %v3456_v25 = vadd.f32 %v3454_v10, %v3428_v50  ;;  %v3370_v44 = vpop.f32.mrb[14].mxu1 }
 0x53a   : > { %v3479_v62 = vmul.f32 %v3474_v4, %v3370_v44  ;;  %v3372_v27 = vpop.f32.mrb[15].mxu1 }
 0x53b   : > { %v3480_v3 = vmul.f32 %v3478_v41, %v3372_v27 }
 0x53c   : > { %v3481_v39 = vadd.f32 %v3479_v62, %v3455_v6 }
 0x53d   : > { %v3482_v14 = vadd.f32 %v3480_v3, %v3456_v25  ;;  %v3376_v57 = vpop.f32.mrb[16].mxu1 }
 0x53e   : > { %v3505_v21 = vmul.f32 %v3500_v1, %v3376_v57  ;;  %v3378_v15 = vpop.f32.mrb[17].mxu1 }
 0x53f   : > { %v3506_v11 = vmul.f32 %v3504_v31, %v3378_v15 }
 0x540   : > { %v3507_v0 = vadd.f32 %v3505_v21, %v3481_v39 }
 0x541   : > { %v3508_v47 = vadd.f32 %v3506_v11, %v3482_v14  ;;  %v3382_v54 = vpop.f32.mrb[18].mxu1 }
 0x542   : > { %v3531_v23 = vmul.f32 %v3526_v35, %v3382_v54  ;;  %v3384_v2 = vpop.f32.mrb[19].mxu1 }
 0x543   : > { %v3532_v22 = vmul.f32 %v3530_v53, %v3384_v2 }
 0x544   : > { %v3533_v28 = vadd.f32 %v3531_v23, %v3507_v0 }
 0x545   : > { %v3534_v45 = vadd.f32 %v3532_v22, %v3508_v47  ;;  %v3388_v29 = vpop.f32.mrb[20].mxu1 }
 0x546   : > { %v3557_v56 = vmul.f32 %v3552_v30, %v3388_v29  ;;  %v3390_v46 = vpop.f32.mrb[21].mxu1 }
 0x547   : > { %v3558_v61 = vmul.f32 %v3556_v52, %v3390_v46 }
 0x548   : > { %v3559_v36 = vadd.f32 %v3557_v56, %v3533_v28 }
 0x549   : > { %v3560_v63 = vadd.f32 %v3558_v61, %v3534_v45  ;;  %v3394_v8 = vpop.f32.mrb[22].mxu1 }
 0x54a   : > { %v3583_v13 = vmul.f32 %v3578_v26, %v3394_v8  ;;  %v3396_v32 = vpop.f32.mrb[23].mxu1 }
 0x54b   : > { %v3584_v55 = vmul.f32 %v3582_v20, %v3396_v32 }
 0x54c   : > { %v3585_v40 = vadd.f32 %v3583_v13, %v3559_v36 }
 0x54d   : > { %v3586_v4 = vadd.f32 %v3584_v55, %v3560_v63  ;;  %v3400_v60 = vpop.f32.mrb[24].mxu1 }
 0x54e   : > { %v3609_v12 = vmul.f32 %v3604_v38, %v3400_v60  ;;  %v3402_v18 = vpop.f32.mrb[25].mxu1 }
 0x54f   : > { %v3610_v41 = vmul.f32 %v3608_v43, %v3402_v18 }
 0x550   : > { %v3611_v37 = vadd.f32 %v3609_v12, %v3585_v40 }
 0x551   : > { %v3612_v17 = vadd.f32 %v3610_v41, %v3586_v4 }
 0x552   : > { %v3860_v50 = vmul.f32 -1.442695, %v3611_v37 }
 0x553   : > { %v3861_v10 = vmul.f32 -1.442695, %v3612_v17 }
 0x554   : > { %4153 = vpow2.f32 %v3860_v50 }
 0x555   : > { %4155 = vpow2.f32 %v3861_v10 }
 0x55e   : > { %v4154_v34 = vpop.eup %4153 }
 0x55f   : > { %v4156_v33 = vpop.eup %4155  ;;  %v3619_v9 = vadd.f32 1.0, %v4154_v34 }
 0x560   : > { %v3620_v6 = vadd.f32 1.0, %v4156_v33 }
 0x561   : > { %4157 = vrcp.f32 %v3619_v9 }
 0x562   : > { %4159 = vrcp.f32 %v3620_v6 }
 0x56b   : > { %v4158_v25 = vpop.eup %4157 }
 0x56c   : > { %v4160_v44 = vpop.eup %4159  ;;  %3862 = vst [vmem:[%s6161_s10 + $0x10] sm:$0x1f] %v4158_v25 }
 0x56d   : > { %3863 = vst [vmem:[%s6161_s10 + $0x18] sm:$0x1f] %v4160_v44 }
 0x56e   : > { %4190 = shalt.err (!%p4187_p3)
}
 0x56f   : > { %s4191_s8 = scalar_lea.hbm %s6804_s24, 512  ;;  %s4195_s4 = scalar_lea.hbm %s6853_s3, 1024 }
 0x570   : > { %p4192_p4 = scmp.ne.s32.totalorder %s6804_s24, %s4191_s8  ;;  %p4196_p9 = scmp.lt.u32.totalorder %s6804_s24, %s6853_s3 }
 0x571   : > { %p4197_p10 = scmp.lt.u32.totalorder %s4195_s4, %s4191_s8  ;;  %p4199_p12 = scmp.lt.u32.totalorder %s4191_s8, %s6804_s24 }
 0x572   : > { %p4193_p7 = pnand %p4192_p4, %p4308_p5 }
 0x573   : > { %p4198_p11 = por %p4197_p10, %p4196_p9 }
 0x574   : > { %p4194_p8 = pneg %p4193_p7 }
 0x575   : > { %p4200_p13 = por %p4199_p12, %p4198_p11 }
 0x577   : > { %p4201_p0 = pnand %p4200_p13, %p4194_p8 }
 0x579   : > { %4204 = shalt.err (!%p4201_p0)
}
 0x57a   : > { %4000 = dma.vmem_to_hbm [thread:$0]  (%p4308_p5), %s6806_s17, 512, %s6804_s24, %s3629_s25  }
 0x57b PF: > { %p4006_p1 = scmp.ge.s32.totalorder %s4239_s15, 2  ;;  %s3655_s7 = sand.u32 1, %s4227_s12  }
 0x57c   : > { %s3656_s9 = scalar_lea.sflag [#allocation3], %s3655_s7 }
 0x57d   : > { %p4003_p2 = pnand %p4006_p1, %p4312_p6 }
 0x57f   : > { %4222 = dma.done.wait (!%p4003_p2), %s3656_s9, 512  }
 0x580   : > { %4224 = vsyncadd (!%p4003_p2), %s3656_s9, 4294966784  ;;  %p13_p3 = scmp.ge.s32.totalorder %s4295_s18, 4   ;;  %s7062_s12 = smov %s4231_s13 }
 0x581   : > { %s7063_s13 = smov %s4235_s14  ;;  %s7064_s14 = smov %s4306_s21 }
 0x582   : > { %s7065_s15 = smov %s4295_s18  ;;  %15 = sbr.rel (!%p13_p3) target bundleno = 3 (0x3), region = 69 }
 0x589   :  { %3661 = vsyncpa [#allocation3], 1 }
 0x58a   :  { %3663 = vsyncpa [#allocation3 + $0x1], 1 }

</bundles_post_ra>
